<compile_context>
chip_gen: v5e
topology: v5e:2x2
jax: 0.10.0
libtpu: 0.0.40
codegen_flags: <defaults>
</compile_context>

<pallas_src>
import functools
import math

import jax
import jax.numpy as jnp
from jax.experimental import pallas as pl
from jax.experimental.pallas import tpu as pltpu

LANE = 128
_TAPS3 = tuple((i, j) for i in range(3) for j in range(3))


# ----------------------------------------------------------------------------
# small helpers (plain JAX glue)
# ----------------------------------------------------------------------------
def _round_up(x, m):
    return (x + m - 1) // m * m


def _pad_last(a, width):
    pad = width - a.shape[-1]
    if pad == 0:
        return a
    return jnp.pad(a, [(0, 0)] * (a.ndim - 1) + [(0, pad)])


def _fold_bn(gamma, beta, mean, var, eps=1e-5):
    scale = gamma / jnp.sqrt(var + eps)
    shift = beta - mean * scale
    return scale, shift


def _pick_row_tile(ho, wo, max_rows=2048):
    """Largest divisor of ho whose output tile (tho * wo rows) stays under max_rows."""
    best = 1
    for d in range(1, ho + 1):
        if ho % d == 0 and d * wo <= max_rows:
            best = d
    return best


def _build_phases(xp, stride):
    """Space-to-depth: (N, Hp, Wp, C) -> (N*s*s, Hph, Wph, C); identity for stride 1."""
    if stride == 1:
        return xp
    n, _, _, c = xp.shape
    phases = [xp[:, a::stride, b::stride, :] for a in range(stride) for b in range(stride)]
    hph = max(p.shape[1] for p in phases)
    wph = max(p.shape[2] for p in phases)
    # zero padding of ragged phases is exact: the activation (relu(bn1)) is already applied.
    phases = [jnp.pad(p, ((0, 0), (0, hph - p.shape[1]), (0, wph - p.shape[2]), (0, 0)))
              for p in phases]
    return jnp.stack(phases, axis=1).reshape(n * stride * stride, hph, wph, c)


def _weights_to_taps(w_oihw, ci_pad, co_pad, taps, col_scale=None):
    """Torch (Co, Ci, KH, KW) -> (len(taps), ci_pad, co_pad) bf16 per-tap matrices."""
    co, ci = w_oihw.shape[0], w_oihw.shape[1]
    mats = []
    for (i, j) in taps:
        m = jnp.transpose(w_oihw[:, :, i, j], (1, 0)).astype(jnp.float32)  # (Ci, Co)
        if col_scale is not None:
            m = m * col_scale[None, :]
        mats.append(jnp.pad(m, ((0, ci_pad - ci), (0, co_pad - co))))
    return jnp.stack(mats, axis=0).astype(jnp.bfloat16)


@functools.lru_cache(maxsize=1)
def _vmem_limit_bytes():
    try:
        cap = int(pltpu.get_tpu_info().vmem_capacity_bytes)
    except Exception:  # emulation / older runtime: assume the smallest physical VMEM (v7x)
        cap = 64 * 1024 * 1024
    return max(16 * 1024 * 1024, (cap * 3) // 4)


def _size_bytes(shaped):
    return math.prod(shaped.shape) * jnp.dtype(shaped.dtype).itemsize


# ----------------------------------------------------------------------------
# Kernel 1: conv1 (bn2 scale folded in, bn2 shift + ReLU epilogue) + conv_res shortcut
# ----------------------------------------------------------------------------
def _conv1_kernel(x_ref, w_ref, oshift_ref, *rest, stride, tho, wo, has_res):
    """x_ref : (s*s, Hph, Wph, Ci) bf16  phase-decomposed, already relu(bn1(.))'d, zero pad
       w_ref : (9, Ci, Co) bf16          per-tap conv1 matrices (bn2 scale folded in)
       oshift: (1, Co) f32               bn2 shift
       rest  : [wres (Ci,Co) bf16]? out_pad (1,Ho+2,Wo+2,Co) bf16, [res (1,tho,wo,Co) bf16]?
    """
    if has_res:
        wres_ref, out_pad_ref, res_ref = rest
    else:
        (out_pad_ref,) = rest

    j = pl.program_id(1)
    ci = x_ref.shape[-1]
    co = out_pad_ref.shape[-1]
    h0 = j * tho

    # out_pad is resident per image across the row-tile axis; zero its frame once.
    @pl.when(j == 0)
    def _():
        out_pad_ref[...] = jnp.zeros_like(out_pad_ref)

    def tap_patch(ki, kj):
        phase = (ki % stride) * stride + (kj % stride)
        di, dj = ki // stride, kj // stride
        p = x_ref[phase, pl.ds(h0 + di, tho), pl.ds(dj, wo), :]
        return p.reshape(tho * wo, ci)

    # Value-chained accumulation: no acc scratch, no per-tap VMEM round trips.
    acc = None
    for t, (ki, kj) in enumerate(_TAPS3):
        d = jnp.dot(tap_patch(ki, kj), w_ref[t], preferred_element_type=jnp.float32)
        acc = d if acc is None else acc + d

    out = jnp.maximum(acc + oshift_ref[...], 0.0)                  # bn2 shift + ReLU
    out_pad_ref[0, pl.ds(h0 + 1, tho), pl.ds(1, wo), :] = (
        out.reshape(tho, wo, co).astype(out_pad_ref.dtype))

    if has_res:
        # 1x1 / stride shortcut on relu(bn1(x)) == tap (1,1) of the same padded phases.
        r = jnp.dot(tap_patch(1, 1), wres_ref[...], preferred_element_type=jnp.float32)
        res_ref[...] = r.reshape(1, tho, wo, co).astype(res_ref.dtype)


def conv1_stage(xph, w1, oshift, w_res, *, stride, n, ho, wo):
    s2 = stride * stride
    _, hph, wph, ci = xph.shape
    t, _, co = w1.shape
    tho = _pick_row_tile(ho, wo)
    nh = ho // tho
    has_res = w_res is not None

    in_specs = [
        pl.BlockSpec((s2, hph, wph, ci), lambda i, j: (i, 0, 0, 0)),   # resident per image
        pl.BlockSpec((t, ci, co), lambda i, j: (0, 0, 0)),             # weights resident
        pl.BlockSpec((1, co), lambda i, j: (0, 0)),                    # bn2 shift
    ]
    args = [xph, w1, oshift.reshape(1, co).astype(jnp.float32)]
    out_shapes = [jax.ShapeDtypeStruct((n, ho + 2, wo + 2, co), jnp.bfloat16)]
    out_specs = [pl.BlockSpec((1, ho + 2, wo + 2, co), lambda i, j: (i, 0, 0, 0))]
    if has_res:
        in_specs.append(pl.BlockSpec((ci, co), lambda i, j: (0, 0)))
        args.append(w_res)
        out_shapes.append(jax.ShapeDtypeStruct((n, ho, wo, co), jnp.bfloat16))
        out_specs.append(pl.BlockSpec((1, tho, wo, co), lambda i, j: (i, j, 0, 0)))

    kern = functools.partial(_conv1_kernel, stride=stride, tho=tho, wo=wo, has_res=has_res)
    ntap = t + (1 if has_res else 0)
    in_bytes = sum(a.size * a.dtype.itemsize for a in args)
    out_bytes = sum(_size_bytes(s) for s in out_shapes)
    cost = pl.CostEstimate(flops=2 * n * ho * wo * ntap * ci * co,
                           transcendentals=0,
                           bytes_accessed=int(in_bytes + out_bytes))

    outs = pl.pallas_call(
        kern,
        out_shape=tuple(out_shapes),
        grid=(n, nh),
        in_specs=in_specs,
        out_specs=tuple(out_specs),
        compiler_params=pltpu.CompilerParams(
            # out_pad block is resident across the row-tile axis -> "arbitrary"
            dimension_semantics=("parallel", "arbitrary"),
            vmem_limit_bytes=_vmem_limit_bytes()),
        cost_estimate=cost,
    )(*args)
    if has_res:
        return outs[0], outs[1]
    return outs[0], None


# ----------------------------------------------------------------------------
# Kernel 2: conv2 (3x3 / 1) with fused residual add
# ----------------------------------------------------------------------------
def _conv2_kernel(x_ref, w_ref, res_ref, out_ref, *, tho, wo):
    """x_ref : (1, Ho+2, Wo+2, C) bf16  zero-framed conv1 output (resident per image)
       w_ref : (9, C, C) bf16
       res   : (1, tho, wo, C) bf16     residual tile (identity x or conv_res output)
    """
    j = pl.program_id(1)
    ci = x_ref.shape[-1]
    co = out_ref.shape[-1]
    h0 = j * tho

    acc = None
    for t, (ki, kj) in enumerate(_TAPS3):
        p = x_ref[0, pl.ds(h0 + ki, tho), pl.ds(kj, wo), :].reshape(tho * wo, ci)
        d = jnp.dot(p, w_ref[t], preferred_element_type=jnp.float32)
        acc = d if acc is None else acc + d

    out = acc + res_ref[...].reshape(tho * wo, co).astype(jnp.float32)
    out_ref[...] = out.reshape(out_ref.shape).astype(out_ref.dtype)


def conv2_stage(x_pad, w, res, *, n, ho, wo, out_dtype=jnp.float32):
    _, hp, wp, ci = x_pad.shape
    t, _, co = w.shape
    tho = _pick_row_tile(ho, wo)
    nh = ho // tho

    kern = functools.partial(_conv2_kernel, tho=tho, wo=wo)
    out_bytes = n * ho * wo * co * jnp.dtype(out_dtype).itemsize
    in_bytes = (x_pad.size * x_pad.dtype.itemsize + w.size * w.dtype.itemsize
                + res.size * res.dtype.itemsize)
    cost = pl.CostEstimate(flops=2 * n * ho * wo * t * ci * co,
                           transcendentals=0,
                           bytes_accessed=int(in_bytes + out_bytes))

    return pl.pallas_call(
        kern,
        out_shape=jax.ShapeDtypeStruct((n, ho, wo, co), out_dtype),
        grid=(n, nh),
        in_specs=[
            pl.BlockSpec((1, hp, wp, ci), lambda i, j: (i, 0, 0, 0)),  # resident per image
            pl.BlockSpec((t, ci, co), lambda i, j: (0, 0, 0)),         # weights resident
            pl.BlockSpec((1, tho, wo, co), lambda i, j: (i, j, 0, 0)),
        ],
        out_specs=pl.BlockSpec((1, tho, wo, co), lambda i, j: (i, j, 0, 0)),
        compiler_params=pltpu.CompilerParams(
            dimension_semantics=("parallel", "parallel"),
            vmem_limit_bytes=_vmem_limit_bytes()),
        cost_estimate=cost,
    )(x_pad, w, res)


# ----------------------------------------------------------------------------
# BasicBlock forward (Pallas)
# ----------------------------------------------------------------------------
def basic_block_forward(x_nchw, params, stride):
    n, cin, h, w = x_nchw.shape
    cout = params["w1"].shape[0]
    equal_in_out = (cin == cout)
    if equal_in_out:
        assert stride == 1, "identity skip requires stride == 1"

    ci_pad = _round_up(cin, LANE)
    co_pad = _round_up(cout, LANE)
    ho = (h - 1) // stride + 1          # 3x3 conv, pad = 1
    wo = (w - 1) // stride + 1

    x = jnp.transpose(x_nchw, (0, 2, 3, 1))                          # NHWC, f32

    # relu(bn1(x)) once, in bf16, fused by XLA into the pad / space-to-depth relayout the
    # kernel input needs anyway.  Zero spatial padding of the *activated* tensor exactly
    # matches PyTorch's zero padding of x_out.
    s1, b1 = _fold_bn(params["gamma1"], params["beta1"], params["mean1"], params["var1"])
    xact = jnp.maximum(x * s1 + b1, 0.0).astype(jnp.bfloat16)
    xact = _pad_last(xact, ci_pad)
    xp = jnp.pad(xact, ((0, 0), (1, 1), (1, 1), (0, 0)))
    xph = _build_phases(xp, stride)                                  # bf16 throughout

    # conv1 weights with bn2 scale folded into the columns; bn2 shift is the epilogue.
    s2, b2 = _fold_bn(params["gamma2"], params["beta2"], params["mean2"], params["var2"])
    w1 = _weights_to_taps(params["w1"], ci_pad, co_pad, _TAPS3, col_scale=s2)
    w_res = None
    if not equal_in_out:
        w_res = _weights_to_taps(params["w_res"], ci_pad, co_pad, ((0, 0),))[0]  # (Ci, Co)

    # Kernel 1: conv1 (+bn2+relu) and (optionally) conv_res, one fused pallas_call.
    out1_pad, res = conv1_stage(xph, w1, _pad_last(b2, co_pad), w_res,
                                stride=stride, n=n, ho=ho, wo=wo)
    if equal_in_out:
        res = _pad_last(x, co_pad).astype(jnp.bfloat16)              # identity skip (bf16)

    # Kernel 2: conv2 (droprate == 0 -> dropout is a no-op) with fused residual add.
    w2 = _weights_to_taps(params["w2"], co_pad, co_pad, _TAPS3)
    y = conv2_stage(out1_pad, w2, res, n=n, ho=ho, wo=wo, out_dtype=jnp.float32)

    return jnp.transpose(y[..., :cout], (0, 3, 1, 2))                # back to NCHW


# ----------------------------------------------------------------------------
# Pure-JAX reference (lax.conv) for correctness check
# ----------------------------------------------------------------------------
def _ref_forward(x, params, stride):
    def bn(t, g, b, m, v, eps=1e-5):
        g, b, m, v = (a[None, :, None, None] for a in (g, b, m, v))
        return (t - m) / jnp.sqrt(v + eps) * g + b

    def conv(t, wgt, s, pad):
        return jax.lax.conv_general_dilated(
            t, wgt, (s, s), ((pad, pad), (pad, pad)),
            dimension_numbers=("NCHW", "OIHW", "NCHW"))

    cin, cout = x.shape[1], params["w1"].shape[0]
    x_out = jax.nn.relu(bn(x, params["gamma1"], params["beta1"],
                           params["mean1"], params["var1"]))
    out = jax.nn.relu(bn(conv(x_out, params["w1"], stride, 1),
                         params["gamma2"], params["beta2"],
                         params["mean2"], params["var2"]))
    out = conv(out, params["w2"], 1, 1)
    if cin == cout:
        return x + out
    return conv(x_out, params["w_res"], stride, 0) + out


def make_params(key, in_planes, out_planes):
    ks = jax.random.split(key, 8)
    return {
        "w1": 0.1 * jax.random.normal(ks[0], (out_planes, in_planes, 3, 3), jnp.float32),
        "w2": 0.1 * jax.random.normal(ks[1], (out_planes, out_planes, 3, 3), jnp.float32),
        "w_res": 0.1 * jax.random.normal(ks[2], (out_planes, in_planes, 1, 1), jnp.float32),
        "gamma1": 1.0 + 0.1 * jax.random.normal(ks[3], (in_planes,), jnp.float32),
        "beta1": 0.1 * jax.random.normal(ks[4], (in_planes,), jnp.float32),
        "mean1": 0.1 * jax.random.normal(ks[5], (in_planes,), jnp.float32),
        "var1": 0.5 + jax.random.uniform(ks[6], (in_planes,), jnp.float32),
        "gamma2": 1.0 + 0.05 * jnp.arange(out_planes, dtype=jnp.float32),
        "beta2": 0.01 * jnp.arange(out_planes, dtype=jnp.float32),
        "mean2": 0.02 * jnp.arange(out_planes, dtype=jnp.float32),
        "var2": 1.0 + 0.1 * jnp.arange(out_planes, dtype=jnp.float32),
    }


if __name__ == "__main__":
    fwd = jax.jit(basic_block_forward, static_argnums=(2,))
    key = jax.random.PRNGKey(0)

    # config 1: in != out, stride 2 -> exercises the fused conv_res skip branch
    # config 2: in == out, stride 1 -> exercises the identity skip branch
    for (cin, cout, stride) in ((4, 8, 2), (8, 8, 1)):
        kx, kp, key = jax.random.split(key, 3)
        n, h, w = 2, 16, 16
        x = jax.random.normal(kx, (n, cin, h, w), jnp.float32)
        params = make_params(kp, cin, cout)

        y = jax.block_until_ready(fwd(x, params, stride))
        y_ref = jax.block_until_ready(_ref_forward(x, params, stride))
        assert y.shape == y_ref.shape == (n, cout, h // stride, w // stride)
        err = float(jnp.max(jnp.abs(y - y_ref)))
        scale = float(jnp.max(jnp.abs(y_ref)))
        # bf16 activations/weights/residual with f32 accumulation -> scaled tolerance.
        assert err <= 3e-2 * max(1.0, scale), f"mismatch: {err} (ref scale {scale})"

    print("KERNEL_OK")
</pallas_src>

<mosaic_0001>
module attributes {stable_mosaic.version = 11 : i64} {
  func.func @_conv1_kernel(%arg0: i32, %arg1: i32, %arg2: memref<4x9x9x128xbf16, #tpu.memory_space<vmem>>, %arg3: memref<9x128x128xbf16, #tpu.memory_space<vmem>>, %arg4: memref<1x128xf32, #tpu.memory_space<vmem>>, %arg5: memref<128x128xbf16, #tpu.memory_space<vmem>>, %arg6: memref<1x10x10x128xbf16, #tpu.memory_space<vmem>>, %arg7: memref<1x8x8x128xbf16, #tpu.memory_space<vmem>>) attributes {dimension_semantics = [#tpu.dimension_semantics<parallel>, #tpu.dimension_semantics<arbitrary>], iteration_bounds = array<i64: 2, 1>, scalar_prefetch = 0 : i64, scratch_operands = 0 : i64, tpu.core_type = #tpu.core_type<tc>, window_params = [{transform_indices = @transform_0, window_bounds = array<i64: 4, 9, 9, 128>}, {pipeline_mode = #tpu.pipeline_mode<synchronous>, transform_indices = @transform_1, window_bounds = array<i64: 9, 128, 128>}, {pipeline_mode = #tpu.pipeline_mode<synchronous>, transform_indices = @transform_2, window_bounds = array<i64: 1, 128>}, {pipeline_mode = #tpu.pipeline_mode<synchronous>, transform_indices = @transform_3, window_bounds = array<i64: 128, 128>}, {transform_indices = @transform_4, window_bounds = array<i64: 1, 10, 10, 128>}, {transform_indices = @transform_5, window_bounds = array<i64: 1, 8, 8, 128>}]} {
    %c8_i32 = arith.constant 8 : i32
    %0 = arith.muli %arg1, %c8_i32 : i32
    %c0_i32 = arith.constant 0 : i32
    %1 = arith.cmpi eq, %arg1, %c0_i32 : i32
    %2 = arith.extui %1 : i1 to i32
    %c0_i32_0 = arith.constant 0 : i32
    %3 = arith.cmpi ne, %2, %c0_i32_0 : i32
    scf.if %3 {
      %cst_80 = arith.constant 0.000000e+00 : bf16
      %106 = vector.broadcast %cst_80 : bf16 to vector<1x10x10x128xbf16>
      %c0_81 = arith.constant 0 : index
      %c0_82 = arith.constant 0 : index
      %c0_83 = arith.constant 0 : index
      %c0_84 = arith.constant 0 : index
      %107 = vector.load %arg6[%c0_81, %c0_82, %c0_83, %c0_84] : memref<1x10x10x128xbf16, #tpu.memory_space<vmem>>, vector<1x10x10x128xbf16>
      tpu.vector_store %arg6[%c0_81, %c0_82, %c0_83, %c0_84], %106 {strides = array<i32>} : memref<1x10x10x128xbf16, #tpu.memory_space<vmem>>, vector<1x10x10x128xbf16>,
    } else {
    }
    %c0_i32_1 = arith.constant 0 : i32
    %4 = arith.addi %0, %c0_i32_1 : i32
    %c0 = arith.constant 0 : index
    %5 = arith.index_cast %4 : i32 to index
    %c0_2 = arith.constant 0 : index
    %c0_3 = arith.constant 0 : index
    %6 = vector.load %arg2[%c0, %5, %c0_2, %c0_3] : memref<4x9x9x128xbf16, #tpu.memory_space<vmem>>, vector<1x8x8x128xbf16>
    %7 = vector.shape_cast %6 : vector<1x8x8x128xbf16> to vector<8x8x128xbf16>
    %8 = vector.shape_cast %7 : vector<8x8x128xbf16> to vector<64x128xbf16>
    %c0_4 = arith.constant 0 : index
    %c0_5 = arith.constant 0 : index
    %c0_6 = arith.constant 0 : index
    %9 = vector.load %arg3[%c0_4, %c0_5, %c0_6] : memref<9x128x128xbf16, #tpu.memory_space<vmem>>, vector<1x128x128xbf16>
    %10 = vector.shape_cast %9 : vector<1x128x128xbf16> to vector<128x128xbf16>
    %cst = arith.constant dense<0.000000e+00> : vector<64x128xf32>
    %11 = tpu.matmul %8, %10, %cst {dimension_numbers = #tpu.dot_dimension_numbers<[1], [0], [0], [1], [0, 0, 1, 1], [], []>} : vector<64x128xbf16>, vector<128x128xbf16>, vector<64x128xf32> -> vector<64x128xf32>
    %c0_i32_7 = arith.constant 0 : i32
    %12 = arith.addi %0, %c0_i32_7 : i32
    %c1 = arith.constant 1 : index
    %13 = arith.index_cast %12 : i32 to index
    %c0_8 = arith.constant 0 : index
    %c0_9 = arith.constant 0 : index
    %14 = vector.load %arg2[%c1, %13, %c0_8, %c0_9] : memref<4x9x9x128xbf16, #tpu.memory_space<vmem>>, vector<1x8x8x128xbf16>
    %15 = vector.shape_cast %14 : vector<1x8x8x128xbf16> to vector<8x8x128xbf16>
    %16 = vector.shape_cast %15 : vector<8x8x128xbf16> to vector<64x128xbf16>
    %c1_10 = arith.constant 1 : index
    %c0_11 = arith.constant 0 : index
    %c0_12 = arith.constant 0 : index
    %17 = vector.load %arg3[%c1_10, %c0_11, %c0_12] : memref<9x128x128xbf16, #tpu.memory_space<vmem>>, vector<1x128x128xbf16>
    %18 = vector.shape_cast %17 : vector<1x128x128xbf16> to vector<128x128xbf16>
    %cst_13 = arith.constant dense<0.000000e+00> : vector<64x128xf32>
    %19 = tpu.matmul %16, %18, %cst_13 {dimension_numbers = #tpu.dot_dimension_numbers<[1], [0], [0], [1], [0, 0, 1, 1], [], []>} : vector<64x128xbf16>, vector<128x128xbf16>, vector<64x128xf32> -> vector<64x128xf32>
    %20 = arith.addf %11, %19 : vector<64x128xf32>
    %c0_i32_14 = arith.constant 0 : i32
    %21 = arith.addi %0, %c0_i32_14 : i32
    %c0_15 = arith.constant 0 : index
    %22 = arith.index_cast %21 : i32 to index
    %c1_16 = arith.constant 1 : index
    %c0_17 = arith.constant 0 : index
    %23 = vector.load %arg2[%c0_15, %22, %c1_16, %c0_17] : memref<4x9x9x128xbf16, #tpu.memory_space<vmem>>, vector<1x8x8x128xbf16>
    %24 = vector.shape_cast %23 : vector<1x8x8x128xbf16> to vector<8x8x128xbf16>
    %25 = vector.shape_cast %24 : vector<8x8x128xbf16> to vector<64x128xbf16>
    %c2 = arith.constant 2 : index
    %c0_18 = arith.constant 0 : index
    %c0_19 = arith.constant 0 : index
    %26 = vector.load %arg3[%c2, %c0_18, %c0_19] : memref<9x128x128xbf16, #tpu.memory_space<vmem>>, vector<1x128x128xbf16>
    %27 = vector.shape_cast %26 : vector<1x128x128xbf16> to vector<128x128xbf16>
    %cst_20 = arith.constant dense<0.000000e+00> : vector<64x128xf32>
    %28 = tpu.matmul %25, %27, %cst_20 {dimension_numbers = #tpu.dot_dimension_numbers<[1], [0], [0], [1], [0, 0, 1, 1], [], []>} : vector<64x128xbf16>, vector<128x128xbf16>, vector<64x128xf32> -> vector<64x128xf32>
    %29 = arith.addf %20, %28 : vector<64x128xf32>
    %c0_i32_21 = arith.constant 0 : i32
    %30 = arith.addi %0, %c0_i32_21 : i32
    %c2_22 = arith.constant 2 : index
    %31 = arith.index_cast %30 : i32 to index
    %c0_23 = arith.constant 0 : index
    %c0_24 = arith.constant 0 : index
    %32 = vector.load %arg2[%c2_22, %31, %c0_23, %c0_24] : memref<4x9x9x128xbf16, #tpu.memory_space<vmem>>, vector<1x8x8x128xbf16>
    %33 = vector.shape_cast %32 : vector<1x8x8x128xbf16> to vector<8x8x128xbf16>
    %34 = vector.shape_cast %33 : vector<8x8x128xbf16> to vector<64x128xbf16>
    %c3 = arith.constant 3 : index
    %c0_25 = arith.constant 0 : index
    %c0_26 = arith.constant 0 : index
    %35 = vector.load %arg3[%c3, %c0_25, %c0_26] : memref<9x128x128xbf16, #tpu.memory_space<vmem>>, vector<1x128x128xbf16>
    %36 = vector.shape_cast %35 : vector<1x128x128xbf16> to vector<128x128xbf16>
    %cst_27 = arith.constant dense<0.000000e+00> : vector<64x128xf32>
    %37 = tpu.matmul %34, %36, %cst_27 {dimension_numbers = #tpu.dot_dimension_numbers<[1], [0], [0], [1], [0, 0, 1, 1], [], []>} : vector<64x128xbf16>, vector<128x128xbf16>, vector<64x128xf32> -> vector<64x128xf32>
    %38 = arith.addf %29, %37 : vector<64x128xf32>
    %c0_i32_28 = arith.constant 0 : i32
    %39 = arith.addi %0, %c0_i32_28 : i32
    %c3_29 = arith.constant 3 : index
    %40 = arith.index_cast %39 : i32 to index
    %c0_30 = arith.constant 0 : index
    %c0_31 = arith.constant 0 : index
    %41 = vector.load %arg2[%c3_29, %40, %c0_30, %c0_31] : memref<4x9x9x128xbf16, #tpu.memory_space<vmem>>, vector<1x8x8x128xbf16>
    %42 = vector.shape_cast %41 : vector<1x8x8x128xbf16> to vector<8x8x128xbf16>
    %43 = vector.shape_cast %42 : vector<8x8x128xbf16> to vector<64x128xbf16>
    %c4 = arith.constant 4 : index
    %c0_32 = arith.constant 0 : index
    %c0_33 = arith.constant 0 : index
    %44 = vector.load %arg3[%c4, %c0_32, %c0_33] : memref<9x128x128xbf16, #tpu.memory_space<vmem>>, vector<1x128x128xbf16>
    %45 = vector.shape_cast %44 : vector<1x128x128xbf16> to vector<128x128xbf16>
    %cst_34 = arith.constant dense<0.000000e+00> : vector<64x128xf32>
    %46 = tpu.matmul %43, %45, %cst_34 {dimension_numbers = #tpu.dot_dimension_numbers<[1], [0], [0], [1], [0, 0, 1, 1], [], []>} : vector<64x128xbf16>, vector<128x128xbf16>, vector<64x128xf32> -> vector<64x128xf32>
    %47 = arith.addf %38, %46 : vector<64x128xf32>
    %c0_i32_35 = arith.constant 0 : i32
    %48 = arith.addi %0, %c0_i32_35 : i32
    %c2_36 = arith.constant 2 : index
    %49 = arith.index_cast %48 : i32 to index
    %c1_37 = arith.constant 1 : index
    %c0_38 = arith.constant 0 : index
    %50 = vector.load %arg2[%c2_36, %49, %c1_37, %c0_38] : memref<4x9x9x128xbf16, #tpu.memory_space<vmem>>, vector<1x8x8x128xbf16>
    %51 = vector.shape_cast %50 : vector<1x8x8x128xbf16> to vector<8x8x128xbf16>
    %52 = vector.shape_cast %51 : vector<8x8x128xbf16> to vector<64x128xbf16>
    %c5 = arith.constant 5 : index
    %c0_39 = arith.constant 0 : index
    %c0_40 = arith.constant 0 : index
    %53 = vector.load %arg3[%c5, %c0_39, %c0_40] : memref<9x128x128xbf16, #tpu.memory_space<vmem>>, vector<1x128x128xbf16>
    %54 = vector.shape_cast %53 : vector<1x128x128xbf16> to vector<128x128xbf16>
    %cst_41 = arith.constant dense<0.000000e+00> : vector<64x128xf32>
    %55 = tpu.matmul %52, %54, %cst_41 {dimension_numbers = #tpu.dot_dimension_numbers<[1], [0], [0], [1], [0, 0, 1, 1], [], []>} : vector<64x128xbf16>, vector<128x128xbf16>, vector<64x128xf32> -> vector<64x128xf32>
    %56 = arith.addf %47, %55 : vector<64x128xf32>
    %c1_i32 = arith.constant 1 : i32
    %57 = arith.addi %0, %c1_i32 : i32
    %c0_42 = arith.constant 0 : index
    %58 = arith.index_cast %57 : i32 to index
    %c0_43 = arith.constant 0 : index
    %c0_44 = arith.constant 0 : index
    %59 = vector.load %arg2[%c0_42, %58, %c0_43, %c0_44] : memref<4x9x9x128xbf16, #tpu.memory_space<vmem>>, vector<1x8x8x128xbf16>
    %60 = vector.shape_cast %59 : vector<1x8x8x128xbf16> to vector<8x8x128xbf16>
    %61 = vector.shape_cast %60 : vector<8x8x128xbf16> to vector<64x128xbf16>
    %c6 = arith.constant 6 : index
    %c0_45 = arith.constant 0 : index
    %c0_46 = arith.constant 0 : index
    %62 = vector.load %arg3[%c6, %c0_45, %c0_46] : memref<9x128x128xbf16, #tpu.memory_space<vmem>>, vector<1x128x128xbf16>
    %63 = vector.shape_cast %62 : vector<1x128x128xbf16> to vector<128x128xbf16>
    %cst_47 = arith.constant dense<0.000000e+00> : vector<64x128xf32>
    %64 = tpu.matmul %61, %63, %cst_47 {dimension_numbers = #tpu.dot_dimension_numbers<[1], [0], [0], [1], [0, 0, 1, 1], [], []>} : vector<64x128xbf16>, vector<128x128xbf16>, vector<64x128xf32> -> vector<64x128xf32>
    %65 = arith.addf %56, %64 : vector<64x128xf32>
    %c1_i32_48 = arith.constant 1 : i32
    %66 = arith.addi %0, %c1_i32_48 : i32
    %c1_49 = arith.constant 1 : index
    %67 = arith.index_cast %66 : i32 to index
    %c0_50 = arith.constant 0 : index
    %c0_51 = arith.constant 0 : index
    %68 = vector.load %arg2[%c1_49, %67, %c0_50, %c0_51] : memref<4x9x9x128xbf16, #tpu.memory_space<vmem>>, vector<1x8x8x128xbf16>
    %69 = vector.shape_cast %68 : vector<1x8x8x128xbf16> to vector<8x8x128xbf16>
    %70 = vector.shape_cast %69 : vector<8x8x128xbf16> to vector<64x128xbf16>
    %c7 = arith.constant 7 : index
    %c0_52 = arith.constant 0 : index
    %c0_53 = arith.constant 0 : index
    %71 = vector.load %arg3[%c7, %c0_52, %c0_53] : memref<9x128x128xbf16, #tpu.memory_space<vmem>>, vector<1x128x128xbf16>
    %72 = vector.shape_cast %71 : vector<1x128x128xbf16> to vector<128x128xbf16>
    %cst_54 = arith.constant dense<0.000000e+00> : vector<64x128xf32>
    %73 = tpu.matmul %70, %72, %cst_54 {dimension_numbers = #tpu.dot_dimension_numbers<[1], [0], [0], [1], [0, 0, 1, 1], [], []>} : vector<64x128xbf16>, vector<128x128xbf16>, vector<64x128xf32> -> vector<64x128xf32>
    %74 = arith.addf %65, %73 : vector<64x128xf32>
    %c1_i32_55 = arith.constant 1 : i32
    %75 = arith.addi %0, %c1_i32_55 : i32
    %c0_56 = arith.constant 0 : index
    %76 = arith.index_cast %75 : i32 to index
    %c1_57 = arith.constant 1 : index
    %c0_58 = arith.constant 0 : index
    %77 = vector.load %arg2[%c0_56, %76, %c1_57, %c0_58] : memref<4x9x9x128xbf16, #tpu.memory_space<vmem>>, vector<1x8x8x128xbf16>
    %78 = vector.shape_cast %77 : vector<1x8x8x128xbf16> to vector<8x8x128xbf16>
    %79 = vector.shape_cast %78 : vector<8x8x128xbf16> to vector<64x128xbf16>
    %c8 = arith.constant 8 : index
    %c0_59 = arith.constant 0 : index
    %c0_60 = arith.constant 0 : index
    %80 = vector.load %arg3[%c8, %c0_59, %c0_60] : memref<9x128x128xbf16, #tpu.memory_space<vmem>>, vector<1x128x128xbf16>
    %81 = vector.shape_cast %80 : vector<1x128x128xbf16> to vector<128x128xbf16>
    %cst_61 = arith.constant dense<0.000000e+00> : vector<64x128xf32>
    %82 = tpu.matmul %79, %81, %cst_61 {dimension_numbers = #tpu.dot_dimension_numbers<[1], [0], [0], [1], [0, 0, 1, 1], [], []>} : vector<64x128xbf16>, vector<128x128xbf16>, vector<64x128xf32> -> vector<64x128xf32>
    %83 = arith.addf %74, %82 : vector<64x128xf32>
    %c0_62 = arith.constant 0 : index
    %c0_63 = arith.constant 0 : index
    %84 = vector.load %arg4[%c0_62, %c0_63] : memref<1x128xf32, #tpu.memory_space<vmem>>, vector<1x128xf32>
    %85 = vector.broadcast %84 : vector<1x128xf32> to vector<64x128xf32>
    %86 = arith.addf %83, %85 : vector<64x128xf32>
    %cst_64 = arith.constant 0.000000e+00 : f32
    %87 = vector.broadcast %cst_64 : f32 to vector<64x128xf32>
    %88 = arith.maximumf %86, %87 : vector<64x128xf32>
    %89 = vector.shape_cast %88 : vector<64x128xf32> to vector<8x8x128xf32>
    %90 = arith.truncf %89 : vector<8x8x128xf32> to vector<8x8x128xbf16>
    %c1_i32_65 = arith.constant 1 : i32
    %91 = arith.addi %0, %c1_i32_65 : i32
    %c0_66 = arith.constant 0 : index
    %92 = arith.index_cast %91 : i32 to index
    %c1_67 = arith.constant 1 : index
    %c0_68 = arith.constant 0 : index
    %93 = vector.load %arg6[%c0_66, %92, %c1_67, %c0_68] : memref<1x10x10x128xbf16, #tpu.memory_space<vmem>>, vector<1x8x8x128xbf16>
    %94 = vector.shape_cast %93 : vector<1x8x8x128xbf16> to vector<8x8x128xbf16>
    %95 = vector.shape_cast %90 : vector<8x8x128xbf16> to vector<1x8x8x128xbf16>
    tpu.vector_store %arg6[%c0_66, %92, %c1_67, %c0_68], %95 {strides = array<i32>} : memref<1x10x10x128xbf16, #tpu.memory_space<vmem>>, vector<1x8x8x128xbf16>,
    %c0_i32_69 = arith.constant 0 : i32
    %96 = arith.addi %0, %c0_i32_69 : i32
    %c3_70 = arith.constant 3 : index
    %97 = arith.index_cast %96 : i32 to index
    %c0_71 = arith.constant 0 : index
    %c0_72 = arith.constant 0 : index
    %98 = vector.load %arg2[%c3_70, %97, %c0_71, %c0_72] : memref<4x9x9x128xbf16, #tpu.memory_space<vmem>>, vector<1x8x8x128xbf16>
    %99 = vector.shape_cast %98 : vector<1x8x8x128xbf16> to vector<8x8x128xbf16>
    %100 = vector.shape_cast %99 : vector<8x8x128xbf16> to vector<64x128xbf16>
    %c0_73 = arith.constant 0 : index
    %c0_74 = arith.constant 0 : index
    %101 = vector.load %arg5[%c0_73, %c0_74] : memref<128x128xbf16, #tpu.memory_space<vmem>>, vector<128x128xbf16>
    %cst_75 = arith.constant dense<0.000000e+00> : vector<64x128xf32>
    %102 = tpu.matmul %100, %101, %cst_75 {dimension_numbers = #tpu.dot_dimension_numbers<[1], [0], [0], [1], [0, 0, 1, 1], [], []>} : vector<64x128xbf16>, vector<128x128xbf16>, vector<64x128xf32> -> vector<64x128xf32>
    %103 = vector.shape_cast %102 : vector<64x128xf32> to vector<1x8x8x128xf32>
    %104 = arith.truncf %103 : vector<1x8x8x128xf32> to vector<1x8x8x128xbf16>
    %c0_76 = arith.constant 0 : index
    %c0_77 = arith.constant 0 : index
    %c0_78 = arith.constant 0 : index
    %c0_79 = arith.constant 0 : index
    %105 = vector.load %arg7[%c0_76, %c0_77, %c0_78, %c0_79] : memref<1x8x8x128xbf16, #tpu.memory_space<vmem>>, vector<1x8x8x128xbf16>
    tpu.vector_store %arg7[%c0_76, %c0_77, %c0_78, %c0_79], %104 {strides = array<i32>} : memref<1x8x8x128xbf16, #tpu.memory_space<vmem>>, vector<1x8x8x128xbf16>,
    return
  }
  func.func @transform_0(%arg0: i32, %arg1: i32) -> (i32, i32, i32, i32) {
    %c0_i32 = arith.constant 0 : i32
    %c0_i32_0 = arith.constant 0 : i32
    %c0_i32_1 = arith.constant 0 : i32
    %c0_i32_2 = arith.constant 0 : i32
    return %arg0, %c0_i32, %c0_i32_0, %c0_i32_1 : i32, i32, i32, i32
  }
  func.func @transform_1(%arg0: i32, %arg1: i32) -> (i32, i32, i32) {
    %c0_i32 = arith.constant 0 : i32
    %c0_i32_0 = arith.constant 0 : i32
    %c0_i32_1 = arith.constant 0 : i32
    %c0_i32_2 = arith.constant 0 : i32
    return %c0_i32, %c0_i32_0, %c0_i32_1 : i32, i32, i32
  }
  func.func @transform_2(%arg0: i32, %arg1: i32) -> (i32, i32) {
    %c0_i32 = arith.constant 0 : i32
    %c0_i32_0 = arith.constant 0 : i32
    %c0_i32_1 = arith.constant 0 : i32
    return %c0_i32, %c0_i32_0 : i32, i32
  }
  func.func @transform_3(%arg0: i32, %arg1: i32) -> (i32, i32) {
    %c0_i32 = arith.constant 0 : i32
    %c0_i32_0 = arith.constant 0 : i32
    %c0_i32_1 = arith.constant 0 : i32
    return %c0_i32, %c0_i32_0 : i32, i32
  }
  func.func @transform_4(%arg0: i32, %arg1: i32) -> (i32, i32, i32, i32) {
    %c0_i32 = arith.constant 0 : i32
    %c0_i32_0 = arith.constant 0 : i32
    %c0_i32_1 = arith.constant 0 : i32
    %c0_i32_2 = arith.constant 0 : i32
    return %arg0, %c0_i32, %c0_i32_0, %c0_i32_1 : i32, i32, i32, i32
  }
  func.func @transform_5(%arg0: i32, %arg1: i32) -> (i32, i32, i32, i32) {
    %c0_i32 = arith.constant 0 : i32
    %c0_i32_0 = arith.constant 0 : i32
    %c0_i32_1 = arith.constant 0 : i32
    return %arg0, %arg1, %c0_i32, %c0_i32_0 : i32, i32, i32, i32
  }
}

module attributes {stable_mosaic.version = 11 : i64} {
  func.func @_conv2_kernel(%arg0: i32, %arg1: i32, %arg2: memref<1x10x10x128xbf16, #tpu.memory_space<vmem>>, %arg3: memref<9x128x128xbf16, #tpu.memory_space<vmem>>, %arg4: memref<1x8x8x128xbf16, #tpu.memory_space<vmem>>, %arg5: memref<1x8x8x128xf32, #tpu.memory_space<vmem>>) attributes {dimension_semantics = [#tpu.dimension_semantics<parallel>, #tpu.dimension_semantics<parallel>], iteration_bounds = array<i64: 2, 1>, scalar_prefetch = 0 : i64, scratch_operands = 0 : i64, tpu.core_type = #tpu.core_type<tc>, window_params = [{transform_indices = @transform_0, window_bounds = array<i64: 1, 10, 10, 128>}, {pipeline_mode = #tpu.pipeline_mode<synchronous>, transform_indices = @transform_1, window_bounds = array<i64: 9, 128, 128>}, {transform_indices = @transform_2, window_bounds = array<i64: 1, 8, 8, 128>}, {transform_indices = @transform_3, window_bounds = array<i64: 1, 8, 8, 128>}]} {
    %c8_i32 = arith.constant 8 : i32
    %0 = arith.muli %arg1, %c8_i32 : i32
    %c0_i32 = arith.constant 0 : i32
    %1 = arith.addi %0, %c0_i32 : i32
    %c0 = arith.constant 0 : index
    %2 = arith.index_cast %1 : i32 to index
    %c0_0 = arith.constant 0 : index
    %c0_1 = arith.constant 0 : index
    %3 = vector.load %arg2[%c0, %2, %c0_0, %c0_1] : memref<1x10x10x128xbf16, #tpu.memory_space<vmem>>, vector<1x8x8x128xbf16>
    %4 = vector.shape_cast %3 : vector<1x8x8x128xbf16> to vector<8x8x128xbf16>
    %5 = vector.shape_cast %4 : vector<8x8x128xbf16> to vector<64x128xbf16>
    %c0_2 = arith.constant 0 : index
    %c0_3 = arith.constant 0 : index
    %c0_4 = arith.constant 0 : index
    %6 = vector.load %arg3[%c0_2, %c0_3, %c0_4] : memref<9x128x128xbf16, #tpu.memory_space<vmem>>, vector<1x128x128xbf16>
    %7 = vector.shape_cast %6 : vector<1x128x128xbf16> to vector<128x128xbf16>
    %cst = arith.constant dense<0.000000e+00> : vector<64x128xf32>
    %8 = tpu.matmul %5, %7, %cst {dimension_numbers = #tpu.dot_dimension_numbers<[1], [0], [0], [1], [0, 0, 1, 1], [], []>} : vector<64x128xbf16>, vector<128x128xbf16>, vector<64x128xf32> -> vector<64x128xf32>
    %c0_i32_5 = arith.constant 0 : i32
    %9 = arith.addi %0, %c0_i32_5 : i32
    %c0_6 = arith.constant 0 : index
    %10 = arith.index_cast %9 : i32 to index
    %c1 = arith.constant 1 : index
    %c0_7 = arith.constant 0 : index
    %11 = vector.load %arg2[%c0_6, %10, %c1, %c0_7] : memref<1x10x10x128xbf16, #tpu.memory_space<vmem>>, vector<1x8x8x128xbf16>
    %12 = vector.shape_cast %11 : vector<1x8x8x128xbf16> to vector<8x8x128xbf16>
    %13 = vector.shape_cast %12 : vector<8x8x128xbf16> to vector<64x128xbf16>
    %c1_8 = arith.constant 1 : index
    %c0_9 = arith.constant 0 : index
    %c0_10 = arith.constant 0 : index
    %14 = vector.load %arg3[%c1_8, %c0_9, %c0_10] : memref<9x128x128xbf16, #tpu.memory_space<vmem>>, vector<1x128x128xbf16>
    %15 = vector.shape_cast %14 : vector<1x128x128xbf16> to vector<128x128xbf16>
    %cst_11 = arith.constant dense<0.000000e+00> : vector<64x128xf32>
    %16 = tpu.matmul %13, %15, %cst_11 {dimension_numbers = #tpu.dot_dimension_numbers<[1], [0], [0], [1], [0, 0, 1, 1], [], []>} : vector<64x128xbf16>, vector<128x128xbf16>, vector<64x128xf32> -> vector<64x128xf32>
    %17 = arith.addf %8, %16 : vector<64x128xf32>
    %c0_i32_12 = arith.constant 0 : i32
    %18 = arith.addi %0, %c0_i32_12 : i32
    %c0_13 = arith.constant 0 : index
    %19 = arith.index_cast %18 : i32 to index
    %c2 = arith.constant 2 : index
    %c0_14 = arith.constant 0 : index
    %20 = vector.load %arg2[%c0_13, %19, %c2, %c0_14] : memref<1x10x10x128xbf16, #tpu.memory_space<vmem>>, vector<1x8x8x128xbf16>
    %21 = vector.shape_cast %20 : vector<1x8x8x128xbf16> to vector<8x8x128xbf16>
    %22 = vector.shape_cast %21 : vector<8x8x128xbf16> to vector<64x128xbf16>
    %c2_15 = arith.constant 2 : index
    %c0_16 = arith.constant 0 : index
    %c0_17 = arith.constant 0 : index
    %23 = vector.load %arg3[%c2_15, %c0_16, %c0_17] : memref<9x128x128xbf16, #tpu.memory_space<vmem>>, vector<1x128x128xbf16>
    %24 = vector.shape_cast %23 : vector<1x128x128xbf16> to vector<128x128xbf16>
    %cst_18 = arith.constant dense<0.000000e+00> : vector<64x128xf32>
    %25 = tpu.matmul %22, %24, %cst_18 {dimension_numbers = #tpu.dot_dimension_numbers<[1], [0], [0], [1], [0, 0, 1, 1], [], []>} : vector<64x128xbf16>, vector<128x128xbf16>, vector<64x128xf32> -> vector<64x128xf32>
    %26 = arith.addf %17, %25 : vector<64x128xf32>
    %c1_i32 = arith.constant 1 : i32
    %27 = arith.addi %0, %c1_i32 : i32
    %c0_19 = arith.constant 0 : index
    %28 = arith.index_cast %27 : i32 to index
    %c0_20 = arith.constant 0 : index
    %c0_21 = arith.constant 0 : index
    %29 = vector.load %arg2[%c0_19, %28, %c0_20, %c0_21] : memref<1x10x10x128xbf16, #tpu.memory_space<vmem>>, vector<1x8x8x128xbf16>
    %30 = vector.shape_cast %29 : vector<1x8x8x128xbf16> to vector<8x8x128xbf16>
    %31 = vector.shape_cast %30 : vector<8x8x128xbf16> to vector<64x128xbf16>
    %c3 = arith.constant 3 : index
    %c0_22 = arith.constant 0 : index
    %c0_23 = arith.constant 0 : index
    %32 = vector.load %arg3[%c3, %c0_22, %c0_23] : memref<9x128x128xbf16, #tpu.memory_space<vmem>>, vector<1x128x128xbf16>
    %33 = vector.shape_cast %32 : vector<1x128x128xbf16> to vector<128x128xbf16>
    %cst_24 = arith.constant dense<0.000000e+00> : vector<64x128xf32>
    %34 = tpu.matmul %31, %33, %cst_24 {dimension_numbers = #tpu.dot_dimension_numbers<[1], [0], [0], [1], [0, 0, 1, 1], [], []>} : vector<64x128xbf16>, vector<128x128xbf16>, vector<64x128xf32> -> vector<64x128xf32>
    %35 = arith.addf %26, %34 : vector<64x128xf32>
    %c1_i32_25 = arith.constant 1 : i32
    %36 = arith.addi %0, %c1_i32_25 : i32
    %c0_26 = arith.constant 0 : index
    %37 = arith.index_cast %36 : i32 to index
    %c1_27 = arith.constant 1 : index
    %c0_28 = arith.constant 0 : index
    %38 = vector.load %arg2[%c0_26, %37, %c1_27, %c0_28] : memref<1x10x10x128xbf16, #tpu.memory_space<vmem>>, vector<1x8x8x128xbf16>
    %39 = vector.shape_cast %38 : vector<1x8x8x128xbf16> to vector<8x8x128xbf16>
    %40 = vector.shape_cast %39 : vector<8x8x128xbf16> to vector<64x128xbf16>
    %c4 = arith.constant 4 : index
    %c0_29 = arith.constant 0 : index
    %c0_30 = arith.constant 0 : index
    %41 = vector.load %arg3[%c4, %c0_29, %c0_30] : memref<9x128x128xbf16, #tpu.memory_space<vmem>>, vector<1x128x128xbf16>
    %42 = vector.shape_cast %41 : vector<1x128x128xbf16> to vector<128x128xbf16>
    %cst_31 = arith.constant dense<0.000000e+00> : vector<64x128xf32>
    %43 = tpu.matmul %40, %42, %cst_31 {dimension_numbers = #tpu.dot_dimension_numbers<[1], [0], [0], [1], [0, 0, 1, 1], [], []>} : vector<64x128xbf16>, vector<128x128xbf16>, vector<64x128xf32> -> vector<64x128xf32>
    %44 = arith.addf %35, %43 : vector<64x128xf32>
    %c1_i32_32 = arith.constant 1 : i32
    %45 = arith.addi %0, %c1_i32_32 : i32
    %c0_33 = arith.constant 0 : index
    %46 = arith.index_cast %45 : i32 to index
    %c2_34 = arith.constant 2 : index
    %c0_35 = arith.constant 0 : index
    %47 = vector.load %arg2[%c0_33, %46, %c2_34, %c0_35] : memref<1x10x10x128xbf16, #tpu.memory_space<vmem>>, vector<1x8x8x128xbf16>
    %48 = vector.shape_cast %47 : vector<1x8x8x128xbf16> to vector<8x8x128xbf16>
    %49 = vector.shape_cast %48 : vector<8x8x128xbf16> to vector<64x128xbf16>
    %c5 = arith.constant 5 : index
    %c0_36 = arith.constant 0 : index
    %c0_37 = arith.constant 0 : index
    %50 = vector.load %arg3[%c5, %c0_36, %c0_37] : memref<9x128x128xbf16, #tpu.memory_space<vmem>>, vector<1x128x128xbf16>
    %51 = vector.shape_cast %50 : vector<1x128x128xbf16> to vector<128x128xbf16>
    %cst_38 = arith.constant dense<0.000000e+00> : vector<64x128xf32>
    %52 = tpu.matmul %49, %51, %cst_38 {dimension_numbers = #tpu.dot_dimension_numbers<[1], [0], [0], [1], [0, 0, 1, 1], [], []>} : vector<64x128xbf16>, vector<128x128xbf16>, vector<64x128xf32> -> vector<64x128xf32>
    %53 = arith.addf %44, %52 : vector<64x128xf32>
    %c2_i32 = arith.constant 2 : i32
    %54 = arith.addi %0, %c2_i32 : i32
    %c0_39 = arith.constant 0 : index
    %55 = arith.index_cast %54 : i32 to index
    %c0_40 = arith.constant 0 : index
    %c0_41 = arith.constant 0 : index
    %56 = vector.load %arg2[%c0_39, %55, %c0_40, %c0_41] : memref<1x10x10x128xbf16, #tpu.memory_space<vmem>>, vector<1x8x8x128xbf16>
    %57 = vector.shape_cast %56 : vector<1x8x8x128xbf16> to vector<8x8x128xbf16>
    %58 = vector.shape_cast %57 : vector<8x8x128xbf16> to vector<64x128xbf16>
    %c6 = arith.constant 6 : index
    %c0_42 = arith.constant 0 : index
    %c0_43 = arith.constant 0 : index
    %59 = vector.load %arg3[%c6, %c0_42, %c0_43] : memref<9x128x128xbf16, #tpu.memory_space<vmem>>, vector<1x128x128xbf16>
    %60 = vector.shape_cast %59 : vector<1x128x128xbf16> to vector<128x128xbf16>
    %cst_44 = arith.constant dense<0.000000e+00> : vector<64x128xf32>
    %61 = tpu.matmul %58, %60, %cst_44 {dimension_numbers = #tpu.dot_dimension_numbers<[1], [0], [0], [1], [0, 0, 1, 1], [], []>} : vector<64x128xbf16>, vector<128x128xbf16>, vector<64x128xf32> -> vector<64x128xf32>
    %62 = arith.addf %53, %61 : vector<64x128xf32>
    %c2_i32_45 = arith.constant 2 : i32
    %63 = arith.addi %0, %c2_i32_45 : i32
    %c0_46 = arith.constant 0 : index
    %64 = arith.index_cast %63 : i32 to index
    %c1_47 = arith.constant 1 : index
    %c0_48 = arith.constant 0 : index
    %65 = vector.load %arg2[%c0_46, %64, %c1_47, %c0_48] : memref<1x10x10x128xbf16, #tpu.memory_space<vmem>>, vector<1x8x8x128xbf16>
    %66 = vector.shape_cast %65 : vector<1x8x8x128xbf16> to vector<8x8x128xbf16>
    %67 = vector.shape_cast %66 : vector<8x8x128xbf16> to vector<64x128xbf16>
    %c7 = arith.constant 7 : index
    %c0_49 = arith.constant 0 : index
    %c0_50 = arith.constant 0 : index
    %68 = vector.load %arg3[%c7, %c0_49, %c0_50] : memref<9x128x128xbf16, #tpu.memory_space<vmem>>, vector<1x128x128xbf16>
    %69 = vector.shape_cast %68 : vector<1x128x128xbf16> to vector<128x128xbf16>
    %cst_51 = arith.constant dense<0.000000e+00> : vector<64x128xf32>
    %70 = tpu.matmul %67, %69, %cst_51 {dimension_numbers = #tpu.dot_dimension_numbers<[1], [0], [0], [1], [0, 0, 1, 1], [], []>} : vector<64x128xbf16>, vector<128x128xbf16>, vector<64x128xf32> -> vector<64x128xf32>
    %71 = arith.addf %62, %70 : vector<64x128xf32>
    %c2_i32_52 = arith.constant 2 : i32
    %72 = arith.addi %0, %c2_i32_52 : i32
    %c0_53 = arith.constant 0 : index
    %73 = arith.index_cast %72 : i32 to index
    %c2_54 = arith.constant 2 : index
    %c0_55 = arith.constant 0 : index
    %74 = vector.load %arg2[%c0_53, %73, %c2_54, %c0_55] : memref<1x10x10x128xbf16, #tpu.memory_space<vmem>>, vector<1x8x8x128xbf16>
    %75 = vector.shape_cast %74 : vector<1x8x8x128xbf16> to vector<8x8x128xbf16>
    %76 = vector.shape_cast %75 : vector<8x8x128xbf16> to vector<64x128xbf16>
    %c8 = arith.constant 8 : index
    %c0_56 = arith.constant 0 : index
    %c0_57 = arith.constant 0 : index
    %77 = vector.load %arg3[%c8, %c0_56, %c0_57] : memref<9x128x128xbf16, #tpu.memory_space<vmem>>, vector<1x128x128xbf16>
    %78 = vector.shape_cast %77 : vector<1x128x128xbf16> to vector<128x128xbf16>
    %cst_58 = arith.constant dense<0.000000e+00> : vector<64x128xf32>
    %79 = tpu.matmul %76, %78, %cst_58 {dimension_numbers = #tpu.dot_dimension_numbers<[1], [0], [0], [1], [0, 0, 1, 1], [], []>} : vector<64x128xbf16>, vector<128x128xbf16>, vector<64x128xf32> -> vector<64x128xf32>
    %80 = arith.addf %71, %79 : vector<64x128xf32>
    %c0_59 = arith.constant 0 : index
    %c0_60 = arith.constant 0 : index
    %c0_61 = arith.constant 0 : index
    %c0_62 = arith.constant 0 : index
    %81 = vector.load %arg4[%c0_59, %c0_60, %c0_61, %c0_62] : memref<1x8x8x128xbf16, #tpu.memory_space<vmem>>, vector<1x8x8x128xbf16>
    %82 = vector.shape_cast %81 : vector<1x8x8x128xbf16> to vector<64x128xbf16>
    %83 = arith.extf %82 : vector<64x128xbf16> to vector<64x128xf32>
    %84 = arith.addf %80, %83 : vector<64x128xf32>
    %85 = vector.shape_cast %84 : vector<64x128xf32> to vector<1x8x8x128xf32>
    %c0_63 = arith.constant 0 : index
    %c0_64 = arith.constant 0 : index
    %c0_65 = arith.constant 0 : index
    %c0_66 = arith.constant 0 : index
    %86 = vector.load %arg5[%c0_63, %c0_64, %c0_65, %c0_66] : memref<1x8x8x128xf32, #tpu.memory_space<vmem>>, vector<1x8x8x128xf32>
    tpu.vector_store %arg5[%c0_63, %c0_64, %c0_65, %c0_66], %85 {strides = array<i32>} : memref<1x8x8x128xf32, #tpu.memory_space<vmem>>, vector<1x8x8x128xf32>,
    return
  }
  func.func @transform_0(%arg0: i32, %arg1: i32) -> (i32, i32, i32, i32) {
    %c0_i32 = arith.constant 0 : i32
    %c0_i32_0 = arith.constant 0 : i32
    %c0_i32_1 = arith.constant 0 : i32
    %c0_i32_2 = arith.constant 0 : i32
    return %arg0, %c0_i32, %c0_i32_0, %c0_i32_1 : i32, i32, i32, i32
  }
  func.func @transform_1(%arg0: i32, %arg1: i32) -> (i32, i32, i32) {
    %c0_i32 = arith.constant 0 : i32
    %c0_i32_0 = arith.constant 0 : i32
    %c0_i32_1 = arith.constant 0 : i32
    %c0_i32_2 = arith.constant 0 : i32
    return %c0_i32, %c0_i32_0, %c0_i32_1 : i32, i32, i32
  }
  func.func @transform_2(%arg0: i32, %arg1: i32) -> (i32, i32, i32, i32) {
    %c0_i32 = arith.constant 0 : i32
    %c0_i32_0 = arith.constant 0 : i32
    %c0_i32_1 = arith.constant 0 : i32
    return %arg0, %arg1, %c0_i32, %c0_i32_0 : i32, i32, i32, i32
  }
  func.func @transform_3(%arg0: i32, %arg1: i32) -> (i32, i32, i32, i32) {
    %c0_i32 = arith.constant 0 : i32
    %c0_i32_0 = arith.constant 0 : i32
    %c0_i32_1 = arith.constant 0 : i32
    return %arg0, %arg1, %c0_i32, %c0_i32_0 : i32, i32, i32, i32
  }
}

</mosaic_0001>

<bundles_post_ra>
// kernel: basic_block_forward.2
= control target key start
LH: loop header
LB: loop body
LE: loop exit
PB: predicated region body
PF: predicated region fallthrough
CT: control target
= control target key end

     0   :  { %s3200_s18 = smov 0   ;;  %s3202_s19 = smov 0   ;;  %s3794_s0 = inlined_call_operand.vmem [shape: bf16[8,9,9,128], index: 0, kind: input, shape index: {}]   ;;  %s3795_s1 = inlined_call_operand.vmem [shape: bf16[9,128,128], index: 1, kind: input, shape index: {}]   ;;  %s3796_s2 = inlined_call_operand.vmem [shape: f32[1,128], index: 2, kind: input, shape index: {}]   ;;  %s3797_s3 = inlined_call_operand.vmem [shape: bf16[128,128], index: 3, kind: input, shape index: {}]   ;;  %s3798_s4 = inlined_call_operand.vmem [shape: bf16[2,10,10,128], index: 4, kind: output, shape index: {0}]   ;;  %s3799_s5 = inlined_call_operand.vmem [shape: bf16[2,8,8,128], index: 5, kind: output, shape index: {1}]  }
   0x1   :  { %s3204_s20 = smov 0  }
   0x2 LB: > { %s28_s21 = sadd.s32 1, %s3163_s19  ;;  %p2289_p0 = scmp.ge.s32.totalorder %s3167_s20, 1  ;;  %s3167_s20 = sphi %s3204_s20, %s16_s20   ;;  %s3163_s19 = sphi %s3202_s19, %s3807_s19   ;;  %s3159_s18 = sphi %s3200_s18, %s3806_s18  }
   0x3   : > { %p30_p1 = scmp.ge.s32.totalorder %s28_s21, 2  ;;  %p206_p2 = scmp.lt.s32.totalorder %s3167_s20, 3 }
   0x5   : > { %s3809_s21 = smov (%p30_p1, %s28_s21), 0  ;;  %p207_p3 = pnand %p2289_p0, %p206_p2 }
   0x6   : > { %s2290_s9 = sshll.u32 (!%p207_p3), %s3159_s18, 2  ;;  %p251_p5 = scmp.lt.s32.totalorder (!%p207_p3), %s3159_s18, 1 }
   0x7   : > { %210 = sbr.rel (%p207_p3) target bundleno = 349 (0x15d), region = 36  ;;  %p245_p4 = scmp.lt.s32.totalorder (!%p207_p3), %s2290_s9, 7 }
   0xc   : > { %v2993_v0 = vld [vmem:[%s3795_s1 + $0x78] sm:$0xff]  ;;  %v2992_v2 = vld [vmem:[%s3795_s1 + $0x70] sm:$0xff]  ;;  %v2991_v4 = vld [vmem:[%s3795_s1 + $0x68] sm:$0xff]  ;;  %s3811_s9 = smov (!%p245_p4, %s2290_s9), 7  ;;  %vm565_vm0 = vsmask.f32 3328 }
   0xd   : > { %v2981_v1 = vld [vmem:[%s3795_s1 + $0x38] sm:$0xff]  ;;  %3101 = vmatpush.bf16.msra.mxu2 %v2993_v0  ;;  %v2980_v3 = vld [vmem:[%s3795_s1 + $0x30] sm:$0xff]  ;;  %419 = vmatpush.bf16.msra.mxu0 %v2993_v0  ;;  %v2979_v5 = vld [vmem:[%s3795_s1 + $0x28] sm:$0xff]  ;;  %s3117_s26 = smul.u32 72, %s3811_s9  ;;  %vm566_vm1 = vsmask.f32 7440 }
   0xe   : > { %3109 = vmatpush.bf16.msra.mxu3 %v2981_v1  ;;  %520 = vmatpush.bf16.msra.mxu1 %v2981_v1  ;;  %v2990_v6 = vld [vmem:[%s3795_s1 + $0x60] sm:$0xff]  ;;  %v2989_v8 = vld [vmem:[%s3795_s1 + $0x58] sm:$0xff]  ;;  %v2988_v10 = vld [vmem:[%s3795_s1 + $0x50] sm:$0xff]  ;;  %s3813_s18 = smov (!%p251_p5, %s3159_s18), 1  ;;  %vm1949_vm3 = vcmask 1043456   ;;  %vm1955_vm5 = vcmask 1040384  }
   0xf   : > { %v2978_v7 = vld [vmem:[%s3795_s1 + $0x20] sm:$0xff]  ;;  %v2977_v9 = vld [vmem:[%s3795_s1 + $0x18] sm:$0xff]  ;;  %v2976_v11 = vld [vmem:[%s3795_s1 + $0x10] sm:$0xff]  ;;  %s3266_s8 = scalar_lea.vmem %s3794_s0, %s3117_s26  ;;  %s2969_s28 = sshll.u32 %s3813_s18, 5  ;;  %vm1950_vm4 = vsmask.f32 7938 }
  0x10   : > { %v2987_v12 = vld [vmem:[%s3795_s1 + $0x48] sm:$0xff]  ;;  %v2986_v14 = vld [vmem:[%s3795_s1 + $0x40] sm:$0xff]  ;;  %v2984_v17 = vld [vmem:[%s3266_s8 + $0x6c] sm:$0xf0]  ;;  %s3692_s9 = scalar_lea.vmem %s3799_s5, %s2969_s28  ;;  %vm1956_vm6 = vsmask.f32 256 }
  0x11   : > { %3102 = vmatpush.bf16.msra.mxu2 %v2992_v2  ;;  %420 = vmatpush.bf16.msra.mxu0 %v2992_v2  ;;  %v2975_v13 = vld [vmem:[%s3795_s1 + $0x8] sm:$0xff]  ;;  %v2974_v15 = vld [vmem:[%s3795_s1] sm:$0xff]  ;;  %v2982_v21 = vld [vmem:[%s3266_s8 + $0x4c] sm:$0xf0] }
  0x12   : > { %3110 = vmatpush.bf16.msra.mxu3 %v2980_v3  ;;  %521 = vmatpush.bf16.msra.mxu1 %v2980_v3  ;;  %v2329_v16 = vld [vmem:[%s3266_s8 + $0x68] sm:$0xf]  ;;  %v2377_v18 = vld [vmem:[%s3266_s8 + $0x20] sm:$0xf]  ;;  %v3001_v24 = vld [vmem:[%s3795_s1 + $0xb8] sm:$0xff] }
  0x13   : > { %v2972_v19 = vld [vmem:[%s3266_s8 + $0x24] sm:$0xf0]  ;;  %v2369_v22 = vld [vmem:[%s3266_s8] sm:$0xf]  ;;  %v3013_v25 = vld [vmem:[%s3795_s1 + $0xf8] sm:$0xff]  ;;  %v2330_v26 = vor.u32 %v2984_v17, %v2329_v16 }
  0x14   : > { %v2321_v20 = vld [vmem:[%s3266_s8 + $0x48] sm:$0xf]  ;;  %v2378_v27 = vor.u32 %v2972_v19, %v2377_v18  ;;  %v3025_v30 = vld [vmem:[%s3795_s1 + $0x138] sm:$0xff]  ;;  %v549_v32 = vld [vmem:[%s3266_s8] sm:$0xf] }
  0x15   : > { %3103 = vmatpush.bf16.msra.mxu2 %v2991_v4  ;;  %421 = vmatpush.bf16.msra.mxu0 %v2991_v4  ;;  %v2970_v23 = vld [vmem:[%s3266_s8 + $0x4] sm:$0xf0]  ;;  %v2322_v28 = vor.u32 %v2982_v21, %v2321_v20  ;;  %v3033_v31 = vld [vmem:[%s3795_s1 + $0x178] sm:$0xff]  ;;  %v3000_v33 = vld [vmem:[%s3795_s1 + $0xb0] sm:$0xff]  ;;  %v569_v36 = vshrl.u32 %v549_v32, 16  ;;  %v572_v37 = vshll.u32 %v549_v32, 16 }
  0x16   : > { %3111 = vmatpush.bf16.msra.mxu3 %v2979_v5  ;;  %522 = vmatpush.bf16.msra.mxu1 %v2979_v5  ;;  %v2370_v29 = vor.u32 %v2970_v23, %v2369_v22  ;;  %v3012_v34 = vld [vmem:[%s3795_s1 + $0xf0] sm:$0xff]  ;;  %v551_v35 = vld [vmem:[%s3266_s8 + $0x8] sm:$0xf]  ;;  %v2609_v45 = vld [vmem:[%s3266_s8 + $0x98] sm:$0xf] }
  0x17   : > { %v3024_v38 = vld [vmem:[%s3795_s1 + $0x130] sm:$0xff]  ;;  %v583_v40 = vshrl.u32 %v551_v35, 16  ;;  %v586_v41 = vshll.u32 %v551_v35, 16  ;;  %v2999_v42 = vld [vmem:[%s3795_s1 + $0xa8] sm:$0xff]  ;;  %v2998_v47 = vld [vmem:[%s3795_s1 + $0xa0] sm:$0xff]  ;;  %v571_v48 = vrot.slane %v569_v36, 4 }
  0x18   : > { %v3032_v39 = vld [vmem:[%s3795_s1 + $0x170] sm:$0xff]  ;;  %v3011_v43 = vld [vmem:[%s3795_s1 + $0xe8] sm:$0xff]  ;;  %v574_v49 = vrot.slane %v572_v37, 5  ;;  %v3010_v50 = vld [vmem:[%s3795_s1 + $0xe0] sm:$0xff]  ;;  %v1103_v60 = vshrl.u32 %v2609_v45, 16  ;;  %v1106_v61 = vshll.u32 %v2609_v45, 16 }
  0x19   : > { %3104 = vmatpush.bf16.msra.mxu2 %v2990_v6  ;;  %422 = vmatpush.bf16.msra.mxu0 %v2990_v6  ;;  %v2607_v44 = vld [vmem:[%s3266_s8 + $0x90] sm:$0xf]  ;;  %v3023_v46 = vld [vmem:[%s3795_s1 + $0x128] sm:$0xff]  ;;  %v550_v52 = vld [vmem:[%s3266_s8 + $0x4] sm:$0x1]  ;;  %v585_v53 = vrot.slane %v583_v40, 4 }
  0x1a   : > { %3112 = vmatpush.bf16.msra.mxu3 %v2978_v7  ;;  %523 = vmatpush.bf16.msra.mxu1 %v2978_v7  ;;  %v3031_v51 = vld [vmem:[%s3795_s1 + $0x168] sm:$0xff]  ;;  %v588_v54 = vrot.slane %v586_v41, 5  ;;  %v2333_v55 = vld [vmem:[%s3266_s8 + $0x78] sm:$0xf]  ;;  %v2985_v56 = vld [vmem:[%s3266_s8 + $0x7c] sm:$0xf0]  ;;  %v575_v4 = vor.u32 %v574_v49, %v571_v48 }
  0x1b   : > { %v552_v57 = vld [vmem:[%s3266_s8 + $0xc] sm:$0x1]  ;;  %v1089_v58 = vshrl.u32 %v2607_v44, 16  ;;  %v1092_v59 = vshll.u32 %v2607_v44, 16  ;;  %v2381_v62 = vld [vmem:[%s3266_s8 + $0x30] sm:$0xf]  ;;  %v2334_v16 = vor.u32 %v2985_v56, %v2333_v55  ;;  %vm3366_vm2 = vmor %vm565_vm0, %vm566_vm1 }
  0x1c   : > { %v2973_v63 = vld [vmem:[%s3266_s8 + $0x34] sm:$0xf0]  ;;  %v2983_v1 = vld [vmem:[%s3266_s8 + $0x5c] sm:$0xf0]  ;;  %v2373_v2 = vld [vmem:[%s3266_s8 + $0x10] sm:$0xf] }
  0x1d   : > { %3105 = vmatpush.bf16.msra.mxu2 %v2989_v8  ;;  %423 = vmatpush.bf16.msra.mxu0 %v2989_v8  ;;  %v2325_v0 = vld [vmem:[%s3266_s8 + $0x58] sm:$0xf]  ;;  %v3022_v5 = vld [vmem:[%s3795_s1 + $0x120] sm:$0xff]  ;;  %v578_v7 = vshll.u32 %v550_v52, 16  ;;  %v589_v8 = vor.u32 %v588_v54, %v585_v53  ;;  %v2382_v17 = vor.u32 %v2973_v63, %v2381_v62  ;;  %v2608_v18 = vld [vmem:[%s3266_s8 + $0x94] sm:$0x1] }
  0x1e   : > { %3113 = vmatpush.bf16.msra.mxu3 %v2977_v9  ;;  %524 = vmatpush.bf16.msra.mxu1 %v2977_v9  ;;  %v2971_v3 = vld [vmem:[%s3266_s8 + $0x14] sm:$0xf0]  ;;  %v3030_v6 = vld [vmem:[%s3795_s1 + $0x160] sm:$0xff]  ;;  %v592_v9 = vshll.u32 %v552_v57, 16  ;;  %v2610_v19 = vld [vmem:[%s3266_s8 + $0x9c] sm:$0x1]  ;;  %v2326_v20 = vor.u32 %v2983_v1, %v2325_v0 }
  0x1f   : > { %v2374_v21 = vor.u32 %v2971_v3, %v2373_v2  ;;  %v3021_v22 = vld [vmem:[%s3795_s1 + $0x118] sm:$0xff]  ;;  %v2996_v23 = vld [vmem:[%s3795_s1 + $0x90] sm:$0xff]  ;;  %v1098_v32 = vshll.u32 %v2608_v18, 16  ;;  %v2611_v37 = vld [vmem:[%s3266_s8 + $0xa0] sm:$0xf] }
  0x20   : > { %v553_v35 = vld [vmem:[%s3266_s8 + $0x10] sm:$0xf]  ;;  %v555_v36 = vld [vmem:[%s3266_s8 + $0x18] sm:$0xf]  ;;  %v2613_v44 = vld [vmem:[%s3266_s8 + $0xa8] sm:$0xf] }
  0x21   : > { %3106 = vmatpush.bf16.msra.mxu2 %v2988_v10  ;;  %424 = vmatpush.bf16.msra.mxu0 %v2988_v10  ;;  %v2997_v10 = vld [vmem:[%s3795_s1 + $0x98] sm:$0xff]  ;;  %v3028_v41 = vld [vmem:[%s3795_s1 + $0x150] sm:$0xff]  ;;  %v2995_v45 = vld [vmem:[%s3795_s1 + $0x88] sm:$0xff]  ;;  %v1100_v48 = vrot.slane %v1098_v32, 5  ;;  %v614_v52 = vshll.u32 %v555_v36, 16  ;;  %v1117_v53 = vshrl.u32 %v2611_v37, 16 }
  0x22   : > { %3114 = vmatpush.bf16.msra.mxu3 %v2976_v11  ;;  %525 = vmatpush.bf16.msra.mxu1 %v2976_v11  ;;  %v3009_v11 = vld [vmem:[%s3795_s1 + $0xd8] sm:$0xff]  ;;  %v1120_v54 = vshll.u32 %v2611_v37, 16  ;;  %v3019_v55 = vld [vmem:[%s3795_s1 + $0x108] sm:$0xff]  ;;  %v2994_v56 = vld [vmem:[%s3795_s1 + $0x80] sm:$0xff] }
  0x23   : > { %v3006_v57 = vld [vmem:[%s3795_s1 + $0xc0] sm:$0xff]  ;;  %v2489_v62 = vld [vmem:[%s3266_s8 + $0x90] sm:$0xf]  ;;  %v3002_v63 = vld [vmem:[%s3266_s8 + $0x94] sm:$0xf0] }
  0x24   : > { %v3027_v0 = vld [vmem:[%s3795_s1 + $0x148] sm:$0xff]  ;;  %v3045_v1 = vld [vmem:[%s3795_s1 + $0x1b8] sm:$0xff]  ;;  %v3026_v18 = vld [vmem:[%s3795_s1 + $0x140] sm:$0xff] }
  0x25   : > { %3107 = vmatpush.bf16.msra.mxu2 %v2987_v12  ;;  %425 = vmatpush.bf16.msra.mxu0 %v2987_v12  ;;  %v1091_v12 = vrot.slane %v1089_v58, 4  ;;  %v1131_v58 = vshrl.u32 %v2613_v44, 16  ;;  %v3057_v2 = vld [vmem:[%s3795_s1 + $0x1f8] sm:$0xff]  ;;  %vm3698_vm7 = vmand %vm1949_vm3, %vm1950_vm4 }
  0x26   : > { %3115 = vmatpush.bf16.msra.mxu3 %v2975_v13  ;;  %526 = vmatpush.bf16.msra.mxu1 %v2975_v13  ;;  %v1094_v13 = vrot.slane %v1092_v59, 5  ;;  %v1134_v59 = vshll.u32 %v2613_v44, 16  ;;  %v3076_v44 = vld [vmem:[%s3797_s3 + $0x30] sm:$0xff]  ;;  %vm3703_vm8 = vmand %vm1955_vm5, %vm1956_vm6 }
  0x29   : > { %3108 = vmatpush.bf16.msra.mxu2 %v2986_v14  ;;  %426 = vmatpush.bf16.msra.mxu0 %v2986_v14  ;;  %v1105_v14 = vrot.slane %v1103_v60, 4 }
  0x2a   : > { %3116 = vmatpush.bf16.msra.mxu3 %v2974_v15  ;;  %527 = vmatpush.bf16.msra.mxu1 %v2974_v15  ;;  %v1108_v15 = vrot.slane %v1106_v61, 5 }
  0x2c   : > { %437 = vmatmul.bf16.vlgmr.msra.gmra.mxu2 %v2330_v26  ;;  %427 = vmatmul.bf16.vlgmr.msra.gmra.mxu0 %v2322_v28  ;;  %v580_v26 = vrot.slane %v578_v7, 5  ;;  %v594_v28 = vrot.slane %v592_v9, 5  ;;  %v556_v9 = vld [vmem:[%s3266_s8 + $0x1c] sm:$0x1] }
  0x2d   : > { %761 = vmatpush.bf16.msrb.mxu2 %v3001_v24  ;;  %538 = vmatmul.bf16.vlgmr.msra.gmra.mxu3 %v2378_v27  ;;  %v3029_v24 = vld [vmem:[%s3795_s1 + $0x158] sm:$0xff]  ;;  %v590_v27 = vrot.slane %v589_v8, 4  ;;  %v3018_v8 = vld [vmem:[%s3795_s1 + $0x100] sm:$0xff] }
  0x2e   : > { %898 = vmatpush.bf16.msrb.mxu3 %v3013_v25  ;;  %528 = vmatmul.bf16.vlgmr.msra.gmra.mxu1 %v2370_v29  ;;  %v576_v25 = vrot.slane %v575_v4, 4  ;;  %v3008_v29 = vld [vmem:[%s3795_s1 + $0xd0] sm:$0xff] }
  0x2f   : > { %1035 = vmatpush.bf16.msrb.mxu0 %v3025_v30  ;;  %1281 = vmatpush.bf16.msrb.mxu1 %v3033_v31  ;;  %v1095_v31 = vor.u32 %v1094_v13, %v1091_v12  ;;  %v595_v40 = vsel %vm3366_vm2, %v590_v27, %v594_v28  ;;  %v1119_v12 = vrot.slane %v1117_v53, 4  ;;  %v1122_v13 = vrot.slane %v1120_v54, 5  ;;  %v3077_v28 = vld [vmem:[%s3797_s3 + $0x38] sm:$0xff] }
  0x30   : > { %v698_v61 = vunpack.c.l.b16 %v595_v40  ;;  %v620_v27 = vshll.u32 %v556_v9, 16 }
  0x31   : > { %762 = vmatpush.bf16.msrb.mxu2 %v3000_v33  ;;  %v1109_v33 = vor.u32 %v1108_v15, %v1105_v14  ;;  %v2561_v14 = vld [vmem:[%s3266_s8 + $0xd8] sm:$0xf]  ;;  %v3014_v15 = vld [vmem:[%s3266_s8 + $0xdc] sm:$0xf0]  ;;  %v1123_v32 = vor.u32 %v1122_v13, %v1119_v12 }
  0x32   : > { %899 = vmatpush.bf16.msrb.mxu3 %v3012_v34  ;;  %v1112_v34 = vshll.u32 %v2610_v19, 16  ;;  %v3062_v13 = vld [vmem:[%s3795_s1 + $0x220] sm:$0xff] }
  0x33   : > { %1036 = vmatpush.bf16.msrb.mxu0 %v3024_v38  ;;  %1282 = vmatpush.bf16.msrb.mxu1 %v3032_v39  ;;  %v3020_v38 = vld [vmem:[%s3795_s1 + $0x110] sm:$0xff]  ;;  %v581_v39 = vsel %vm3366_vm2, %v576_v25, %v580_v26  ;;  %v1110_v49 = vrot.slane %v1109_v33, 4  ;;  %v3065_v25 = vld [vmem:[%s3795_s1 + $0x238] sm:$0xff]  ;;  %v2562_v33 = vor.u32 %v3014_v15, %v2561_v14  ;;  %v3074_v14 = vld [vmem:[%s3797_s3 + $0x20] sm:$0xff] }
  0x34   : > { %v697_v60 = vunpack.c.l.b16 %v581_v39  ;;  %v3056_v39 = vld [vmem:[%s3795_s1 + $0x1f0] sm:$0xff] }
  0x35   : > { %763 = vmatpush.bf16.msrb.mxu2 %v2999_v42  ;;  %v597_v42 = vshrl.u32 %v553_v35, 16 }
  0x36   : > { %900 = vmatpush.bf16.msrb.mxu3 %v3011_v43  ;;  %v600_v43 = vshll.u32 %v553_v35, 16 }
  0x37   : > { %1037 = vmatpush.bf16.msrb.mxu0 %v3023_v46  ;;  %1283 = vmatpush.bf16.msrb.mxu1 %v3031_v51  ;;  %v3007_v46 = vld [vmem:[%s3795_s1 + $0xc8] sm:$0xff]  ;;  %v611_v51 = vshrl.u32 %v555_v36, 16 }
  0x38   : > { %v602_v7 = vrot.slane %v600_v43, 5  ;;  %v3064_v43 = vld [vmem:[%s3795_s1 + $0x230] sm:$0xff] }
  0x39   : > { %764 = vmatpush.bf16.msrb.mxu2 %v2998_v47  ;;  %v1096_v47 = vrot.slane %v1095_v31, 4 }
  0x3a   : > { %901 = vmatpush.bf16.msrb.mxu3 %v3010_v50  ;;  %v1114_v50 = vrot.slane %v1112_v34, 5  ;;  %v3044_v34 = vld [vmem:[%s3795_s1 + $0x1b0] sm:$0xff] }
  0x3b   : > { %1038 = vmatpush.bf16.msrb.mxu0 %v3022_v5  ;;  %1284 = vmatpush.bf16.msrb.mxu1 %v3030_v6  ;;  %v1101_v3 = vsel %vm3366_vm2, %v1096_v47, %v1100_v48  ;;  %v554_v5 = vld [vmem:[%s3266_s8 + $0x14] sm:$0x1]  ;;  %v599_v6 = vrot.slane %v597_v42, 4  ;;  %v622_v42 = vrot.slane %v620_v27, 5  ;;  %v1124_v48 = vrot.slane %v1123_v32, 4  ;;  %v3053_v27 = vld [vmem:[%s3795_s1 + $0x1d8] sm:$0xff] }
  0x3c   : > { %442 = vmatmul.bf16.gmra.mxu2 %v2334_v16  ;;  %432 = vmatmul.bf16.gmra.mxu0 %v2326_v20  ;;  %v1115_v4 = vsel %vm3366_vm2, %v1110_v49, %v1114_v50  ;;  %v1133_v16 = vrot.slane %v1131_v58, 4  ;;  %v1217_v19 = vunpack.c.l.b16 %v1101_v3  ;;  %v606_v26 = vshll.u32 %v554_v5, 16  ;;  %v3043_v50 = vld [vmem:[%s3795_s1 + $0x1a8] sm:$0xff] }
  0x3d   : > { %765 = vmatpush.bf16.msrb.mxu2 %v2997_v10  ;;  %543 = vmatmul.bf16.gmra.mxu3 %v2382_v17  ;;  %v613_v10 = vrot.slane %v611_v51, 4  ;;  %v1136_v17 = vrot.slane %v1134_v59, 5  ;;  %v1218_v20 = vunpack.c.l.b16 %v1115_v4  ;;  %v3075_v59 = vld [vmem:[%s3797_s3 + $0x28] sm:$0xff] }
  0x3e   : > { %902 = vmatpush.bf16.msrb.mxu3 %v3009_v11  ;;  %533 = vmatmul.bf16.gmra.mxu1 %v2374_v21  ;;  %v616_v11 = vrot.slane %v614_v52, 5  ;;  %v2612_v21 = vld [vmem:[%s3266_s8 + $0xa4] sm:$0x1] }
  0x3f   : > { %1039 = vmatpush.bf16.msrb.mxu0 %v3021_v22  ;;  %1285 = vmatpush.bf16.msrb.mxu1 %v3029_v24  ;;  %v2614_v22 = vld [vmem:[%s3266_s8 + $0xac] sm:$0x1]  ;;  %v2490_v24 = vor.u32 %v3002_v63, %v2489_v62  ;;  %v1126_v35 = vshll.u32 %v2612_v21, 16  ;;  %v1137_v36 = vor.u32 %v1136_v17, %v1133_v16  ;;  %v1225_v40 = vpack.c.b16 %v1218_v20, %v1217_v19  ;;  %v2493_v17 = vld [vmem:[%s3266_s8 + $0xa0] sm:$0xf] }
  0x40   : > { %v617_v31 = vor.u32 %v616_v11, %v613_v10  ;;  %v1140_v37 = vshll.u32 %v2614_v22, 16  ;;  %v560_v19 = vld [vmem:[%s3266_s8 + $0x2c] sm:$0x1]  ;;  %v2565_v20 = vld [vmem:[%s3266_s8 + $0xe8] sm:$0xf] }
  0x41   : > { %766 = vmatpush.bf16.msrb.mxu2 %v2996_v23  ;;  %v705_v23 = vpack.c.b16 %v698_v61, %v697_v60  ;;  %v1128_v51 = vrot.slane %v1126_v35, 5  ;;  %v1138_v52 = vrot.slane %v1137_v36, 4  ;;  %v2615_v60 = vld [vmem:[%s3266_s8 + $0xb0] sm:$0xf]  ;;  %v2617_v61 = vld [vmem:[%s3266_s8 + $0xb8] sm:$0xf] }
  0x42   : > { %903 = vmatpush.bf16.msrb.mxu3 %v3008_v29  ;;  %v603_v29 = vor.u32 %v602_v7, %v599_v6  ;;  %v618_v47 = vrot.slane %v617_v31, 4  ;;  %v1142_v53 = vrot.slane %v1140_v37, 5  ;;  %v558_v6 = vld [vmem:[%s3266_s8 + $0x24] sm:$0x1]  ;;  %v1145_v7 = vshrl.u32 %v2615_v60, 16  ;;  %v3061_v35 = vld [vmem:[%s3795_s1 + $0x218] sm:$0xff] }
  0x43   : > { %1040 = vmatpush.bf16.msrb.mxu0 %v3020_v38  ;;  %1286 = vmatpush.bf16.msrb.mxu1 %v3028_v41  ;;  %v557_v38 = vld [vmem:[%s3266_s8 + $0x20] sm:$0xf]  ;;  %v608_v41 = vrot.slane %v606_v26, 5  ;;  %v1159_v9 = vshrl.u32 %v2617_v61, 16  ;;  %v1162_v10 = vshll.u32 %v2617_v61, 16  ;;  %v3041_v26 = vld [vmem:[%s3795_s1 + $0x198] sm:$0xff] }
  0x44   : > { %v625_v49 = vshrl.u32 %v557_v38, 16  ;;  %v628_v54 = vshll.u32 %v557_v38, 16  ;;  %v623_v63 = vsel %vm3366_vm2, %v618_v47, %v622_v42  ;;  %v1143_v3 = vsel %vm3366_vm2, %v1138_v52, %v1142_v53  ;;  %v3015_v21 = vld [vmem:[%s3266_s8 + $0xec] sm:$0xf0]  ;;  %v2616_v36 = vld [vmem:[%s3266_s8 + $0xb4] sm:$0x1] }
  0x45   : > { %767 = vmatpush.bf16.msrb.mxu2 %v2995_v45  ;;  %v559_v45 = vld [vmem:[%s3266_s8 + $0x28] sm:$0xf]  ;;  %v700_v16 = vunpack.c.l.b16 %v623_v63  ;;  %v1161_v31 = vrot.slane %v1159_v9, 4  ;;  %v1164_v32 = vrot.slane %v1162_v10, 5  ;;  %v2618_v37 = vld [vmem:[%s3266_s8 + $0xbc] sm:$0x1] }
  0x46   : > { %904 = vmatpush.bf16.msrb.mxu3 %v3007_v46  ;;  %v604_v46 = vrot.slane %v603_v29, 4  ;;  %v642_v58 = vshll.u32 %v559_v45, 16  ;;  %v627_v4 = vrot.slane %v625_v49, 4  ;;  %v630_v5 = vrot.slane %v628_v54, 5  ;;  %v561_v52 = vld [vmem:[%s3266_s8 + $0x30] sm:$0xf] }
  0x47   : > { %1041 = vmatpush.bf16.msrb.mxu0 %v3019_v55  ;;  %1287 = vmatpush.bf16.msrb.mxu1 %v3027_v0  ;;  %v3055_v55 = vld [vmem:[%s3795_s1 + $0x1e8] sm:$0xff]  ;;  %v3042_v0 = vld [vmem:[%s3795_s1 + $0x1a0] sm:$0xff]  ;;  %v1154_v47 = vshll.u32 %v2616_v36, 16  ;;  %v1168_v49 = vshll.u32 %v2618_v37, 16  ;;  %v563_v53 = vld [vmem:[%s3266_s8 + $0x38] sm:$0xf] }
  0x48   : > { %v609_v62 = vsel %vm3366_vm2, %v604_v46, %v608_v41  ;;  %v644_v12 = vrot.slane %v642_v58, 5 }
  0x49   : > { %768 = vmatpush.bf16.msrb.mxu2 %v2994_v56  ;;  %v3063_v56 = vld [vmem:[%s3795_s1 + $0x228] sm:$0xff]  ;;  %v699_v15 = vunpack.c.l.b16 %v609_v62  ;;  %v1170_v61 = vrot.slane %v1168_v49, 5 }
  0x4a   : > { %905 = vmatpush.bf16.msrb.mxu3 %v3006_v57  ;;  %v639_v57 = vshrl.u32 %v559_v45, 16  ;;  %v3052_v45 = vld [vmem:[%s3795_s1 + $0x1d0] sm:$0xff]  ;;  %v3051_v62 = vld [vmem:[%s3795_s1 + $0x1c8] sm:$0xff] }
  0x4b   : > { %1042 = vmatpush.bf16.msrb.mxu0 %v3018_v8  ;;  %1288 = vmatpush.bf16.msrb.mxu1 %v3026_v18  ;;  %v1148_v8 = vshll.u32 %v2615_v60, 16  ;;  %v3003_v18 = vld [vmem:[%s3266_s8 + $0xa4] sm:$0xf0]  ;;  %v706_v38 = vpack.c.b16 %v700_v16, %v699_v15  ;;  %v3050_v15 = vld [vmem:[%s3795_s1 + $0x1c0] sm:$0xff] }
  0x4c   : > { %769 = vmatmul.bf16.vlgmr.msrb.gmra.mxu2 %v705_v23  ;;  %v641_v11 = vrot.slane %v639_v57, 4  ;;  %v1220_v23 = vunpack.c.l.b16 %v1143_v3  ;;  %v3073_v57 = vld [vmem:[%s3797_s3 + $0x18] sm:$0xff]  ;;  %v3059_v3 = vld [vmem:[%s3795_s1 + $0x208] sm:$0xff] }
  0x4d   : > { %1419 = vmatpush.bf16.msra.mxu2 %v3045_v1  ;;  %906 = vmatmul.bf16.vlgmr.msrb.gmra.mxu3 %v2490_v24  ;;  %v3054_v1 = vld [vmem:[%s3795_s1 + $0x1e0] sm:$0xff]  ;;  %v631_v24 = vor.u32 %v630_v5, %v627_v4  ;;  %v1150_v29 = vrot.slane %v1148_v8, 5  ;;  %v670_v4 = vshll.u32 %v563_v53, 16 }
  0x4e   : > { %1556 = vmatpush.bf16.msra.mxu3 %v3057_v2  ;;  %1043 = vmatmul.bf16.vlgmr.msrb.gmra.mxu0 %v2562_v33  ;;  %v1129_v2 = vsel %vm3366_vm2, %v1124_v48, %v1128_v51  ;;  %v645_v33 = vor.u32 %v644_v12, %v641_v11  ;;  %v1165_v48 = vor.u32 %v1164_v32, %v1161_v31  ;;  %v2619_v5 = vld [vmem:[%s3266_s8 + $0xc0] sm:$0xf]  ;;  %v2497_v11 = vld [vmem:[%s3266_s8 + $0xb0] sm:$0xf]  ;;  %v3004_v12 = vld [vmem:[%s3266_s8 + $0xb4] sm:$0xf0] }
  0x4f   : > { %1802 = vmatpush.bf16.msra.mxu0 %v3065_v25  ;;  %2099 = vmatpush.bf16.msra.mxu1 %v3077_v28  ;;  %v1219_v22 = vunpack.c.l.b16 %v1129_v2  ;;  %v634_v25 = vshll.u32 %v558_v6, 16  ;;  %v1147_v28 = vrot.slane %v1145_v7, 4  ;;  %v632_v42 = vrot.slane %v631_v24, 4  ;;  %v2621_v6 = vld [vmem:[%s3266_s8 + $0xc8] sm:$0xf]  ;;  %v3072_v7 = vld [vmem:[%s3797_s3 + $0x10] sm:$0xff] }
  0x50   : > { %1289 = vmatmul.bf16.vlgmr.msrb.gmra.mxu1 %v1225_v40  ;;  %v2566_v40 = vor.u32 %v3015_v21, %v2565_v20  ;;  %v1166_v60 = vrot.slane %v1165_v48, 4  ;;  %v667_v2 = vshrl.u32 %v563_v53, 16  ;;  %v3038_v8 = vld [vmem:[%s3795_s1 + $0x180] sm:$0xff]  ;;  %v1173_v16 = vshrl.u32 %v2619_v5, 16 }
  0x51   : > { %1420 = vmatpush.bf16.msra.mxu2 %v3044_v34  ;;  %v648_v34 = vshll.u32 %v560_v19, 16  ;;  %v1226_v41 = vpack.c.b16 %v1220_v23, %v1219_v22  ;;  %v1151_v46 = vor.u32 %v1150_v29, %v1147_v28  ;;  %v1190_v19 = vshll.u32 %v2621_v6, 16  ;;  %v3058_v20 = vld [vmem:[%s3795_s1 + $0x200] sm:$0xff]  ;;  %v2569_v29 = vld [vmem:[%s3266_s8 + $0xf8] sm:$0xf] }
  0x52   : > { %1557 = vmatpush.bf16.msra.mxu3 %v3056_v39  ;;  %v2494_v39 = vor.u32 %v3003_v18, %v2493_v17  ;;  %v1176_v17 = vshll.u32 %v2619_v5, 16  ;;  %v1187_v18 = vshrl.u32 %v2621_v6, 16  ;;  %v669_v23 = vrot.slane %v667_v2, 4  ;;  %v3016_v31 = vld [vmem:[%s3266_s8 + $0xfc] sm:$0xf0] }
  0x53   : > { %1803 = vmatpush.bf16.msra.mxu0 %v3064_v43  ;;  %2100 = vmatpush.bf16.msra.mxu1 %v3076_v44  ;;  %v636_v43 = vrot.slane %v634_v25, 5  ;;  %v3040_v44 = vld [vmem:[%s3795_s1 + $0x190] sm:$0xff]  ;;  %v650_v51 = vrot.slane %v648_v34, 5  ;;  %v1152_v58 = vrot.slane %v1151_v46, 4  ;;  %v672_v24 = vrot.slane %v670_v4, 5 }
  0x54   : > { %v562_v25 = vld [vmem:[%s3266_s8 + $0x34] sm:$0x1]  ;;  %v2498_v28 = vor.u32 %v3004_v12, %v2497_v11  ;;  %v1175_v34 = vrot.slane %v1173_v16, 4  ;;  %v1189_v36 = vrot.slane %v1187_v18, 4  ;;  %v1192_v37 = vrot.slane %v1190_v19, 5 }
  0x55   : > { %1421 = vmatpush.bf16.msra.mxu2 %v3043_v50  ;;  %v646_v50 = vrot.slane %v645_v33, 4  ;;  %v637_v54 = vsel %vm3366_vm2, %v632_v42, %v636_v43  ;;  %v2620_v42 = vld [vmem:[%s3266_s8 + $0xc4] sm:$0x1]  ;;  %v2622_v43 = vld [vmem:[%s3266_s8 + $0xcc] sm:$0x1] }
  0x56   : > { %1558 = vmatpush.bf16.msra.mxu3 %v3055_v55  ;;  %v3039_v55 = vld [vmem:[%s3795_s1 + $0x188] sm:$0xff]  ;;  %v701_v9 = vunpack.c.l.b16 %v637_v54  ;;  %v1193_v48 = vor.u32 %v1192_v37, %v1189_v36  ;;  %v1196_v49 = vshll.u32 %v2622_v43, 16  ;;  %v3017_v11 = vld [vmem:[%s3266_s8 + $0x10c] sm:$0xf0]  ;;  %v2818_v19 = vld [vmem:[%s3266_s8 + $0x14] sm:$0x1] }
  0x57   : > { %1804 = vmatpush.bf16.msra.mxu0 %v3063_v56  ;;  %2101 = vmatpush.bf16.msra.mxu1 %v3075_v59  ;;  %v3060_v56 = vld [vmem:[%s3795_s1 + $0x210] sm:$0xff]  ;;  %v1156_v59 = vrot.slane %v1154_v47, 5  ;;  %v651_v63 = vsel %vm3366_vm2, %v646_v50, %v650_v51  ;;  %v1182_v47 = vshll.u32 %v2620_v42, 16  ;;  %v3071_v54 = vld [vmem:[%s3797_s3 + $0x8] sm:$0xff] }
  0x58   : > { %v702_v10 = vunpack.c.l.b16 %v651_v63  ;;  %v2816_v18 = vld [vmem:[%s3266_s8 + $0xc] sm:$0x1]  ;;  %v3034_v42 = vld [vmem:[%s3266_s8 + $0xc] sm:$0xf0] }
  0x59   : > { %1422 = vmatpush.bf16.msra.mxu2 %v3042_v0  ;;  %v653_v0 = vshrl.u32 %v561_v52, 16  ;;  %v2769_v43 = vld [vmem:[%s3266_s8 + $0x50] sm:$0xf] }
  0x5a   : > { %1559 = vmatpush.bf16.msra.mxu3 %v3054_v1  ;;  %v656_v1 = vshll.u32 %v561_v52, 16 }
  0x5b   : > { %1805 = vmatpush.bf16.msra.mxu0 %v3062_v13  ;;  %2102 = vmatpush.bf16.msra.mxu1 %v3074_v14  ;;  %v1157_v13 = vsel %vm3366_vm2, %v1152_v58, %v1156_v59  ;;  %v1171_v14 = vsel %vm3366_vm2, %v1166_v60, %v1170_v61  ;;  %v655_v21 = vrot.slane %v653_v0, 4  ;;  %v1184_v58 = vrot.slane %v1182_v47, 5  ;;  %v3070_v61 = vld [vmem:[%s3797_s3] sm:$0xff]  ;;  %v2921_v47 = vld [vmem:[%s3266_s8 + $0xd8] sm:$0xf] }
  0x5c   : > { %774 = vmatmul.bf16.gmra.mxu2 %v706_v38  ;;  %v658_v22 = vrot.slane %v656_v1, 5  ;;  %v1221_v32 = vunpack.c.l.b16 %v1157_v13  ;;  %v1222_v33 = vunpack.c.l.b16 %v1171_v14  ;;  %v1194_v59 = vrot.slane %v1193_v48, 4  ;;  %v3066_v48 = vld [vmem:[%s3266_s8 + $0xdc] sm:$0xf0] }
  0x5d   : > { %1423 = vmatpush.bf16.msra.mxu2 %v3041_v26  ;;  %911 = vmatmul.bf16.gmra.mxu3 %v2494_v39  ;;  %v564_v26 = vld [vmem:[%s3266_s8 + $0x3c] sm:$0x1]  ;;  %v662_v39 = vshll.u32 %v562_v25, 16  ;;  %v1198_v60 = vrot.slane %v1196_v49, 5 }
  0x5e   : > { %1560 = vmatpush.bf16.msra.mxu3 %v3053_v27  ;;  %1048 = vmatmul.bf16.gmra.mxu0 %v2566_v40  ;;  %v707_v27 = vpack.c.b16 %v702_v10, %v701_v9  ;;  %v659_v38 = vor.u32 %v658_v22, %v655_v21  ;;  %v673_v40 = vor.u32 %v672_v24, %v669_v23  ;;  %v3005_v9 = vld [vmem:[%s3266_s8 + $0xc4] sm:$0xf0]  ;;  %v1619_v24 = vshll.u32 %v2816_v18, 16 }
  0x5f   : > { %1806 = vmatpush.bf16.msra.mxu0 %v3061_v35  ;;  %2103 = vmatpush.bf16.msra.mxu1 %v3073_v57  ;;  %v1178_v35 = vrot.slane %v1176_v17, 5  ;;  %v664_v51 = vrot.slane %v662_v39, 5  ;;  %v1199_v5 = vsel %vm3366_vm2, %v1194_v59, %v1198_v60  ;;  %v2573_v10 = vld [vmem:[%s3266_s8 + $0x108] sm:$0xf] }
  0x60   : > { %1294 = vmatmul.bf16.gmra.mxu1 %v1226_v41  ;;  %v676_v41 = vshll.u32 %v564_v26, 16  ;;  %v660_v50 = vrot.slane %v659_v38, 4  ;;  %v674_v52 = vrot.slane %v673_v40, 4  ;;  %v1224_v17 = vunpack.c.l.b16 %v1199_v5 }
  0x61   : > { %1424 = vmatpush.bf16.msra.mxu2 %v3040_v44  ;;  %v2570_v44 = vor.u32 %v3016_v31, %v2569_v29  ;;  %v1179_v46 = vor.u32 %v1178_v35, %v1175_v34  ;;  %v2574_v22 = vor.u32 %v3017_v11, %v2573_v10  ;;  %v1633_v26 = vshll.u32 %v2818_v19, 16  ;;  %v2821_v34 = vld [vmem:[%s3266_s8 + $0x20] sm:$0xf]  ;;  %v2701_v11 = vld [vmem:[%s3266_s8 + $0x18] sm:$0xf] }
  0x62   : > { %1561 = vmatpush.bf16.msra.mxu3 %v3052_v45  ;;  %v1227_v45 = vpack.c.b16 %v1222_v33, %v1221_v32  ;;  %v678_v53 = vrot.slane %v676_v41, 5  ;;  %v1621_v29 = vrot.slane %v1619_v24, 5  ;;  %v2819_v33 = vld [vmem:[%s3266_s8 + $0x18] sm:$0xf]  ;;  %v1652_v39 = vshrl.u32 %v2821_v34, 16 }
  0x63   : > { %1807 = vmatpush.bf16.msra.mxu0 %v3060_v56  ;;  %2104 = vmatpush.bf16.msra.mxu1 %v3072_v7  ;;  %v2817_v56 = vld [vmem:[%s3266_s8 + $0x10] sm:$0xf]  ;;  %v1180_v57 = vrot.slane %v1179_v46, 4  ;;  %v1635_v32 = vrot.slane %v1633_v26, 5  ;;  %v1638_v37 = vshrl.u32 %v2819_v33, 16  ;;  %v1641_v38 = vshll.u32 %v2819_v33, 16 }
  0x64   : > { %v679_v63 = vsel %vm3366_vm2, %v674_v52, %v678_v53  ;;  %v1624_v2 = vshrl.u32 %v2817_v56, 16  ;;  %v1655_v40 = vshll.u32 %v2821_v34, 16  ;;  %v2697_v41 = vld [vmem:[%s3266_s8 + $0x8] sm:$0xf]  ;;  %v2820_v53 = vld [vmem:[%s3266_s8 + $0x1c] sm:$0x1] }
  0x65   : > { %1425 = vmatpush.bf16.msra.mxu2 %v3039_v55  ;;  %v2815_v55 = vld [vmem:[%s3266_s8 + $0x8] sm:$0xf]  ;;  %v1185_v4 = vsel %vm3366_vm2, %v1180_v57, %v1184_v58  ;;  %v704_v7 = vunpack.c.l.b16 %v679_v63  ;;  %v1640_v49 = vrot.slane %v1638_v37, 4  ;;  %v2922_v58 = vor.u32 %v3066_v48, %v2921_v47  ;;  %v2824_v19 = vld [vmem:[%s3266_s8 + $0x2c] sm:$0x1] }
  0x66   : > { %1562 = vmatpush.bf16.msra.mxu3 %v3051_v62  ;;  %v665_v62 = vsel %vm3366_vm2, %v660_v50, %v664_v51  ;;  %v1610_v0 = vshrl.u32 %v2815_v55, 16  ;;  %v1613_v1 = vshll.u32 %v2815_v55, 16  ;;  %v1626_v14 = vrot.slane %v1624_v2, 4  ;;  %v2826_v24 = vld [vmem:[%s3266_s8 + $0x34] sm:$0x1] }
  0x67   : > { %1808 = vmatpush.bf16.msra.mxu0 %v3059_v3  ;;  %2105 = vmatpush.bf16.msra.mxu1 %v3071_v54  ;;  %v1627_v3 = vshll.u32 %v2817_v56, 16  ;;  %v703_v6 = vunpack.c.l.b16 %v665_v62  ;;  %v1223_v16 = vunpack.c.l.b16 %v1185_v4  ;;  %v1643_v50 = vrot.slane %v1641_v38, 5  ;;  %v2822_v54 = vld [vmem:[%s3266_s8 + $0x24] sm:$0x1]  ;;  %v2825_v4 = vld [vmem:[%s3266_s8 + $0x30] sm:$0xf] }
  0x68   : > { %v1612_v12 = vrot.slane %v1610_v0, 4  ;;  %v1615_v13 = vrot.slane %v1613_v1, 5  ;;  %v1654_v51 = vrot.slane %v1652_v39, 4  ;;  %v1657_v52 = vrot.slane %v1655_v40, 5  ;;  %v2827_v38 = vld [vmem:[%s3266_s8 + $0x38] sm:$0xf] }
  0x69   : > { %1426 = vmatpush.bf16.msra.mxu2 %v3038_v8  ;;  %v2501_v8 = vld [vmem:[%s3266_s8 + $0xc0] sm:$0xf]  ;;  %v2698_v55 = vor.u32 %v3034_v42, %v2697_v41  ;;  %v1644_v59 = vor.u32 %v1643_v50, %v1640_v49  ;;  %v1647_v60 = vshll.u32 %v2820_v53, 16  ;;  %v1661_v62 = vshll.u32 %v2822_v54, 16  ;;  %v3036_v47 = vld [vmem:[%s3266_s8 + $0x2c] sm:$0xf0] }
  0x6a   : > { %1563 = vmatpush.bf16.msra.mxu3 %v3050_v15  ;;  %v1629_v15 = vrot.slane %v1627_v3, 5  ;;  %v2502_v21 = vor.u32 %v3005_v9, %v2501_v8  ;;  %v1616_v23 = vor.u32 %v1615_v13, %v1612_v12  ;;  %v2823_v3 = vld [vmem:[%s3266_s8 + $0x28] sm:$0xf]  ;;  %v1680_v9 = vshrl.u32 %v2825_v4, 16  ;;  %v3035_v12 = vld [vmem:[%s3266_s8 + $0x1c] sm:$0xf0] }
  0x6b   : > { %1809 = vmatpush.bf16.msra.mxu0 %v3058_v20  ;;  %2106 = vmatpush.bf16.msra.mxu1 %v3070_v61  ;;  %v708_v20 = vpack.c.b16 %v704_v7, %v703_v6  ;;  %v1658_v61 = vor.u32 %v1657_v52, %v1654_v51  ;;  %v1645_v63 = vrot.slane %v1644_v59, 4  ;;  %v1649_v0 = vrot.slane %v1647_v60, 5  ;;  %v2773_v13 = vld [vmem:[%s3266_s8 + $0x60] sm:$0xf]  ;;  %v2777_v48 = vld [vmem:[%s3266_s8 + $0x70] sm:$0xf] }
  0x6c   : > { %779 = vmatmul.bf16.gmra.mxu2 %v707_v27  ;;  %v1630_v25 = vor.u32 %v1629_v15, %v1626_v14  ;;  %v1228_v27 = vpack.c.b16 %v1224_v17, %v1223_v16  ;;  %v1663_v2 = vrot.slane %v1661_v62, 5  ;;  %v1666_v5 = vshrl.u32 %v2823_v3, 16  ;;  %v3047_v14 = vld [vmem:[%s3266_s8 + $0x64] sm:$0xf0]  ;;  %v2829_v39 = vld [vmem:[%s3266_s8 + $0x40] sm:$0xf] }
  0x6d   : > { %916 = vmatmul.bf16.gmra.mxu3 %v2498_v28  ;;  %v1617_v28 = vrot.slane %v1616_v23, 4  ;;  %v1659_v1 = vrot.slane %v1658_v61, 4  ;;  %v1669_v6 = vshll.u32 %v2823_v3, 16  ;;  %v1650_v7 = vsel %vm3366_vm2, %v1645_v63, %v1649_v0  ;;  %v3067_v23 = vld [vmem:[%s3266_s8 + $0xec] sm:$0xf0] }
  0x6e   : > { %1053 = vmatmul.bf16.gmra.mxu0 %v2570_v44  ;;  %v1631_v31 = vrot.slane %v1630_v25, 4  ;;  %v3046_v44 = vld [vmem:[%s3266_s8 + $0x54] sm:$0xf0]  ;;  %v1683_v10 = vshll.u32 %v2825_v4, 16  ;;  %v1740_v15 = vunpack.c.l.b16 %v1650_v7  ;;  %v1668_v17 = vrot.slane %v1666_v5, 4 }
  0x6f   : > { %v1622_v35 = vsel %vm3366_vm2, %v1617_v28, %v1621_v29  ;;  %v2770_v56 = vor.u32 %v3046_v44, %v2769_v43  ;;  %v1664_v8 = vsel %vm3366_vm2, %v1659_v1, %v1663_v2  ;;  %v1671_v18 = vrot.slane %v1669_v6, 5  ;;  %v3048_v49 = vld [vmem:[%s3266_s8 + $0x74] sm:$0xf0]  ;;  %v2828_v54 = vld [vmem:[%s3266_s8 + $0x3c] sm:$0x1] }
  0x70   : > { %1299 = vmatmul.bf16.gmra.mxu1 %v1227_v45  ;;  %v1636_v36 = vsel %vm3366_vm2, %v1631_v31, %v1635_v32  ;;  %v1738_v45 = vunpack.c.l.b16 %v1622_v35  ;;  %v1741_v16 = vunpack.c.l.b16 %v1664_v8  ;;  %v2702_v25 = vor.u32 %v3035_v12, %v2701_v11  ;;  %v2830_v59 = vld [vmem:[%s3266_s8 + $0x44] sm:$0x1] }
  0x71   : > { %v1739_v46 = vunpack.c.l.b16 %v1636_v36  ;;  %v2774_v26 = vor.u32 %v3047_v14, %v2773_v13  ;;  %v1672_v28 = vor.u32 %v1671_v18, %v1668_v17  ;;  %v1675_v31 = vshll.u32 %v2824_v19, 16  ;;  %v2709_v19 = vld [vmem:[%s3266_s8 + $0x38] sm:$0xf] }
  0x72   : > { %v1689_v33 = vshll.u32 %v2826_v24, 16  ;;  %v1694_v40 = vshrl.u32 %v2827_v38, 16  ;;  %v1697_v41 = vshll.u32 %v2827_v38, 16  ;;  %v1708_v44 = vshrl.u32 %v2829_v39, 16 }
  0x73   : > { %v1746_v57 = vpack.c.b16 %v1739_v46, %v1738_v45  ;;  %v1673_v34 = vrot.slane %v1672_v28, 4  ;;  %v1677_v35 = vrot.slane %v1675_v31, 5  ;;  %v1711_v45 = vshll.u32 %v2829_v39, 16  ;;  %v2705_v46 = vld [vmem:[%s3266_s8 + $0x28] sm:$0xf] }
  0x74   : > { %v1691_v37 = vrot.slane %v1689_v33, 5  ;;  %v1696_v52 = vrot.slane %v1694_v40, 4  ;;  %v1699_v53 = vrot.slane %v1697_v41, 5  ;;  %v2706_v60 = vor.u32 %v3036_v47, %v2705_v46  ;;  %v3069_v28 = vld [vmem:[%s3266_s8 + $0x10c] sm:$0xf0] }
  0x75   : > { %v1678_v42 = vsel %vm3366_vm2, %v1673_v34, %v1677_v35  ;;  %v2778_v61 = vor.u32 %v3048_v49, %v2777_v48  ;;  %v1703_v3 = vshll.u32 %v2828_v54, 16  ;;  %v1717_v5 = vshll.u32 %v2830_v59, 16 }
  0x76   : > { %v1742_v50 = vunpack.c.l.b16 %v1678_v42  ;;  %v1700_v63 = vor.u32 %v1699_v53, %v1696_v52 }
  0x77   : > { %v1705_v8 = vrot.slane %v1703_v3, 5 }
  0x78   : > { %v1701_v7 = vrot.slane %v1700_v63, 4 }
  0x7c   : > { %784 = vmatmul.bf16.gmra.mxu2 %v708_v20  ;;  %v1682_v20 = vrot.slane %v1680_v9, 4 }
  0x7d   : > { %921 = vmatmul.bf16.gmra.mxu3 %v2502_v21  ;;  %v1685_v21 = vrot.slane %v1683_v10, 5  ;;  %v1719_v10 = vrot.slane %v1717_v5, 5 }
  0x7e   : > { %1058 = vmatmul.bf16.gmra.mxu0 %v2574_v22  ;;  %v2925_v22 = vld [vmem:[%s3266_s8 + $0xe8] sm:$0xf] }
  0x7f   : > { %v2926_v29 = vor.u32 %v3067_v23, %v2925_v22  ;;  %v1686_v32 = vor.u32 %v1685_v21, %v1682_v20  ;;  %v3037_v20 = vld [vmem:[%s3266_s8 + $0x3c] sm:$0xf0]  ;;  %v3049_v22 = vld [vmem:[%s3266_s8 + $0x84] sm:$0xf0] }
  0x80   : > { %1304 = vmatmul.bf16.gmra.mxu1 %v1228_v27  ;;  %v1747_v27 = vpack.c.b16 %v1741_v16, %v1740_v15  ;;  %v1706_v16 = vsel %vm3366_vm2, %v1701_v7, %v1705_v8  ;;  %v2781_v21 = vld [vmem:[%s3266_s8 + $0x80] sm:$0xf]  ;;  %v2710_v31 = vor.u32 %v3037_v20, %v2709_v19 }
  0x81   : > { %v1687_v36 = vrot.slane %v1686_v32, 4  ;;  %v1744_v23 = vunpack.c.l.b16 %v1706_v16  ;;  %v2782_v32 = vor.u32 %v3049_v22, %v2781_v21 }
  0x83   : > { %v1692_v43 = vsel %vm3366_vm2, %v1687_v36, %v1691_v37 }
  0x84   : > { %v1743_v51 = vunpack.c.l.b16 %v1692_v43 }
  0x86   : > { %v1748_v62 = vpack.c.b16 %v1743_v51, %v1742_v50 }
  0x8c   : > { %1427 = vmatmul.bf16.vlgmr.msra.gmra.mxu2 %v2698_v55  ;;  %v1710_v55 = vrot.slane %v1708_v44, 4 }
  0x8d   : > { %1564 = vmatmul.bf16.vlgmr.msra.gmra.mxu3 %v2770_v56  ;;  %v1713_v56 = vrot.slane %v1711_v45, 5 }
  0x8e   : > { %1810 = vmatmul.bf16.vlgmr.msra.gmra.mxu0 %v1746_v57  ;;  %v2929_v57 = vld [vmem:[%s3266_s8 + $0xf8] sm:$0xf] }
  0x8f   : > { %v1714_v4 = vor.u32 %v1713_v56, %v1710_v55 }
  0x90   : > { %2107 = vmatmul.bf16.vlgmr.msra.gmra.mxu1 %v2922_v58  ;;  %v3068_v58 = vld [vmem:[%s3266_s8 + $0xfc] sm:$0xf0] }
  0x91   : > { %v2930_v2 = vor.u32 %v3068_v58, %v2929_v57  ;;  %v1715_v9 = vrot.slane %v1714_v4, 4 }
  0x93   : > { %v1720_v17 = vsel %vm3366_vm2, %v1715_v9, %v1719_v10 }
  0x94   : > { %v1745_v24 = vunpack.c.l.b16 %v1720_v17 }
  0x96   : > { %v1749_v33 = vpack.c.b16 %v1745_v24, %v1744_v23 }
  0x9c   : > { %1432 = vmatmul.bf16.gmra.mxu2 %v2702_v25 }
  0x9d   : > { %1569 = vmatmul.bf16.gmra.mxu3 %v2774_v26 }
  0x9e   : > { %1815 = vmatmul.bf16.gmra.mxu0 %v1747_v27  ;;  %v2933_v27 = vld [vmem:[%s3266_s8 + $0x108] sm:$0xf]  ;;  %s3118_s8 = smul.u32 80, %s3813_s18 }
  0x9f   : > { %v2934_v30 = vor.u32 %v3069_v28, %v2933_v27 }
  0xa0   : > { %2112 = vmatmul.bf16.gmra.mxu1 %v2926_v29  ;;  %s3652_s27 = scalar_lea.vmem %s3798_s4, %s3118_s8 }
  0xa9   : > { %v428_v0 = vpop.f32.mrf.mxu0 }
  0xab   : > { %v529_v1 = vpop.f32.mrf.mxu1 }
  0xac   : > { %v530_v6 = vadd.f32 %v529_v1, %v428_v0  ;;  %1437 = vmatmul.bf16.gmra.mxu2 %v2706_v60 }
  0xad   : > { %1574 = vmatmul.bf16.gmra.mxu3 %v2778_v61 }
  0xae   : > { %1820 = vmatmul.bf16.gmra.mxu0 %v1748_v62 }
  0xaf   : > { %v438_v11 = vpop.f32.mrf.mxu2 }
  0xb0   : > { %2117 = vmatmul.bf16.gmra.mxu1 %v2930_v2  ;;  %v539_v12 = vpop.f32.mrf.mxu3 }
  0xb1   : > { %v3614_v13 = vadd.f32 %v539_v12, %v438_v11  ;;  %v430_v14 = vpop.f32.mrf.mxu0 }
  0xb3   : > { %v531_v15 = vpop.f32.mrf.mxu1 }
  0xb4   : > { %v532_v18 = vadd.f32 %v531_v15, %v430_v14 }
  0xb7   : > { %v440_v25 = vpop.f32.mrf.mxu2 }
  0xb8   : > { %v541_v26 = vpop.f32.mrf.mxu3 }
  0xb9   : > { %v3626_v29 = vadd.f32 %v541_v26, %v440_v25  ;;  %v433_v34 = vpop.f32.mrf.mxu0 }
  0xbb   : > { %v534_v35 = vpop.f32.mrf.mxu1 }
  0xbc   : > { %v535_v36 = vadd.f32 %v534_v35, %v433_v34  ;;  %1442 = vmatmul.bf16.gmra.mxu2 %v2710_v31  ;;  %v3169_v31 = vmov 0  }
  0xbd   : > { %1579 = vmatmul.bf16.gmra.mxu3 %v2782_v32  ;;  %272 = vst [vmem:[%s3652_s27] sm:$0xf] %v3169_v31 }
  0xbe   : > { %1825 = vmatmul.bf16.gmra.mxu0 %v1749_v33  ;;  %273 = vst [vmem:[%s3652_s27 + $0x4] sm:$0x1] %v3169_v31 }
  0xbf   : > { %v443_v37 = vpop.f32.mrf.mxu2  ;;  %274 = vst [vmem:[%s3652_s27 + $0x8] sm:$0xf] %v3169_v31 }
  0xc0   : > { %2122 = vmatmul.bf16.gmra.mxu1 %v2934_v30  ;;  %v544_v38 = vpop.f32.mrf.mxu3  ;;  %275 = vst [vmem:[%s3652_s27 + $0xc] sm:$0x1] %v3169_v31 }
  0xc1   : > { %v3628_v39 = vadd.f32 %v544_v38, %v443_v37  ;;  %v435_v40 = vpop.f32.mrf.mxu0  ;;  %276 = vst [vmem:[%s3652_s27 + $0x10] sm:$0xf] %v3169_v31 }
  0xc2   : > { %277 = vst [vmem:[%s3652_s27 + $0x14] sm:$0x1] %v3169_v31 }
  0xc3   : > { %v536_v41 = vpop.f32.mrf.mxu1  ;;  %278 = vst [vmem:[%s3652_s27 + $0x18] sm:$0xf] %v3169_v31 }
  0xc4   : > { %v537_v42 = vadd.f32 %v536_v41, %v435_v40  ;;  %279 = vst [vmem:[%s3652_s27 + $0x1c] sm:$0x1] %v3169_v31 }
  0xc5   : > { %290 = vst [vmem:[%s3652_s27 + $0x48] sm:$0xf] %v3169_v31 }
  0xc6   : > { %291 = vst [vmem:[%s3652_s27 + $0x4c] sm:$0x1] %v3169_v31 }
  0xc7   : > { %v445_v43 = vpop.f32.mrf.mxu2  ;;  %280 = vst [vmem:[%s3652_s27 + $0x20] sm:$0xf] %v3169_v31 }
  0xc8   : > { %v546_v44 = vpop.f32.mrf.mxu3  ;;  %281 = vst [vmem:[%s3652_s27 + $0x24] sm:$0x1] %v3169_v31 }
  0xc9   : > { %v3630_v45 = vadd.f32 %v546_v44, %v445_v43  ;;  %282 = vst [vmem:[%s3652_s27 + $0x28] sm:$0xf] %v3169_v31 }
  0xca   : > { %283 = vst [vmem:[%s3652_s27 + $0x2c] sm:$0x1] %v3169_v31 }
  0xcb   : > { %v1044_v46 = vpop.f32.mrf.mxu0  ;;  %284 = vst [vmem:[%s3652_s27 + $0x30] sm:$0xf] %v3169_v31 }
  0xcc   : > { %285 = vst [vmem:[%s3652_s27 + $0x34] sm:$0x1] %v3169_v31 }
  0xcd   : > { %v1290_v47 = vpop.f32.mrf.mxu1  ;;  %286 = vst [vmem:[%s3652_s27 + $0x38] sm:$0xf] %v3169_v31 }
  0xce   : > { %287 = vst [vmem:[%s3652_s27 + $0x3c] sm:$0x1] %v3169_v31 }
  0xcf   : > { %v770_v48 = vpop.f32.mrf.mxu2  ;;  %288 = vst [vmem:[%s3652_s27 + $0x40] sm:$0xf] %v3169_v31 }
  0xd0   : > { %v907_v49 = vpop.f32.mrf.mxu3  ;;  %v790_v50 = vadd.f32 %v770_v48, %v530_v6  ;;  %289 = vst [vmem:[%s3652_s27 + $0x44] sm:$0x1] %v3169_v31 }
  0xd2   : > { %v927_v51 = vadd.f32 %v907_v49, %v790_v50 }
  0xd3   : > { %v1046_v52 = vpop.f32.mrf.mxu0 }
  0xd4   : > { %v1064_v54 = vadd.f32 %v1044_v46, %v927_v51 }
  0xd5   : > { %v1292_v53 = vpop.f32.mrf.mxu1 }
  0xd6   : > { %v3632_v55 = vadd.f32 %v1290_v47, %v1064_v54 }
  0xd7   : > { %v772_v56 = vpop.f32.mrf.mxu2 }
  0xd8   : > { %v909_v57 = vpop.f32.mrf.mxu3  ;;  %v791_v58 = vadd.f32 %v772_v56, %v532_v18 }
  0xda   : > { %v928_v59 = vadd.f32 %v909_v57, %v791_v58 }
  0xdb   : > { %v1049_v60 = vpop.f32.mrf.mxu0 }
  0xdc   : > { %v1065_v62 = vadd.f32 %v1046_v52, %v928_v59 }
  0xdd   : > { %v1295_v61 = vpop.f32.mrf.mxu1 }
  0xde   : > { %v3634_v63 = vadd.f32 %v1292_v53, %v1065_v62 }
  0xdf   : > { %v775_v0 = vpop.f32.mrf.mxu2 }
  0xe0   : > { %v912_v1 = vpop.f32.mrf.mxu3  ;;  %v792_v2 = vadd.f32 %v775_v0, %v535_v36 }
  0xe2   : > { %v929_v3 = vadd.f32 %v912_v1, %v792_v2 }
  0xe3   : > { %v1051_v4 = vpop.f32.mrf.mxu0 }
  0xe4   : > { %v1066_v6 = vadd.f32 %v1049_v60, %v929_v3 }
  0xe5   : > { %v1297_v5 = vpop.f32.mrf.mxu1 }
  0xe6   : > { %v3636_v7 = vadd.f32 %v1295_v61, %v1066_v6 }
  0xe7   : > { %v777_v8 = vpop.f32.mrf.mxu2 }
  0xe8   : > { %v914_v9 = vpop.f32.mrf.mxu3  ;;  %v793_v10 = vadd.f32 %v777_v8, %v537_v42 }
  0xea   : > { %v930_v11 = vadd.f32 %v914_v9, %v793_v10 }
  0xeb   : > { %v1054_v12 = vpop.f32.mrf.mxu0 }
  0xec   : > { %v1067_v15 = vadd.f32 %v1051_v4, %v930_v11 }
  0xed   : > { %v1300_v14 = vpop.f32.mrf.mxu1 }
  0xee   : > { %v3639_v16 = vadd.f32 %v1297_v5, %v1067_v15  ;;  %v2881_v15 = vld [vmem:[%s3652_s27 + $0xc] sm:$0x1] }
  0xef   : > { %v780_v17 = vpop.f32.mrf.mxu2 }
  0xf0   : > { %v917_v18 = vpop.f32.mrf.mxu3  ;;  %v794_v19 = vadd.f32 %v780_v17, %v3614_v13 }
  0xf2   : > { %v931_v20 = vadd.f32 %v917_v18, %v794_v19 }
  0xf3   : > { %v1056_v21 = vpop.f32.mrf.mxu0 }
  0xf4   : > { %v1068_v23 = vadd.f32 %v1054_v12, %v931_v20  ;;  %v2879_v12 = vld [vmem:[%s3652_s27 + $0x8] sm:$0xf] }
  0xf5   : > { %v1302_v22 = vpop.f32.mrf.mxu1 }
  0xf6   : > { %v3646_v24 = vadd.f32 %v1300_v14, %v1068_v23 }
  0xf7   : > { %v782_v25 = vpop.f32.mrf.mxu2 }
  0xf8   : > { %v919_v26 = vpop.f32.mrf.mxu3  ;;  %v795_v27 = vadd.f32 %v782_v25, %v3626_v29 }
  0xfa   : > { %v932_v13 = vadd.f32 %v919_v26, %v795_v27 }
  0xfb   : > { %v1059_v28 = vpop.f32.mrf.mxu0 }
  0xfc   : > { %v1069_v29 = vadd.f32 %v1056_v21, %v932_v13 }
  0xfd   : > { %v1305_v32 = vpop.f32.mrf.mxu1 }
  0xfe   : > { %v3658_v33 = vadd.f32 %v1302_v22, %v1069_v29 }
  0xff   : > { %v785_v34 = vpop.f32.mrf.mxu2 }
 0x100   : > { %v922_v35 = vpop.f32.mrf.mxu3  ;;  %v796_v30 = vadd.f32 %v785_v34, %v3628_v39  ;;  %v2883_v34 = vld [vmem:[%s3652_s27 + $0x10] sm:$0xf] }
 0x102   : > { %v933_v36 = vadd.f32 %v922_v35, %v796_v30  ;;  %v2885_v35 = vld [vmem:[%s3652_s27 + $0x14] sm:$0x1] }
 0x103   : > { %v1061_v37 = vpop.f32.mrf.mxu0 }
 0x104   : > { %v1070_v40 = vadd.f32 %v1059_v28, %v933_v36 }
 0x105   : > { %v1307_v38 = vpop.f32.mrf.mxu1 }
 0x106   : > { %v3669_v41 = vadd.f32 %v1305_v32, %v1070_v40 }
 0x107   : > { %v787_v39 = vpop.f32.mrf.mxu2 }
 0x108   : > { %v924_v42 = vpop.f32.mrf.mxu3  ;;  %v797_v43 = vadd.f32 %v787_v39, %v3630_v45  ;;  %v3687_v45 = vld [vmem:[%s3796_s2] ss:$0 sm:$0xff] }
 0x10a   : > { %v934_v44 = vadd.f32 %v924_v42, %v797_v43 }
 0x10b   : > { %v1811_v46 = vpop.f32.mrf.mxu0 }
 0x10c   : > { %v1071_v48 = vadd.f32 %v1061_v37, %v934_v44 }
 0x10d   : > { %v2108_v47 = vpop.f32.mrf.mxu1 }
 0x10e   : > { %v3680_v49 = vadd.f32 %v1307_v38, %v1071_v48 }
 0x10f   : > { %v1428_v50 = vpop.f32.mrf.mxu2 }
 0x110   : > { %v1565_v51 = vpop.f32.mrf.mxu3  ;;  %v1448_v52 = vadd.f32 %v1428_v50, %v3632_v55 }
 0x112   : > { %v1585_v53 = vadd.f32 %v1565_v51, %v1448_v52 }
 0x113   : > { %v1813_v54 = vpop.f32.mrf.mxu0 }
 0x114   : > { %v1831_v57 = vadd.f32 %v1811_v46, %v1585_v53 }
 0x115   : > { %v2110_v56 = vpop.f32.mrf.mxu1 }
 0x116   : > { %v3081_v58 = vpack.c.bf16 %v2110_v56, %v2108_v47  ;;  %v1843_v59 = vadd.f32 %v3687_v45, %v1831_v57  ;;  %v2889_v56 = vld [vmem:[%s3652_s27 + $0x1c] sm:$0x1] }
 0x117   : > { %v1430_v55 = vpop.f32.mrf.mxu2 }
 0x118   : > { %3082 = vst [vmem:[%s3692_s9] sm:$0xff] %v3081_v58   ;;  %v1567_v60 = vpop.f32.mrf.mxu3  ;;  %v1851_v61 = vmax.f32 %v1843_v59, 0.0  ;;  %v1449_v62 = vadd.f32 %v1430_v55, %v3634_v63 }
 0x11a   : > { %v1859_v0 = vpack.c.bf16 %v1851_v61, %v1851_v61  ;;  %v1586_v1 = vadd.f32 %v1567_v60, %v1449_v62 }
 0x11b   : > { %v1816_v2 = vpop.f32.mrf.mxu0 }
 0x11c   : > { %v1868_v4 = vshrl.u32 %v1859_v0, 16  ;;  %v1832_v5 = vadd.f32 %v1813_v54, %v1586_v1  ;;  %v1871_v8 = vshll.u32 %v1859_v0, 16  ;;  %v2887_v54 = vld [vmem:[%s3652_s27 + $0x18] sm:$0xf] }
 0x11d   : > { %v2113_v3 = vpop.f32.mrf.mxu1 }
 0x11e   : > { %v1870_v6 = vrot.slane %v1868_v4, 7  ;;  %v1844_v9 = vadd.f32 %v3687_v45, %v1832_v5 }
 0x11f   : > { %v1433_v63 = vpop.f32.mrf.mxu2 }
 0x120   : > { %v1570_v11 = vpop.f32.mrf.mxu3  ;;  %v1873_v17 = vor.u32 %v1871_v8, %v1870_v6  ;;  %v1874_v18 = vrot.slane %v1870_v6, 4  ;;  %v1852_v19 = vmax.f32 %v1844_v9, 0.0  ;;  %v1450_v20 = vadd.f32 %v1433_v63, %v3636_v7 }
 0x122   : > { %v1860_v21 = vpack.c.bf16 %v1852_v19, %v1852_v19  ;;  %v1587_v22 = vadd.f32 %v1570_v11, %v1450_v20  ;;  %v1953_v23 = vsel %vm3698_vm7, %v1873_v17, %v2879_v12  ;;  %v1959_v25 = vsel %vm3703_vm8, %v1874_v18, %v2881_v15  ;;  %v2891_v11 = vld [vmem:[%s3652_s27 + $0x20] sm:$0xf]  ;;  %v2893_v12 = vld [vmem:[%s3652_s27 + $0x24] sm:$0x1] }
 0x123   : > { %v1818_v26 = vpop.f32.mrf.mxu0  ;;  %2880 = vst [vmem:[%s3652_s27 + $0x8] sm:$0xf] %v1953_v23 }
 0x124   : > { %v1876_v13 = vshrl.u32 %v1860_v21, 16  ;;  %v1833_v28 = vadd.f32 %v1816_v2, %v1587_v22  ;;  %2882 = vst [vmem:[%s3652_s27 + $0xc] sm:$0x1] %v1959_v25  ;;  %v1879_v7 = vshll.u32 %v1860_v21, 16 }
 0x125   : > { %v2115_v27 = vpop.f32.mrf.mxu1 }
 0x126   : > { %v3086_v31 = vpack.c.bf16 %v2115_v27, %v2113_v3  ;;  %v1878_v32 = vrot.slane %v1876_v13, 7  ;;  %v1845_v29 = vadd.f32 %v3687_v45, %v1833_v28 }
 0x127   : > { %v1435_v30 = vpop.f32.mrf.mxu2 }
 0x128   : > { %3098 = vst [vmem:[%s3692_s9 + $0x8] sm:$0xff] %v3086_v31   ;;  %v1572_v36 = vpop.f32.mrf.mxu3  ;;  %v1881_v37 = vor.u32 %v1879_v7, %v1878_v32  ;;  %v1882_v38 = vrot.slane %v1878_v32, 4  ;;  %v1853_v40 = vmax.f32 %v1845_v29, 0.0  ;;  %v1451_v39 = vadd.f32 %v1435_v30, %v3639_v16  ;;  %v2897_v29 = vld [vmem:[%s3652_s27 + $0x2c] sm:$0x1] }
 0x12a   : > { %v1861_v42 = vpack.c.bf16 %v1853_v40, %v1853_v40  ;;  %v1962_v43 = vsel %vm3698_vm7, %v1881_v37, %v2883_v34  ;;  %v1965_v44 = vsel %vm3703_vm8, %v1882_v38, %v2885_v35  ;;  %v1588_v46 = vadd.f32 %v1572_v36, %v1451_v39 }
 0x12b   : > { %2884 = vst [vmem:[%s3652_s27 + $0x10] sm:$0xf] %v1962_v43  ;;  %v1821_v51 = vpop.f32.mrf.mxu0 }
 0x12c   : > { %v1884_v48 = vshrl.u32 %v1861_v42, 16  ;;  %2886 = vst [vmem:[%s3652_s27 + $0x14] sm:$0x1] %v1965_v44  ;;  %v1834_v50 = vadd.f32 %v1818_v26, %v1588_v46  ;;  %v1887_v53 = vshll.u32 %v1861_v42, 16 }
 0x12d   : > { %v2118_v47 = vpop.f32.mrf.mxu1 }
 0x12e   : > { %v1886_v52 = vrot.slane %v1884_v48, 7  ;;  %v1846_v16 = vadd.f32 %v3687_v45, %v1834_v50 }
 0x12f   : > { %v1438_v57 = vpop.f32.mrf.mxu2 }
 0x130   : > { %v1575_v58 = vpop.f32.mrf.mxu3  ;;  %v1889_v59 = vor.u32 %v1887_v53, %v1886_v52  ;;  %v1890_v55 = vrot.slane %v1886_v52, 4  ;;  %v1854_v60 = vmax.f32 %v1846_v16, 0.0  ;;  %v1452_v61 = vadd.f32 %v1438_v57, %v3646_v24  ;;  %v2899_v53 = vld [vmem:[%s3652_s27 + $0x30] sm:$0xf]  ;;  %v2901_v16 = vld [vmem:[%s3652_s27 + $0x34] sm:$0x1] }
 0x132   : > { %v1968_v62 = vsel %vm3698_vm7, %v1889_v59, %v2887_v54  ;;  %v1971_v0 = vsel %vm3703_vm8, %v1890_v55, %v2889_v56  ;;  %v1862_v1 = vpack.c.bf16 %v1854_v60, %v1854_v60  ;;  %v1589_v2 = vadd.f32 %v1575_v58, %v1452_v61 }
 0x133   : > { %2888 = vst [vmem:[%s3652_s27 + $0x18] sm:$0xf] %v1968_v62  ;;  %v1823_v63 = vpop.f32.mrf.mxu0 }
 0x134   : > { %2890 = vst [vmem:[%s3652_s27 + $0x1c] sm:$0x1] %v1971_v0  ;;  %v1892_v4 = vshrl.u32 %v1862_v1, 16  ;;  %v1835_v5 = vadd.f32 %v1821_v51, %v1589_v2  ;;  %v1895_v9 = vshll.u32 %v1862_v1, 16 }
 0x135   : > { %v2120_v3 = vpop.f32.mrf.mxu1 }
 0x136   : > { %v3091_v6 = vpack.c.bf16 %v2120_v3, %v2118_v47  ;;  %v1894_v8 = vrot.slane %v1892_v4, 7  ;;  %v1847_v24 = vadd.f32 %v3687_v45, %v1835_v5 }
 0x137   : > { %v1440_v15 = vpop.f32.mrf.mxu2 }
 0x138   : > { %3099 = vst [vmem:[%s3692_s9 + $0x10] sm:$0xff] %v3091_v6   ;;  %v1577_v17 = vpop.f32.mrf.mxu3  ;;  %v1897_v18 = vor.u32 %v1895_v9, %v1894_v8  ;;  %v1898_v19 = vrot.slane %v1894_v8, 4  ;;  %v1855_v20 = vmax.f32 %v1847_v24, 0.0  ;;  %v1453_v21 = vadd.f32 %v1440_v15, %v3658_v33  ;;  %v2895_v33 = vld [vmem:[%s3652_s27 + $0x28] sm:$0xf] }
 0x139   : > { %v2903_v6 = vld [vmem:[%s3652_s27 + $0x38] sm:$0xf]  ;;  %v2905_v8 = vld [vmem:[%s3652_s27 + $0x3c] sm:$0x1] }
 0x13a   : > { %v1974_v22 = vsel %vm3698_vm7, %v1897_v18, %v2891_v11  ;;  %v1977_v23 = vsel %vm3703_vm8, %v1898_v19, %v2893_v12  ;;  %v1863_v25 = vpack.c.bf16 %v1855_v20, %v1855_v20  ;;  %v1590_v26 = vadd.f32 %v1577_v17, %v1453_v21  ;;  %v2909_v20 = vld [vmem:[%s3652_s27 + $0x44] sm:$0x1] }
 0x13b   : > { %2892 = vst [vmem:[%s3652_s27 + $0x20] sm:$0xf] %v1974_v22  ;;  %v1826_v40 = vpop.f32.mrf.mxu0 }
 0x13c   : > { %2894 = vst [vmem:[%s3652_s27 + $0x24] sm:$0x1] %v1977_v23  ;;  %v1900_v13 = vshrl.u32 %v1863_v25, 16  ;;  %v1836_v28 = vadd.f32 %v1823_v63, %v1590_v26  ;;  %v1903_v32 = vshll.u32 %v1863_v25, 16 }
 0x13d   : > { %v2123_v27 = vpop.f32.mrf.mxu1 }
 0x13e   : > { %v1902_v31 = vrot.slane %v1900_v13, 7  ;;  %v1848_v7 = vadd.f32 %v3687_v45, %v1836_v28 }
 0x13f   : > { %v1443_v34 = vpop.f32.mrf.mxu2 }
 0x140   : > { %v1580_v35 = vpop.f32.mrf.mxu3  ;;  %v1905_v30 = vor.u32 %v1903_v32, %v1902_v31  ;;  %v1906_v36 = vrot.slane %v1902_v31, 4  ;;  %v1856_v37 = vmax.f32 %v1848_v7, 0.0  ;;  %v1454_v38 = vadd.f32 %v1443_v34, %v3669_v41 }
 0x142   : > { %v1980_v39 = vsel %vm3698_vm7, %v1905_v30, %v2895_v33  ;;  %v1983_v42 = vsel %vm3703_vm8, %v1906_v36, %v2897_v29  ;;  %v1864_v43 = vpack.c.bf16 %v1856_v37, %v1856_v37  ;;  %v1591_v44 = vadd.f32 %v1580_v35, %v1454_v38 }
 0x143   : > { %2896 = vst [vmem:[%s3652_s27 + $0x28] sm:$0xf] %v1980_v39  ;;  %v1828_v1 = vpop.f32.mrf.mxu0 }
 0x144   : > { %2898 = vst [vmem:[%s3652_s27 + $0x2c] sm:$0x1] %v1983_v42  ;;  %v1908_v47 = vshrl.u32 %v1864_v43, 16  ;;  %v1837_v48 = vadd.f32 %v1826_v40, %v1591_v44  ;;  %v1911_v41 = vshll.u32 %v1864_v43, 16 }
 0x145   : > { %v2125_v46 = vpop.f32.mrf.mxu1 }
 0x146   : > { %v3096_v50 = vpack.c.bf16 %v2125_v46, %v2123_v27  ;;  %v1910_v51 = vrot.slane %v1908_v47, 7  ;;  %v1849_v52 = vadd.f32 %v3687_v45, %v1837_v48 }
 0x147   : > { %v1445_v54 = vpop.f32.mrf.mxu2 }
 0x148   : > { %3100 = vst [vmem:[%s3692_s9 + $0x18] sm:$0xff] %v3096_v50   ;;  %v1913_v56 = vor.u32 %v1911_v41, %v1910_v51  ;;  %v1914_v57 = vrot.slane %v1910_v51, 4  ;;  %v1857_v58 = vmax.f32 %v1849_v52, 0.0  ;;  %v1455_v59 = vadd.f32 %v1445_v54, %v3680_v49  ;;  %v1582_v55 = vpop.f32.mrf.mxu3 }
 0x14a   : > { %v1986_v60 = vsel %vm3698_vm7, %v1913_v56, %v2899_v53  ;;  %v1989_v61 = vsel %vm3703_vm8, %v1914_v57, %v2901_v16  ;;  %v1865_v62 = vpack.c.bf16 %v1857_v58, %v1857_v58  ;;  %v1592_v0 = vadd.f32 %v1582_v55, %v1455_v59 }
 0x14b   : > { %2900 = vst [vmem:[%s3652_s27 + $0x30] sm:$0xf] %v1986_v60 }
 0x14c   : > { %2902 = vst [vmem:[%s3652_s27 + $0x34] sm:$0x1] %v1989_v61  ;;  %v1916_v2 = vshrl.u32 %v1865_v62, 16  ;;  %v1838_v3 = vadd.f32 %v1828_v1, %v1592_v0  ;;  %v1919_v5 = vshll.u32 %v1865_v62, 16 }
 0x14e   : > { %v1918_v4 = vrot.slane %v1916_v2, 7  ;;  %v1850_v49 = vadd.f32 %v3687_v45, %v1838_v3  ;;  %v2907_v45 = vld [vmem:[%s3652_s27 + $0x40] sm:$0xf] }
 0x150   : > { %v1921_v9 = vor.u32 %v1919_v5, %v1918_v4  ;;  %v1922_v24 = vrot.slane %v1918_v4, 4  ;;  %v1858_v63 = vmax.f32 %v1850_v49, 0.0 }
 0x152   : > { %v1992_v11 = vsel %vm3698_vm7, %v1921_v9, %v2903_v6  ;;  %v1995_v12 = vsel %vm3703_vm8, %v1922_v24, %v2905_v8  ;;  %v1866_v15 = vpack.c.bf16 %v1858_v63, %v1858_v63 }
 0x153   : > { %2904 = vst [vmem:[%s3652_s27 + $0x38] sm:$0xf] %v1992_v11 }
 0x154   : > { %2906 = vst [vmem:[%s3652_s27 + $0x3c] sm:$0x1] %v1995_v12  ;;  %v1924_v17 = vshrl.u32 %v1866_v15, 16  ;;  %v1927_v19 = vshll.u32 %v1866_v15, 16 }
 0x156   : > { %v1926_v18 = vrot.slane %v1924_v17, 7 }
 0x158   : > { %v1929_v21 = vor.u32 %v1927_v19, %v1926_v18  ;;  %v1930_v22 = vrot.slane %v1926_v18, 4 }
 0x15a   : > { %v1998_v23 = vsel %vm3698_vm7, %v1929_v21, %v2907_v45  ;;  %v2001_v25 = vsel %vm3703_vm8, %v1930_v22, %v2909_v20 }
 0x15b   : > { %2908 = vst [vmem:[%s3652_s27 + $0x40] sm:$0xf] %v1998_v23 }
 0x15c   : > { %2910 = vst [vmem:[%s3652_s27 + $0x44] sm:$0x1] %v2001_v25 }
 0x15d PF: > { %s16_s20 = sadd.s32 1, %s3167_s20   ;;  %s3806_s18 = smov %s3163_s19 }
 0x15e   : > { %p13_p6 = scmp.ge.s32.totalorder %s16_s20, 4   ;;  %s3807_s19 = smov %s3809_s21 }
 0x160   :  { %15 = sbr.rel (!%p13_p6) target bundleno = 2 (0x2), region = 97 }

// kernel: basic_block_forward.3
= control target key start
LH: loop header
LB: loop body
LE: loop exit
PB: predicated region body
PF: predicated region fallthrough
CT: control target
= control target key end

     0   :  { %s2780_s12 = smov 0   ;;  %s2782_s13 = smov 0   ;;  %s3424_s0 = inlined_call_operand.vmem [shape: bf16[2,10,10,128], index: 0, kind: input, shape index: {}]   ;;  %s3425_s1 = inlined_call_operand.vmem [shape: bf16[9,128,128], index: 1, kind: input, shape index: {}]   ;;  %s3426_s2 = inlined_call_operand.vmem [shape: bf16[2,8,8,128], index: 2, kind: input, shape index: {}]   ;;  %s3427_s3 = inlined_call_operand.vmem [shape: f32[2,8,8,128], index: 3, kind: output, shape index: {}]  }
   0x1   :  { %s2784_s14 = smov 0  }
   0x2 LB: > { %s25_s15 = sadd.s32 1, %s2754_s13  ;;  %p2030_p0 = scmp.ge.s32.totalorder %s2758_s14, 1  ;;  %s2758_s14 = sphi %s2784_s14, %s13_s14   ;;  %s2754_s13 = sphi %s2782_s13, %s3433_s13   ;;  %s2750_s12 = sphi %s2780_s12, %s3432_s12  }
   0x3   : > { %p27_p1 = scmp.ge.s32.totalorder %s25_s15, 2  ;;  %p168_p2 = scmp.lt.s32.totalorder %s2758_s14, 3 }
   0x5   : > { %s3435_s15 = smov (%p27_p1, %s25_s15), 0  ;;  %p169_p3 = pnand %p2030_p0, %p168_p2 }
   0x6   : > { %p205_p4 = scmp.lt.s32.totalorder (!%p169_p3), %s2750_s12, 1 }
   0x7   : > { %172 = sbr.rel (%p169_p3) target bundleno = 333 (0x14d), region = 32 }
   0xc   : > { %v2611_v0 = vld [vmem:[%s3425_s1 + $0x78] sm:$0xff]  ;;  %v2610_v2 = vld [vmem:[%s3425_s1 + $0x70] sm:$0xff]  ;;  %s3437_s12 = smov (!%p205_p4, %s2750_s12), 1  ;;  %v2609_v6 = vld [vmem:[%s3425_s1 + $0x68] sm:$0xff]  ;;  %vm266_vm0 = vsmask.f32 3328 }
   0xd   : > { %v2619_v1 = vld [vmem:[%s3425_s1 + $0xb8] sm:$0xff]  ;;  %2695 = vmatpush.bf16.msra.mxu1 %v2611_v0  ;;  %462 = vmatpush.bf16.msra.mxu0 %v2611_v0  ;;  %v2618_v3 = vld [vmem:[%s3425_s1 + $0xb0] sm:$0xff]  ;;  %s2711_s26 = smul.u32 80, %s3437_s12  ;;  %v2617_v7 = vld [vmem:[%s3425_s1 + $0xa8] sm:$0xff]  ;;  %vm267_vm1 = vsmask.f32 7440 }
   0xe   : > { %732 = vmatpush.bf16.msra.mxu2 %v2619_v1  ;;  %v2631_v4 = vld [vmem:[%s3425_s1 + $0xf8] sm:$0xff]  ;;  %v2630_v5 = vld [vmem:[%s3425_s1 + $0xf0] sm:$0xff]  ;;  %v2608_v11 = vld [vmem:[%s3425_s1 + $0x60] sm:$0xff]  ;;  %vm616_vm2 = vcmask 1042432   ;;  %vm617_vm3 = vcmask 1046532   ;;  %s2591_s7 = sshll.u32 %s3437_s12, 6 }
   0xf   : > { %870 = vmatpush.bf16.msra.mxu3 %v2631_v4  ;;  %s2828_s8 = scalar_lea.vmem %s3424_s0, %s2711_s26  ;;  %v2616_v16 = vld [vmem:[%s3425_s1 + $0xa0] sm:$0xff]  ;;  %v2629_v17 = vld [vmem:[%s3425_s1 + $0xe8] sm:$0xff]  ;;  %v2607_v29 = vld [vmem:[%s3425_s1 + $0x58] sm:$0xff]  ;;  %s3387_s11 = scalar_lea.vmem %s3427_s3, %s2591_s7 }
  0x10   : > { %v238_v8 = vld [vmem:[%s2828_s8 + $0x20] sm:$0xf]  ;;  %v239_v9 = vld [vmem:[%s2828_s8 + $0x28] sm:$0xf]  ;;  %v2833_v10 = vld [vmem:[%s2828_s8 + $0x24] sm:$0x1] }
  0x11   : > { %2696 = vmatpush.bf16.msra.mxu1 %v2610_v2  ;;  %463 = vmatpush.bf16.msra.mxu0 %v2610_v2  ;;  %v2839_v12 = vld [vmem:[%s2828_s8 + $0x2c] sm:$0x1]  ;;  %v326_v13 = vshrl.u32 %v238_v8, 16  ;;  %v329_v14 = vshll.u32 %v238_v8, 16  ;;  %v340_v15 = vshrl.u32 %v239_v9, 16  ;;  %v343_v18 = vshll.u32 %v239_v9, 16  ;;  %vm2866_vm4 = vmor %vm266_vm0, %vm267_vm1 }
  0x12   : > { %733 = vmatpush.bf16.msra.mxu2 %v2618_v3  ;;  %v234_v19 = vld [vmem:[%s2828_s8] sm:$0xf]  ;;  %v335_v22 = vshll.u32 %v2833_v10, 16  ;;  %v235_v24 = vld [vmem:[%s2828_s8 + $0x8] sm:$0xf]  ;;  %v349_v26 = vshll.u32 %v2839_v12, 16  ;;  %vm2875_vm5 = vmor %vm616_vm2, %vm617_vm3 }
  0x13   : > { %871 = vmatpush.bf16.msra.mxu3 %v2630_v5  ;;  %v328_v20 = vrot.slane %v326_v13, 4  ;;  %v331_v21 = vrot.slane %v329_v14, 5  ;;  %v342_v23 = vrot.slane %v340_v15, 4  ;;  %v345_v25 = vrot.slane %v343_v18, 5  ;;  %v258_v27 = vld [vmem:[%s2828_s8 + $0x4] sm:$0x1] }
  0x14   : > { %v259_v28 = vld [vmem:[%s2828_s8 + $0xc] sm:$0x1]  ;;  %v270_v31 = vshrl.u32 %v234_v19, 16  ;;  %v273_v32 = vshll.u32 %v234_v19, 16  ;;  %v2628_v34 = vld [vmem:[%s3425_s1 + $0xe0] sm:$0xff]  ;;  %v279_v35 = vshll.u32 %v258_v27, 16 }
  0x15   : > { %2697 = vmatpush.bf16.msra.mxu1 %v2609_v6  ;;  %464 = vmatpush.bf16.msra.mxu0 %v2609_v6  ;;  %v332_v30 = vor.u32 %v331_v21, %v328_v20  ;;  %v346_v33 = vor.u32 %v345_v25, %v342_v23  ;;  %v284_v36 = vshrl.u32 %v235_v24, 16  ;;  %v287_v37 = vshll.u32 %v235_v24, 16  ;;  %v592_v38 = vld [vmem:[%s2828_s8] sm:$0xe]  ;;  %v593_v43 = vld [vmem:[%s2828_s8 + $0x8] sm:$0xe] }
  0x16   : > { %734 = vmatpush.bf16.msra.mxu2 %v2617_v7  ;;  %v337_v39 = vrot.slane %v335_v22, 5  ;;  %v272_v40 = vrot.slane %v270_v31, 4  ;;  %v275_v41 = vrot.slane %v273_v32, 5  ;;  %v293_v42 = vshll.u32 %v259_v28, 16  ;;  %v2615_v44 = vld [vmem:[%s3425_s1 + $0x98] sm:$0xff]  ;;  %v2606_v60 = vld [vmem:[%s3425_s1 + $0x50] sm:$0xff] }
  0x17   : > { %872 = vmatpush.bf16.msra.mxu3 %v2629_v17  ;;  %v333_v45 = vrot.slane %v332_v30, 4  ;;  %v351_v46 = vrot.slane %v349_v26, 5  ;;  %v286_v47 = vrot.slane %v284_v36, 4  ;;  %v289_v48 = vrot.slane %v287_v37, 5  ;;  %v2627_v56 = vld [vmem:[%s3425_s1 + $0xd8] sm:$0xff]  ;;  %v2614_v0 = vld [vmem:[%s3425_s1 + $0x90] sm:$0xff] }
  0x18   : > { %v347_v50 = vrot.slane %v346_v33, 4  ;;  %v276_v51 = vor.u32 %v275_v41, %v272_v40  ;;  %v2132_v52 = vrot.slane %v592_v38, 9  ;;  %v621_v53 = vrot.slane %v258_v27, 5  ;;  %v240_v59 = vld [vmem:[%s2828_s8 + $0x30] sm:$0xf]  ;;  %v2605_v14 = vld [vmem:[%s3425_s1 + $0x48] sm:$0xff] }
  0x19   : > { %2698 = vmatpush.bf16.msra.mxu1 %v2608_v11  ;;  %465 = vmatpush.bf16.msra.mxu0 %v2608_v11  ;;  %v281_v54 = vrot.slane %v279_v35, 5  ;;  %v290_v55 = vor.u32 %v289_v48, %v286_v47  ;;  %v2133_v58 = vrot.slane %v593_v43, 9  ;;  %v295_v62 = vrot.slane %v293_v42, 5  ;;  %v241_v3 = vld [vmem:[%s2828_s8 + $0x38] sm:$0xf]  ;;  %v2626_v11 = vld [vmem:[%s3425_s1 + $0xd0] sm:$0xff] }
  0x1a   : > { %735 = vmatpush.bf16.msra.mxu2 %v2616_v16  ;;  %v277_v61 = vrot.slane %v276_v51, 4  ;;  %v625_v63 = vrot.slane %v259_v28, 5  ;;  %v338_v1 = vsel %vm2866_vm4, %v333_v45, %v337_v39  ;;  %v352_v4 = vsel %vm2866_vm4, %v347_v50, %v351_v46  ;;  %v236_v7 = vld [vmem:[%s2828_s8 + $0x10] sm:$0xf]  ;;  %v2613_v19 = vld [vmem:[%s3425_s1 + $0x88] sm:$0xff]  ;;  %v2604_v24 = vld [vmem:[%s3425_s1 + $0x40] sm:$0xff] }
  0x1b   : > { %873 = vmatpush.bf16.msra.mxu3 %v2628_v34  ;;  %v291_v2 = vrot.slane %v290_v55, 4  ;;  %v622_v5 = vsel %vm2875_vm5, %v2132_v52, %v621_v53  ;;  %v354_v6 = vshrl.u32 %v240_v59, 16  ;;  %v357_v13 = vshll.u32 %v240_v59, 16  ;;  %v237_v22 = vld [vmem:[%s2828_s8 + $0x18] sm:$0xf]  ;;  %v2625_v31 = vld [vmem:[%s3425_s1 + $0xc8] sm:$0xff] }
  0x1c   : > { %v282_v8 = vsel %vm2866_vm4, %v277_v61, %v281_v54  ;;  %v626_v9 = vsel %vm2875_vm5, %v2133_v58, %v625_v63  ;;  %v2904_v15 = vunpack.c.l.b16 %v338_v1  ;;  %v368_v17 = vshrl.u32 %v241_v3, 16  ;;  %v2922_v32 = vld [vmem:[%s2828_s8 + $0x34] sm:$0x1]  ;;  %v2925_v36 = vld [vmem:[%s2828_s8 + $0x3c] sm:$0x1]  ;;  %v2612_v42 = vld [vmem:[%s3425_s1 + $0x80] sm:$0xff] }
  0x1d   : > { %2699 = vmatpush.bf16.msra.mxu1 %v2607_v29  ;;  %466 = vmatpush.bf16.msra.mxu0 %v2607_v29  ;;  %v296_v16 = vsel %vm2866_vm4, %v291_v2, %v295_v62  ;;  %v403_v18 = vunpack.c.l.b16 %v352_v4  ;;  %v668_v20 = vunpack.c.l.b16 %v622_v5  ;;  %v371_v21 = vshll.u32 %v241_v3, 16  ;;  %v2603_v29 = vld [vmem:[%s3425_s1 + $0x38] sm:$0xff]  ;;  %v2932_v43 = vld [vmem:[%s2828_s8 + $0x14] sm:$0x1]  ;;  %v2214_v62 = vld [vmem:[%s2828_s8 + $0x8] sm:$0xf] }
  0x1e   : > { %736 = vmatpush.bf16.msra.mxu2 %v2615_v44  ;;  %v298_v23 = vshrl.u32 %v236_v7, 16  ;;  %v398_v25 = vunpack.c.l.b16 %v282_v8  ;;  %v669_v26 = vunpack.c.l.b16 %v626_v9  ;;  %v356_v27 = vrot.slane %v354_v6, 4  ;;  %v2935_v44 = vld [vmem:[%s2828_s8 + $0x1c] sm:$0x1]  ;;  %v2620_v63 = vld [vmem:[%s2828_s8 + $0xc] sm:$0xf0] }
  0x1f   : > { %874 = vmatpush.bf16.msra.mxu3 %v2627_v56  ;;  %v301_v28 = vshll.u32 %v236_v7, 16  ;;  %v399_v30 = vunpack.c.l.b16 %v296_v16  ;;  %v359_v33 = vrot.slane %v357_v13, 5  ;;  %v370_v34 = vrot.slane %v368_v17, 4  ;;  %v2639_v45 = vld [vmem:[%s3425_s1 + $0x138] sm:$0xff]  ;;  %v2624_v56 = vld [vmem:[%s3425_s1 + $0xc0] sm:$0xff]  ;;  %v2638_v1 = vld [vmem:[%s3425_s1 + $0x130] sm:$0xff] }
  0x20   : > { %v373_v35 = vrot.slane %v371_v21, 5  ;;  %v300_v37 = vrot.slane %v298_v23, 4  ;;  %v312_v39 = vshrl.u32 %v237_v22, 16  ;;  %v315_v40 = vshll.u32 %v237_v22, 16  ;;  %v2659_v48 = vld [vmem:[%s3425_s1 + $0x1b8] sm:$0xff]  ;;  %v2658_v6 = vld [vmem:[%s3425_s1 + $0x1b0] sm:$0xff] }
  0x21   : > { %2700 = vmatpush.bf16.msra.mxu1 %v2606_v60  ;;  %467 = vmatpush.bf16.msra.mxu0 %v2606_v60  ;;  %v303_v38 = vrot.slane %v301_v28, 5  ;;  %v408_v41 = vpack.c.b16 %v403_v18, %v2904_v15  ;;  %v676_v46 = vpack.c.b16 %v669_v26, %v668_v20  ;;  %v363_v47 = vshll.u32 %v2922_v32, 16  ;;  %v2667_v2 = vld [vmem:[%s3425_s1 + $0x1f8] sm:$0xff]  ;;  %v594_v4 = vld [vmem:[%s2828_s8 + $0x10] sm:$0xe]  ;;  %v2657_v26 = vld [vmem:[%s3425_s1 + $0x1a8] sm:$0xff] }
  0x22   : > { %737 = vmatpush.bf16.msra.mxu2 %v2614_v0  ;;  %v314_v50 = vrot.slane %v312_v39, 4  ;;  %v317_v51 = vrot.slane %v315_v40, 5  ;;  %v406_v52 = vpack.c.b16 %v399_v30, %v398_v25  ;;  %v360_v53 = vor.u32 %v359_v33, %v356_v27  ;;  %v2602_v0 = vld [vmem:[%s3425_s1 + $0x30] sm:$0xff]  ;;  %v595_v5 = vld [vmem:[%s2828_s8 + $0x18] sm:$0xe]  ;;  %v2637_v25 = vld [vmem:[%s3425_s1 + $0x128] sm:$0xff] }
  0x23   : > { %875 = vmatpush.bf16.msra.mxu3 %v2626_v11  ;;  %v374_v54 = vor.u32 %v373_v35, %v370_v34  ;;  %v377_v55 = vshll.u32 %v2925_v36, 16  ;;  %v304_v58 = vor.u32 %v303_v38, %v300_v37  ;;  %v307_v59 = vshll.u32 %v2932_v43, 16  ;;  %v2260_v13 = vld [vmem:[%s2828_s8 + $0x8] sm:$0xf]  ;;  %v2262_v18 = vld [vmem:[%s2828_s8 + $0x10] sm:$0xf] }
  0x24   : > { %v318_v60 = vor.u32 %v317_v51, %v314_v50  ;;  %v321_v61 = vshll.u32 %v2935_v44, 16  ;;  %v365_v3 = vrot.slane %v363_v47, 5  ;;  %v361_v7 = vrot.slane %v360_v53, 4  ;;  %v2600_v37 = vld [vmem:[%s3425_s1 + $0x20] sm:$0xff]  ;;  %v2665_v40 = vld [vmem:[%s3425_s1 + $0x1e8] sm:$0xff] }
  0x25   : > { %2701 = vmatpush.bf16.msra.mxu1 %v2605_v14  ;;  %468 = vmatpush.bf16.msra.mxu0 %v2605_v14  ;;  %v375_v8 = vrot.slane %v374_v54, 4  ;;  %v379_v9 = vrot.slane %v377_v55, 5  ;;  %v2215_v11 = vor.u32 %v2620_v63, %v2214_v62  ;;  %v305_v14 = vrot.slane %v304_v58, 4  ;;  %v3007_v47 = vld [vmem:[%s2828_s8 + $0xc] sm:$0x1]  ;;  %v2599_v55 = vld [vmem:[%s3425_s1 + $0x18] sm:$0xff] }
  0x26   : > { %738 = vmatpush.bf16.msra.mxu2 %v2613_v19  ;;  %v309_v15 = vrot.slane %v307_v59, 5  ;;  %v319_v16 = vrot.slane %v318_v60, 4  ;;  %v323_v17 = vrot.slane %v321_v61, 5  ;;  %v2601_v19 = vld [vmem:[%s3425_s1 + $0x28] sm:$0xff]  ;;  %v2134_v20 = vrot.slane %v594_v4, 9  ;;  %v2635_v58 = vld [vmem:[%s3425_s1 + $0x118] sm:$0xff] }
  0x27   : > { %876 = vmatpush.bf16.msra.mxu3 %v2625_v31  ;;  %v629_v21 = vrot.slane %v2932_v43, 5  ;;  %v2135_v22 = vrot.slane %v595_v5, 9  ;;  %v633_v23 = vrot.slane %v2935_v44, 5  ;;  %v366_v27 = vsel %vm2866_vm4, %v361_v7, %v365_v3  ;;  %v2636_v43 = vld [vmem:[%s3425_s1 + $0x120] sm:$0xff]  ;;  %v2218_v62 = vld [vmem:[%s2828_s8 + $0x18] sm:$0xf] }
  0x28   : > { %v380_v28 = vsel %vm2866_vm4, %v375_v8, %v379_v9  ;;  %v927_v30 = vshll.u32 %v2260_v13, 16  ;;  %v310_v31 = vsel %vm2866_vm4, %v305_v14, %v309_v15  ;;  %v324_v33 = vsel %vm2866_vm4, %v319_v16, %v323_v17  ;;  %v2656_v44 = vld [vmem:[%s3425_s1 + $0x1a0] sm:$0xff]  ;;  %v597_v5 = vld [vmem:[%s2828_s8 + $0x28] sm:$0xe]  ;;  %v2634_v7 = vld [vmem:[%s3425_s1 + $0x110] sm:$0xff] }
  0x29   : > { %2702 = vmatpush.bf16.msra.mxu1 %v2604_v24  ;;  %469 = vmatpush.bf16.msra.mxu0 %v2604_v24  ;;  %v2666_v24 = vld [vmem:[%s3425_s1 + $0x1f0] sm:$0xff]  ;;  %v938_v34 = vshrl.u32 %v2262_v18, 16  ;;  %v941_v35 = vshll.u32 %v2262_v18, 16  ;;  %v630_v38 = vsel %vm2875_vm5, %v2134_v20, %v629_v21  ;;  %v634_v39 = vsel %vm2875_vm5, %v2135_v22, %v633_v23  ;;  %v2621_v63 = vld [vmem:[%s2828_s8 + $0x1c] sm:$0xf0]  ;;  %v2655_v17 = vld [vmem:[%s3425_s1 + $0x198] sm:$0xff] }
  0x2a   : > { %739 = vmatpush.bf16.msra.mxu2 %v2612_v42  ;;  %v405_v42 = vunpack.c.l.b16 %v380_v28  ;;  %v929_v50 = vrot.slane %v927_v30, 5  ;;  %v670_v51 = vunpack.c.l.b16 %v630_v38  ;;  %v933_v59 = vshll.u32 %v3007_v47, 16  ;;  %v2264_v20 = vld [vmem:[%s2828_s8 + $0x18] sm:$0xf]  ;;  %v2664_v21 = vld [vmem:[%s3425_s1 + $0x1e0] sm:$0xff]  ;;  %v2654_v23 = vld [vmem:[%s3425_s1 + $0x190] sm:$0xff] }
  0x2b   : > { %877 = vmatpush.bf16.msra.mxu3 %v2624_v56  ;;  %v940_v53 = vrot.slane %v938_v34, 4  ;;  %v943_v54 = vrot.slane %v941_v35, 5  ;;  %v3013_v56 = vld [vmem:[%s2828_s8 + $0x14] sm:$0x1]  ;;  %v2219_v8 = vor.u32 %v2621_v63, %v2218_v62  ;;  %v637_v14 = vrot.slane %v2833_v10, 5  ;;  %v2597_v10 = vld [vmem:[%s3425_s1 + $0x8] sm:$0xff] }
  0x2c   : > { %480 = vmatmul.bf16.vlgmr.msra.gmra.mxu1 %v408_v41  ;;  %470 = vmatmul.bf16.vlgmr.msra.gmra.mxu0 %v406_v52  ;;  %v404_v41 = vunpack.c.l.b16 %v366_v27  ;;  %v671_v52 = vunpack.c.l.b16 %v634_v39  ;;  %v947_v4 = vshll.u32 %v3013_v56, 16  ;;  %v935_v9 = vrot.slane %v933_v59, 5  ;;  %v2266_v22 = vld [vmem:[%s2828_s8 + $0x20] sm:$0xf]  ;;  %v2592_v39 = vld [vmem:[%s2828_s8 + $0x4] sm:$0xf0] }
  0x2d   : > { %563 = vmatpush.bf16.msrb.mxu1 %v2603_v29  ;;  %1116 = vmatpush.bf16.msrb.mxu0 %v2639_v45  ;;  %v924_v29 = vshrl.u32 %v2260_v13, 16  ;;  %v400_v45 = vunpack.c.l.b16 %v310_v31  ;;  %v944_v3 = vor.u32 %v943_v54, %v940_v53  ;;  %v2137_v15 = vrot.slane %v597_v5, 9  ;;  %v2596_v34 = vld [vmem:[%s3425_s1] sm:$0xff]  ;;  %v2646_v53 = vld [vmem:[%s3425_s1 + $0x170] sm:$0xff]  ;;  %v599_v5 = vld [vmem:[%s2828_s8 + $0x38] sm:$0xe] }
  0x2e   : > { %1428 = vmatpush.bf16.msrb.mxu2 %v2659_v48  ;;  %878 = vmatmul.bf16.vlgmr.msra.gmra.mxu3 %v2215_v11  ;;  %v409_v60 = vpack.c.b16 %v405_v42, %v404_v41  ;;  %v641_v16 = vrot.slane %v2839_v12, 5  ;;  %v2633_v12 = vld [vmem:[%s3425_s1 + $0x108] sm:$0xff]  ;;  %v952_v28 = vshrl.u32 %v2264_v20, 16  ;;  %v955_v30 = vshll.u32 %v2264_v20, 16  ;;  %v2086_v35 = vld [vmem:[%s2828_s8] sm:$0xf] }
  0x2f   : > { %740 = vmatmul.bf16.vlgmr.msra.gmra.mxu2 %v676_v46  ;;  %1674 = vmatpush.bf16.msrb.mxu3 %v2667_v2  ;;  %v401_v46 = vunpack.c.l.b16 %v324_v33  ;;  %v926_v48 = vrot.slane %v924_v29, 4  ;;  %v677_v2 = vpack.c.b16 %v671_v52, %v670_v51  ;;  %v945_v18 = vrot.slane %v944_v3, 4  ;;  %v2632_v38 = vld [vmem:[%s3425_s1 + $0x100] sm:$0xff]  ;;  %v2622_v62 = vld [vmem:[%s2828_s8 + $0x2c] sm:$0xf0] }
  0x30   : > { %v642_v27 = vsel %vm2875_vm5, %v2137_v15, %v641_v16  ;;  %v966_v31 = vshrl.u32 %v2266_v22, 16  ;;  %v969_v33 = vshll.u32 %v2266_v22, 16  ;;  %v2087_v54 = vor.u32 %v2592_v39, %v2086_v35  ;;  %v2268_v3 = vld [vmem:[%s2828_s8 + $0x28] sm:$0xf]  ;;  %v2652_v22 = vld [vmem:[%s3425_s1 + $0x180] sm:$0xff] }
  0x31   : > { %564 = vmatpush.bf16.msrb.mxu1 %v2602_v0  ;;  %1117 = vmatpush.bf16.msrb.mxu0 %v2638_v1  ;;  %v407_v61 = vpack.c.b16 %v401_v46, %v400_v45  ;;  %v930_v0 = vor.u32 %v929_v50, %v926_v48  ;;  %v596_v1 = vld [vmem:[%s2828_s8 + $0x20] sm:$0xe]  ;;  %v3077_v45 = vld [vmem:[%s3425_s1 + $0x238] sm:$0xff]  ;;  %v3080_v46 = vld [vmem:[%s2828_s8 + $0x24] sm:$0x1]  ;;  %v954_v48 = vrot.slane %v952_v28, 4 }
  0x32   : > { %1429 = vmatpush.bf16.msrb.mxu2 %v2658_v6  ;;  %v2598_v6 = vld [vmem:[%s3425_s1 + $0x10] sm:$0xff]  ;;  %v2136_v11 = vrot.slane %v596_v1, 9  ;;  %v957_v50 = vrot.slane %v955_v30, 5  ;;  %v968_v51 = vrot.slane %v966_v31, 4  ;;  %v971_v52 = vrot.slane %v969_v33, 5  ;;  %v3133_v28 = vld [vmem:[%s3425_s1 + $0x220] sm:$0xff] }
  0x33   : > { %1675 = vmatpush.bf16.msrb.mxu3 %v2666_v24  ;;  %v931_v13 = vrot.slane %v930_v0, 4  ;;  %v2663_v24 = vld [vmem:[%s3425_s1 + $0x1d8] sm:$0xff]  ;;  %v975_v59 = vshll.u32 %v3080_v46, 16  ;;  %v3093_v1 = vld [vmem:[%s3425_s1 + $0x230] sm:$0xff]  ;;  %v980_v15 = vshrl.u32 %v2268_v3, 16  ;;  %v983_v16 = vshll.u32 %v2268_v3, 16 }
  0x34   : > { %v958_v63 = vor.u32 %v957_v50, %v954_v48  ;;  %v972_v0 = vor.u32 %v971_v52, %v968_v51  ;;  %v645_v20 = vrot.slane %v2922_v32, 5  ;;  %v2661_v32 = vld [vmem:[%s3425_s1 + $0x1c8] sm:$0xff]  ;;  %v2643_v31 = vld [vmem:[%s3425_s1 + $0x158] sm:$0xff]  ;;  %v3146_v39 = vld [vmem:[%s2828_s8 + $0x34] sm:$0x1] }
  0x35   : > { %565 = vmatpush.bf16.msrb.mxu1 %v2601_v19  ;;  %1118 = vmatpush.bf16.msrb.mxu0 %v2637_v25  ;;  %v949_v19 = vrot.slane %v947_v4, 5  ;;  %v936_v25 = vsel %vm2866_vm4, %v931_v13, %v935_v9  ;;  %v598_v4 = vld [vmem:[%s2828_s8 + $0x30] sm:$0xe]  ;;  %v977_v9 = vrot.slane %v975_v59, 5  ;;  %v3143_v33 = vld [vmem:[%s2828_s8 + $0x2c] sm:$0x1] }
  0x36   : > { %1430 = vmatpush.bf16.msrb.mxu2 %v2657_v26  ;;  %v638_v26 = vsel %vm2875_vm5, %v2136_v11, %v637_v14  ;;  %v2270_v11 = vld [vmem:[%s2828_s8 + $0x30] sm:$0xf]  ;;  %v959_v13 = vrot.slane %v958_v63, 4  ;;  %v973_v14 = vrot.slane %v972_v0, 4  ;;  %v2462_v51 = vld [vmem:[%s2828_s8 + $0x18] sm:$0xf] }
  0x37   : > { %1676 = vmatpush.bf16.msrb.mxu3 %v2665_v40  ;;  %v950_v29 = vsel %vm2866_vm4, %v945_v18, %v949_v19  ;;  %v1052_v40 = vunpack.c.l.b16 %v936_v25  ;;  %v672_v42 = vunpack.c.l.b16 %v638_v26  ;;  %v3112_v18 = vld [vmem:[%s3425_s1 + $0x228] sm:$0xff]  ;;  %v2138_v19 = vrot.slane %v598_v4, 9  ;;  %v2623_v63 = vld [vmem:[%s2828_s8 + $0x3c] sm:$0xf0]  ;;  %v2272_v0 = vld [vmem:[%s2828_s8 + $0x38] sm:$0xf] }
  0x38   : > { %v1053_v41 = vunpack.c.l.b16 %v950_v29  ;;  %v978_v25 = vsel %vm2866_vm4, %v973_v14, %v977_v9  ;;  %v982_v26 = vrot.slane %v980_v15, 4  ;;  %v989_v52 = vshll.u32 %v3143_v33, 16 }
  0x39   : > { %566 = vmatpush.bf16.msrb.mxu1 %v2600_v37  ;;  %1119 = vmatpush.bf16.msrb.mxu0 %v2636_v43  ;;  %v2647_v37 = vld [vmem:[%s3425_s1 + $0x178] sm:$0xff]  ;;  %v673_v43 = vunpack.c.l.b16 %v642_v27  ;;  %v985_v27 = vrot.slane %v983_v16, 5  ;;  %v646_v29 = vsel %vm2875_vm5, %v2138_v19, %v645_v20  ;;  %v1003_v59 = vshll.u32 %v3146_v39, 16  ;;  %v2274_v16 = vld [vmem:[%s2828_s8 + $0x40] sm:$0xf] }
  0x3a   : > { %1431 = vmatpush.bf16.msrb.mxu2 %v2656_v44  ;;  %v3072_v44 = vld [vmem:[%s2828_s8 + $0x1c] sm:$0x1]  ;;  %v2660_v19 = vld [vmem:[%s3425_s1 + $0x1c0] sm:$0xff]  ;;  %v1011_v20 = vshll.u32 %v2272_v0, 16 }
  0x3b   : > { %1677 = vmatpush.bf16.msrb.mxu3 %v2664_v21  ;;  %v2139_v21 = vrot.slane %v599_v5, 9  ;;  %v986_v50 = vor.u32 %v985_v27, %v982_v26  ;;  %v3164_v5 = vld [vmem:[%s2828_s8 + $0x14] sm:$0x1]  ;;  %v1005_v15 = vrot.slane %v1003_v59, 5 }
  0x3c   : > { %485 = vmatmul.bf16.gmra.mxu1 %v409_v60  ;;  %475 = vmatmul.bf16.gmra.mxu0 %v407_v61  ;;  %v678_v60 = vpack.c.b16 %v673_v43, %v672_v42  ;;  %v2222_v61 = vld [vmem:[%s2828_s8 + $0x28] sm:$0xf]  ;;  %v2593_v42 = vld [vmem:[%s2828_s8 + $0x14] sm:$0xf0]  ;;  %v674_v43 = vunpack.c.l.b16 %v646_v29  ;;  %v3186_v27 = vld [vmem:[%s3425_s1 + $0x210] sm:$0xff] }
  0x3d   : > { %567 = vmatpush.bf16.msrb.mxu1 %v2599_v55  ;;  %1120 = vmatpush.bf16.msrb.mxu0 %v2635_v58  ;;  %v1060_v55 = vpack.c.b16 %v1053_v41, %v1052_v40  ;;  %v961_v58 = vshll.u32 %v3072_v44, 16  ;;  %v2460_v40 = vld [vmem:[%s2828_s8 + $0x10] sm:$0xf]  ;;  %v987_v4 = vrot.slane %v986_v50, 4  ;;  %v2324_v29 = vld [vmem:[%s2828_s8 + $0x8] sm:$0xe] }
  0x3e   : > { %1432 = vmatpush.bf16.msrb.mxu2 %v2655_v17  ;;  %883 = vmatmul.bf16.gmra.mxu3 %v2219_v8  ;;  %v2662_v17 = vld [vmem:[%s3425_s1 + $0x1d0] sm:$0xff] }
  0x3f   : > { %745 = vmatmul.bf16.gmra.mxu2 %v677_v2  ;;  %1678 = vmatpush.bf16.msrb.mxu3 %v2663_v24  ;;  %v2645_v2 = vld [vmem:[%s3425_s1 + $0x168] sm:$0xff]  ;;  %v963_v8 = vrot.slane %v961_v58, 5  ;;  %v997_v24 = vshll.u32 %v2270_v11, 16  ;;  %v2090_v41 = vld [vmem:[%s2828_s8 + $0x10] sm:$0xf] }
  0x41   : > { %568 = vmatpush.bf16.msrb.mxu1 %v2598_v6  ;;  %1121 = vmatpush.bf16.msrb.mxu0 %v2634_v7  ;;  %v2653_v6 = vld [vmem:[%s3425_s1 + $0x188] sm:$0xff]  ;;  %v2223_v7 = vor.u32 %v2622_v62, %v2222_v61  ;;  %v999_v35 = vrot.slane %v997_v24, 5  ;;  %v2091_v61 = vor.u32 %v2593_v42, %v2090_v41  ;;  %v3199_v42 = vld [vmem:[%s2828_s8 + $0x3c] sm:$0x1] }
  0x42   : > { %1433 = vmatpush.bf16.msrb.mxu2 %v2654_v23  ;;  %v994_v23 = vshrl.u32 %v2270_v11, 16 }
  0x43   : > { %1679 = vmatpush.bf16.msrb.mxu3 %v2662_v17  ;;  %v1008_v17 = vshrl.u32 %v2272_v0, 16 }
  0x45   : > { %569 = vmatpush.bf16.msrb.mxu1 %v2597_v10  ;;  %1122 = vmatpush.bf16.msrb.mxu0 %v2633_v12  ;;  %v649_v10 = vrot.slane %v2925_v36, 5  ;;  %v2644_v12 = vld [vmem:[%s3425_s1 + $0x160] sm:$0xff]  ;;  %v964_v36 = vsel %vm2866_vm4, %v959_v13, %v963_v8 }
  0x46   : > { %1434 = vmatpush.bf16.msrb.mxu2 %v2653_v6  ;;  %v991_v6 = vrot.slane %v989_v52, 5 }
  0x47   : > { %v650_v30 = vsel %vm2875_vm5, %v2139_v21, %v649_v10  ;;  %1680 = vmatpush.bf16.msrb.mxu3 %v2661_v32  ;;  %v1491_v10 = vshll.u32 %v3164_v5, 16  ;;  %v1183_v32 = vrot.slane %v3013_v56, 5  ;;  %v1010_v56 = vrot.slane %v1008_v17, 4 }
  0x48   : > { %v675_v48 = vunpack.c.l.b16 %v650_v30 }
  0x49   : > { %570 = vmatpush.bf16.msrb.mxu1 %v2596_v34  ;;  %1123 = vmatpush.bf16.msrb.mxu0 %v2632_v38  ;;  %v996_v34 = vrot.slane %v994_v23, 4  ;;  %v1055_v38 = vunpack.c.l.b16 %v978_v25  ;;  %v1179_v23 = vrot.slane %v3007_v47, 5  ;;  %v1025_v25 = vshll.u32 %v2274_v16, 16 }
  0x4a   : > { %1435 = vmatpush.bf16.msrb.mxu2 %v2652_v22  ;;  %v679_v3 = vpack.c.b16 %v675_v48, %v674_v43  ;;  %v992_v47 = vsel %vm2866_vm4, %v987_v4, %v991_v6  ;;  %v2414_v4 = vld [vmem:[%s2828_s8 + $0x10] sm:$0xf] }
  0x4b   : > { %v1000_v58 = vor.u32 %v999_v35, %v996_v34  ;;  %1681 = vmatpush.bf16.msrb.mxu3 %v2660_v19  ;;  %v2325_v34 = vld [vmem:[%s2828_s8 + $0x10] sm:$0xe]  ;;  %v2332_v35 = vrot.slane %v2324_v29, 9  ;;  %v1027_v52 = vrot.slane %v1025_v25, 5 }
  0x4c   : > { %571 = vmatmul.bf16.vlgmr.msrb.gmra.mxu1 %v2087_v54  ;;  %1124 = vmatmul.bf16.vlgmr.msrb.gmra.mxu0 %v1060_v55  ;;  %v1485_v54 = vshll.u32 %v2460_v40, 16  ;;  %v1496_v55 = vshrl.u32 %v2462_v51, 16  ;;  %v2333_v41 = vrot.slane %v2325_v34, 9  ;;  %v2668_v34 = vld [vmem:[%s3425_s1 + $0x200] sm:$0xff] }
  0x4d   : > { %1290 = vmatpush.bf16.msra.mxu1 %v2647_v37  ;;  %1848 = vmatpush.bf16.msra.mxu0 %v3077_v45  ;;  %v1054_v37 = vunpack.c.l.b16 %v964_v36  ;;  %v1001_v14 = vrot.slane %v1000_v58, 4  ;;  %v1022_v36 = vshrl.u32 %v2274_v16, 16  ;;  %v1180_v50 = vsel %vm2875_vm5, %v2332_v35, %v1179_v23  ;;  %v3231_v23 = vld [vmem:[%s2828_s8 + $0x2c] sm:$0x1] }
  0x4e   : > { %888 = vmatmul.bf16.gmra.mxu3 %v2223_v7  ;;  %2703 = vmatpush.bf16.msra.mxu2 %v3077_v45  ;;  %v2226_v45 = vld [vmem:[%s2828_s8 + $0x38] sm:$0xf]  ;;  %v3167_v7 = vld [vmem:[%s2828_s8 + $0x1c] sm:$0x1]  ;;  %v1487_v9 = vrot.slane %v1485_v54, 5  ;;  %v1498_v11 = vrot.slane %v1496_v55, 4  ;;  %v1226_v54 = vunpack.c.l.b16 %v1180_v50  ;;  %v1056_v58 = vunpack.c.l.b16 %v992_v47 }
  0x4f   : > { %750 = vmatmul.bf16.gmra.mxu2 %v678_v60  ;;  %v2642_v60 = vld [vmem:[%s3425_s1 + $0x150] sm:$0xff]  ;;  %v1061_v62 = vpack.c.b16 %v1055_v38, %v1054_v37  ;;  %v2227_v13 = vor.u32 %v2623_v63, %v2226_v45  ;;  %v1505_v24 = vshll.u32 %v3167_v7, 16  ;;  %v1006_v30 = vsel %vm2866_vm4, %v1001_v14, %v1005_v15  ;;  %v2094_v55 = vld [vmem:[%s2828_s8 + $0x20] sm:$0xf]  ;;  %v2594_v45 = vld [vmem:[%s2828_s8 + $0x24] sm:$0xf0] }
  0x50   : > { %v1013_v37 = vrot.slane %v1011_v20, 5  ;;  %v1057_v59 = vunpack.c.l.b16 %v1006_v30  ;;  %v1017_v63 = vshll.u32 %v3199_v42, 16  ;;  %v2095_v17 = vor.u32 %v2594_v45, %v2094_v55  ;;  %v2098_v55 = vld [vmem:[%s2828_s8 + $0x30] sm:$0xf] }
  0x51   : > { %1291 = vmatpush.bf16.msra.mxu1 %v2646_v53  ;;  %1849 = vmatpush.bf16.msra.mxu0 %v3093_v1  ;;  %v1482_v53 = vshrl.u32 %v2460_v40, 16  ;;  %v1493_v40 = vrot.slane %v1491_v10, 5  ;;  %v1507_v48 = vrot.slane %v1505_v24, 5 }
  0x52   : > { %2704 = vmatpush.bf16.msra.mxu2 %v3093_v1  ;;  %v2641_v1 = vld [vmem:[%s3425_s1 + $0x148] sm:$0xff] }
  0x53   : > { %v1484_v8 = vrot.slane %v1482_v53, 4  ;;  %v1184_v53 = vsel %vm2875_vm5, %v2333_v41, %v1183_v32 }
  0x55   : > { %1292 = vmatpush.bf16.msra.mxu1 %v2645_v2  ;;  %1850 = vmatpush.bf16.msra.mxu0 %v3112_v18  ;;  %v1499_v2 = vshll.u32 %v2462_v51, 16  ;;  %v1488_v21 = vor.u32 %v1487_v9, %v1484_v8  ;;  %v1024_v51 = vrot.slane %v1022_v36, 4 }
  0x56   : > { %2705 = vmatpush.bf16.msra.mxu2 %v3112_v18  ;;  %v2669_v18 = vld [vmem:[%s3425_s1 + $0x208] sm:$0xff] }
  0x57   : > { %v1501_v22 = vrot.slane %v1499_v2, 5  ;;  %v1489_v38 = vrot.slane %v1488_v21, 4  ;;  %v2464_v2 = vld [vmem:[%s2828_s8 + $0x20] sm:$0xf] }
  0x58   : > { %v1510_v9 = vshrl.u32 %v2464_v2, 16 }
  0x59   : > { %1293 = vmatpush.bf16.msra.mxu1 %v2644_v12  ;;  %1851 = vmatpush.bf16.msra.mxu0 %v3133_v28  ;;  %v2671_v12 = vld [vmem:[%s3425_s1 + $0x218] sm:$0xff]  ;;  %v1502_v26 = vor.u32 %v1501_v22, %v1498_v11  ;;  %v1494_v0 = vsel %vm2866_vm4, %v1489_v38, %v1493_v40  ;;  %v1513_v11 = vshll.u32 %v2464_v2, 16  ;;  %v3228_v22 = vld [vmem:[%s2828_s8 + $0x24] sm:$0x1]  ;;  %v2327_v38 = vld [vmem:[%s2828_s8 + $0x20] sm:$0xe] }
  0x5a   : > { %2706 = vmatpush.bf16.msra.mxu2 %v3133_v28  ;;  %v1028_v28 = vor.u32 %v1027_v52, %v1024_v51  ;;  %v1512_v19 = vrot.slane %v1510_v9, 4  ;;  %v1610_v21 = vunpack.c.l.b16 %v1494_v0  ;;  %v1187_v52 = vrot.slane %v3072_v44, 5 }
  0x5b   : > { %v1503_v43 = vrot.slane %v1502_v26, 4  ;;  %v1515_v20 = vrot.slane %v1513_v11, 5  ;;  %v1019_v26 = vrot.slane %v1017_v63, 5  ;;  %v2524_v63 = vld [vmem:[%s2828_s8 + $0x10] sm:$0xe] }
  0x5c   : > { %576 = vmatmul.bf16.gmra.mxu1 %v2091_v61  ;;  %1129 = vmatmul.bf16.gmra.mxu0 %v1061_v62  ;;  %v1227_v61 = vunpack.c.l.b16 %v1184_v53  ;;  %v1014_v62 = vor.u32 %v1013_v37, %v1010_v56  ;;  %v1029_v29 = vrot.slane %v1028_v28, 4  ;;  %v1519_v56 = vshll.u32 %v3228_v22, 16  ;;  %v2326_v37 = vld [vmem:[%s2828_s8 + $0x18] sm:$0xe] }
  0x5d   : > { %1294 = vmatpush.bf16.msra.mxu1 %v2643_v31  ;;  %1852 = vmatpush.bf16.msra.mxu0 %v2671_v12  ;;  %v2640_v31 = vld [vmem:[%s3425_s1 + $0x140] sm:$0xff]  ;;  %v1508_v6 = vsel %vm2866_vm4, %v1503_v43, %v1507_v48  ;;  %v1516_v30 = vor.u32 %v1515_v20, %v1512_v19  ;;  %v2334_v50 = vrot.slane %v2326_v37, 9  ;;  %v2335_v53 = vrot.slane %v2327_v38, 9 }
  0x5e   : > { %893 = vmatmul.bf16.gmra.mxu3 %v2227_v13  ;;  %v3223_v8 = vpack.c.b16 %v1227_v61, %v1226_v54  ;;  %v2648_v13 = vld [vmem:[%s2828_s8 + $0x14] sm:$0xf0]  ;;  %2707 = vmatpush.bf16.msra.mxu2 %v2671_v12  ;;  %v1611_v10 = vunpack.c.l.b16 %v1508_v6  ;;  %v1015_v25 = vrot.slane %v1014_v62, 4  ;;  %v1533_v12 = vshll.u32 %v3231_v23, 16 }
  0x5f   : > { %755 = vmatmul.bf16.gmra.mxu2 %v679_v3  ;;  %v2466_v3 = vld [vmem:[%s2828_s8 + $0x28] sm:$0xf]  ;;  %v2415_v36 = vor.u32 %v2648_v13, %v2414_v4  ;;  %v1521_v43 = vrot.slane %v1519_v56, 5  ;;  %v1191_v54 = vrot.slane %v3080_v46, 5  ;;  %v1737_v62 = vrot.slane %v3164_v5, 5 }
  0x60   : > { %v1524_v15 = vshrl.u32 %v2466_v3, 16  ;;  %v1527_v16 = vshll.u32 %v2466_v3, 16  ;;  %v1020_v40 = vsel %vm2866_vm4, %v1015_v25, %v1019_v26  ;;  %v1535_v48 = vrot.slane %v1533_v12, 5  ;;  %v2525_v3 = vld [vmem:[%s2828_s8 + $0x18] sm:$0xe] }
  0x61   : > { %1295 = vmatpush.bf16.msra.mxu1 %v2642_v60  ;;  %1853 = vmatpush.bf16.msra.mxu0 %v3186_v27  ;;  %v3212_v60 = vld [vmem:[%s2828_s8 + $0x44] sm:$0x1]  ;;  %v1058_v45 = vunpack.c.l.b16 %v1020_v40  ;;  %v1192_v61 = vsel %vm2875_vm5, %v2335_v53, %v1191_v54  ;;  %v2468_v4 = vld [vmem:[%s2828_s8 + $0x30] sm:$0xf]  ;;  %v2470_v6 = vld [vmem:[%s2828_s8 + $0x38] sm:$0xf] }
  0x62   : > { %v1031_v14 = vshll.u32 %v3212_v60, 16  ;;  %v1526_v24 = vrot.slane %v1524_v15, 4  ;;  %v1529_v32 = vrot.slane %v1527_v16, 5  ;;  %2708 = vmatpush.bf16.msra.mxu2 %v3186_v27  ;;  %v1517_v27 = vrot.slane %v1516_v30, 4  ;;  %v2418_v16 = vld [vmem:[%s2828_s8 + $0x20] sm:$0xf] }
  0x63   : > { %v1229_v0 = vunpack.c.l.b16 %v1192_v61  ;;  %v1538_v11 = vshrl.u32 %v2468_v4, 16  ;;  %v1541_v13 = vshll.u32 %v2468_v4, 16  ;;  %v1552_v5 = vshrl.u32 %v2470_v6, 16  ;;  %v2328_v53 = vld [vmem:[%s2828_s8 + $0x28] sm:$0xe] }
  0x64   : > { %v1033_v47 = vrot.slane %v1031_v14, 5  ;;  %v1530_v35 = vor.u32 %v1529_v32, %v1526_v24  ;;  %v1522_v46 = vsel %vm2866_vm4, %v1517_v27, %v1521_v43  ;;  %v1741_v15 = vrot.slane %v3167_v7, 5  ;;  %v2329_v54 = vld [vmem:[%s2828_s8 + $0x30] sm:$0xe]  ;;  %v2526_v4 = vld [vmem:[%s2828_s8 + $0x20] sm:$0xe] }
  0x65   : > { %1296 = vmatpush.bf16.msra.mxu1 %v2641_v1  ;;  %1854 = vmatpush.bf16.msra.mxu0 %v2669_v18  ;;  %v1062_v1 = vpack.c.b16 %v1057_v59, %v1056_v58  ;;  %v1188_v59 = vsel %vm2875_vm5, %v2334_v50, %v1187_v52  ;;  %v1612_v19 = vunpack.c.l.b16 %v1522_v46  ;;  %v1540_v24 = vrot.slane %v1538_v11, 4  ;;  %v2422_v50 = vld [vmem:[%s2828_s8 + $0x30] sm:$0xf]  ;;  %v2527_v11 = vld [vmem:[%s2828_s8 + $0x28] sm:$0xe] }
  0x66   : > { %v1034_v41 = vsel %vm2866_vm4, %v1029_v29, %v1033_v47  ;;  %2709 = vmatpush.bf16.msra.mxu2 %v2669_v18  ;;  %v1531_v51 = vrot.slane %v1530_v35, 4  ;;  %v2595_v18 = vld [vmem:[%s2828_s8 + $0x34] sm:$0xf0]  ;;  %v1228_v44 = vunpack.c.l.b16 %v1188_v59  ;;  %v1543_v32 = vrot.slane %v1541_v13, 5  ;;  %v3268_v29 = vld [vmem:[%s2828_s8 + $0x34] sm:$0x1] }
  0x67   : > { %v1059_v58 = vunpack.c.l.b16 %v1034_v41  ;;  %v2099_v28 = vor.u32 %v2595_v18, %v2098_v55  ;;  %v3271_v47 = vld [vmem:[%s2828_s8 + $0x3c] sm:$0x1]  ;;  %v2472_v55 = vld [vmem:[%s2828_s8 + $0x40] sm:$0xf]  ;;  %v2337_v59 = vrot.slane %v2329_v54, 9  ;;  %v1199_v61 = vrot.slane %v3146_v39, 5 }
  0x68   : > { %v1536_v2 = vsel %vm2866_vm4, %v1531_v51, %v1535_v48  ;;  %v3262_v9 = vpack.c.b16 %v1229_v0, %v1228_v44  ;;  %v1544_v12 = vor.u32 %v1543_v32, %v1540_v24  ;;  %v1561_v35 = vshll.u32 %v3271_v47, 16  ;;  %v2474_v18 = vld [vmem:[%s2828_s8 + $0x48] sm:$0xf] }
  0x69   : > { %1297 = vmatpush.bf16.msra.mxu1 %v2640_v31  ;;  %v1618_v31 = vpack.c.b16 %v1611_v10, %v1610_v21  ;;  %1855 = vmatpush.bf16.msra.mxu0 %v2668_v34  ;;  %v1063_v14 = vpack.c.b16 %v1059_v58, %v1058_v45  ;;  %v1613_v20 = vunpack.c.l.b16 %v1536_v2  ;;  %v2532_v21 = vrot.slane %v2524_v63, 9 }
  0x6a   : > { %2710 = vmatpush.bf16.msra.mxu2 %v2668_v34  ;;  %v2533_v10 = vrot.slane %v2525_v3, 9  ;;  %v1545_v40 = vrot.slane %v1544_v12, 4  ;;  %v1563_v43 = vrot.slane %v1561_v35, 5  ;;  %v2336_v45 = vrot.slane %v2328_v53, 9 }
  0x6b   : > { %v1619_v30 = vpack.c.b16 %v1613_v20, %v1612_v19  ;;  %v1738_v7 = vsel %vm2875_vm5, %v2532_v21, %v1737_v62  ;;  %v1195_v58 = vrot.slane %v3143_v33, 5  ;;  %v2650_v62 = vld [vmem:[%s2828_s8 + $0x34] sm:$0xf0]  ;;  %v1566_v63 = vshrl.u32 %v2472_v55, 16 }
  0x6c   : > { %581 = vmatmul.bf16.gmra.mxu1 %v2095_v17  ;;  %1134 = vmatmul.bf16.gmra.mxu0 %v1062_v1  ;;  %v2649_v17 = vld [vmem:[%s2828_s8 + $0x24] sm:$0xf0]  ;;  %v1555_v1 = vshll.u32 %v2470_v6, 16  ;;  %v1742_v56 = vsel %vm2875_vm5, %v2533_v10, %v1741_v15  ;;  %v1784_v37 = vunpack.c.l.b16 %v1738_v7  ;;  %v1569_v44 = vshll.u32 %v2472_v55, 16  ;;  %v3298_v15 = vld [vmem:[%s2828_s8 + $0x44] sm:$0x1] }
  0x6d   : > { %v2419_v26 = vor.u32 %v2649_v17, %v2418_v16  ;;  %v1785_v38 = vunpack.c.l.b16 %v1742_v56  ;;  %v1580_v0 = vshrl.u32 %v2474_v18, 16  ;;  %v1583_v46 = vshll.u32 %v2474_v18, 16  ;;  %v3301_v16 = vld [vmem:[%s2828_s8 + $0x4c] sm:$0x1] }
  0x6e   : > { %1682 = vmatmul.bf16.vlgmr.msrb.gmra.mxu3 %v1618_v31  ;;  %v1557_v25 = vrot.slane %v1555_v1, 5  ;;  %v1547_v31 = vshll.u32 %v3268_v29, 16  ;;  %v1196_v6 = vsel %vm2875_vm5, %v2336_v45, %v1195_v58  ;;  %v1200_v33 = vsel %vm2875_vm5, %v2337_v59, %v1199_v61  ;;  %v2529_v61 = vld [vmem:[%s2828_s8 + $0x38] sm:$0xe] }
  0x6f   : > { %1436 = vmatmul.bf16.vlgmr.msrb.gmra.mxu2 %v2415_v36  ;;  %v1554_v36 = vrot.slane %v1552_v5, 4  ;;  %v1792_v48 = vpack.c.b16 %v1785_v38, %v1784_v37  ;;  %v1230_v13 = vunpack.c.l.b16 %v1196_v6  ;;  %v1231_v39 = vunpack.c.l.b16 %v1200_v33  ;;  %v2330_v38 = vld [vmem:[%s2828_s8 + $0x38] sm:$0xe] }
  0x70   : > { %v1549_v41 = vrot.slane %v1547_v31, 5  ;;  %v1568_v5 = vrot.slane %v1566_v63, 4  ;;  %v1582_v17 = vrot.slane %v1580_v0, 4  ;;  %v1585_v1 = vrot.slane %v1583_v46, 5  ;;  %v2531_v63 = vld [vmem:[%s2828_s8 + $0x48] sm:$0xe] }
  0x71   : > { %v1558_v34 = vor.u32 %v1557_v25, %v1554_v36  ;;  %v2534_v19 = vrot.slane %v2526_v4, 9  ;;  %v3303_v20 = vpack.c.b16 %v1231_v39, %v1230_v13  ;;  %v1745_v10 = vrot.slane %v3228_v22, 5 }
  0x72   : > { %v1550_v51 = vsel %vm2866_vm4, %v1545_v40, %v1549_v41  ;;  %v2535_v24 = vrot.slane %v2527_v11, 9  ;;  %v1749_v32 = vrot.slane %v3231_v23, 5  ;;  %v1575_v25 = vshll.u32 %v3298_v15, 16  ;;  %v2331_v40 = vld [vmem:[%s2828_s8 + $0x40] sm:$0xe] }
  0x73   : > { %v1559_v27 = vrot.slane %v1558_v34, 4  ;;  %v1614_v2 = vunpack.c.l.b16 %v1550_v51  ;;  %v1746_v7 = vsel %vm2875_vm5, %v2534_v19, %v1745_v10  ;;  %v2338_v41 = vrot.slane %v2330_v38, 9  ;;  %v2651_v51 = vld [vmem:[%s2828_s8 + $0x44] sm:$0xf0] }
  0x74   : > { %v1750_v22 = vsel %vm2875_vm5, %v2535_v24, %v1749_v32  ;;  %v1577_v23 = vrot.slane %v1575_v25, 5  ;;  %v1786_v31 = vunpack.c.l.b16 %v1746_v7  ;;  %v1753_v0 = vrot.slane %v3268_v29, 5 }
  0x75   : > { %v1564_v52 = vsel %vm2866_vm4, %v1559_v27, %v1563_v43  ;;  %v1787_v34 = vunpack.c.l.b16 %v1750_v22  ;;  %v1203_v27 = vrot.slane %v3199_v42, 5  ;;  %v2339_v43 = vrot.slane %v2331_v40, 9  ;;  %v2528_v42 = vld [vmem:[%s2828_s8 + $0x30] sm:$0xe] }
  0x76   : > { %v1615_v3 = vunpack.c.l.b16 %v1564_v52  ;;  %v2537_v46 = vrot.slane %v2529_v61, 9  ;;  %v1765_v4 = vrot.slane %v3301_v16, 5  ;;  %v2539_v33 = vrot.slane %v2531_v63, 9 }
  0x77   : > { %v1793_v52 = vpack.c.b16 %v1787_v34, %v1786_v31  ;;  %v1204_v53 = vsel %vm2875_vm5, %v2338_v41, %v1203_v27 }
  0x78   : > { %v1620_v21 = vpack.c.b16 %v1615_v3, %v1614_v2  ;;  %v1232_v45 = vunpack.c.l.b16 %v1204_v53  ;;  %v1757_v2 = vrot.slane %v3271_v47, 5  ;;  %v1761_v3 = vrot.slane %v3298_v15, 5 }
  0x79   : > { %v1766_v29 = vsel %vm2875_vm5, %v2539_v33, %v1765_v4 }
  0x7c   : > { %586 = vmatmul.bf16.gmra.mxu1 %v2099_v28  ;;  %1139 = vmatmul.bf16.gmra.mxu0 %v1063_v14  ;;  %v1571_v28 = vrot.slane %v1569_v44, 5  ;;  %v2423_v14 = vor.u32 %v2650_v62, %v2422_v50  ;;  %v2426_v50 = vld [vmem:[%s2828_s8 + $0x40] sm:$0xf]  ;;  %v2536_v44 = vrot.slane %v2528_v42, 9 }
  0x7d   : > { %v2427_v59 = vor.u32 %v2651_v51, %v2426_v50  ;;  %v2530_v62 = vld [vmem:[%s2828_s8 + $0x40] sm:$0xe]  ;;  %s2590_s8 = sshll.u32 %s3437_s12, 5 }
  0x7e   : > { %1687 = vmatmul.bf16.gmra.mxu3 %v1619_v30  ;;  %v1572_v36 = vor.u32 %v1571_v28, %v1568_v5  ;;  %v1589_v30 = vshll.u32 %v3301_v16, 16  ;;  %v2538_v6 = vrot.slane %v2530_v62, 9  ;;  %v1754_v11 = vsel %vm2875_vm5, %v2536_v44, %v1753_v0  ;;  %s3380_s6 = scalar_lea.vmem %s3426_s2, %s2590_s8 }
  0x7f   : > { %1441 = vmatmul.bf16.gmra.mxu2 %v2419_v26  ;;  %v1586_v26 = vor.u32 %v1585_v1, %v1582_v17  ;;  %v1788_v47 = vunpack.c.l.b16 %v1754_v11  ;;  %v1791_v28 = vunpack.c.l.b16 %v1766_v29 }
  0x80   : > { %v1591_v12 = vrot.slane %v1589_v30, 5  ;;  %v1762_v13 = vsel %vm2875_vm5, %v2538_v6, %v1761_v3 }
  0x81   : > { %v1587_v56 = vrot.slane %v1586_v26, 4  ;;  %v1790_v5 = vunpack.c.l.b16 %v1762_v13 }
  0x83   : > { %v1592_v37 = vsel %vm2866_vm4, %v1587_v56, %v1591_v12  ;;  %v1795_v17 = vpack.c.b16 %v1791_v28, %v1790_v5 }
  0x84   : > { %v1617_v55 = vunpack.c.l.b16 %v1592_v37 }
  0x8c   : > { %1298 = vmatmul.bf16.vlgmr.msra.gmra.mxu1 %v3223_v8  ;;  %1856 = vmatmul.bf16.vlgmr.msra.gmra.mxu0 %v1792_v48  ;;  %v1573_v8 = vrot.slane %v1572_v36, 4  ;;  %v1207_v48 = vrot.slane %v3212_v60, 5 }
  0x8e   : > { %1692 = vmatmul.bf16.gmra.mxu3 %v1620_v21  ;;  %v1578_v35 = vsel %vm2866_vm4, %v1573_v8, %v1577_v23  ;;  %v1208_v49 = vsel %vm2875_vm5, %v2339_v43, %v1207_v48 }
  0x8f   : > { %1446 = vmatmul.bf16.gmra.mxu2 %v2423_v14  ;;  %v1616_v54 = vunpack.c.l.b16 %v1578_v35  ;;  %v1233_v58 = vunpack.c.l.b16 %v1208_v49 }
  0x91   : > { %v1237_v18 = vpack.c.b16 %v1233_v58, %v1232_v45  ;;  %v1621_v60 = vpack.c.b16 %v1617_v55, %v1616_v54 }
  0x9c   : > { %1303 = vmatmul.bf16.gmra.mxu1 %v3262_v9  ;;  %1861 = vmatmul.bf16.gmra.mxu0 %v1793_v52  ;;  %v1758_v9 = vsel %vm2875_vm5, %v2537_v46, %v1757_v2 }
  0x9d   : > { %v1789_v39 = vunpack.c.l.b16 %v1758_v9 }
  0x9e   : > { %1697 = vmatmul.bf16.gmra.mxu3 %v1621_v60 }
  0x9f   : > { %1451 = vmatmul.bf16.gmra.mxu2 %v2427_v59  ;;  %v1794_v14 = vpack.c.b16 %v1789_v39, %v1788_v47 }
  0xa9   : > { %v481_v15 = vpop.f32.mrf.mxu1  ;;  %v471_v16 = vpop.f32.mrf.mxu0 }
  0xac   : > { %1308 = vmatmul.bf16.gmra.mxu1 %v3303_v20  ;;  %1866 = vmatmul.bf16.gmra.mxu0 %v1794_v14 }
  0xaf   : > { %1871 = vmatmul.bf16.vlgmr.msra.gmra.mxu2 %v1795_v17 }
  0xb1   : > { %v483_v19 = vpop.f32.mrf.mxu1  ;;  %v473_v21 = vpop.f32.mrf.mxu0 }
  0xb2   : > { %v741_v1 = vpop.f32.mrf.mxu2  ;;  %v879_v10 = vpop.f32.mrf.mxu3 }
  0xb9   : > { %v486_v32 = vpop.f32.mrf.mxu1  ;;  %v476_v57 = vpop.f32.mrf.mxu0 }
  0xba   : > { %v743_v24 = vpop.f32.mrf.mxu2  ;;  %v881_v36 = vpop.f32.mrf.mxu3 }
  0xbc   : > { %1313 = vmatmul.bf16.gmra.mxu1 %v1237_v18 }
  0xc1   : > { %v488_v26 = vpop.f32.mrf.mxu1  ;;  %v478_v30 = vpop.f32.mrf.mxu0 }
  0xc2   : > { %v746_v25 = vpop.f32.mrf.mxu2  ;;  %v3346_v7 = vpop.f32.mrf.mxu3 }
  0xc9   : > { %v572_v8 = vpop.f32.mrf.mxu1  ;;  %v1125_v23 = vpop.f32.mrf.mxu0 }
  0xca   : > { %v748_v22 = vpop.f32.mrf.mxu2  ;;  %v573_v20 = vadd.f32 %v572_v8, %v471_v16  ;;  %v3348_v12 = vpop.f32.mrf.mxu3 }
  0xcc   : > { %v761_v56 = vadd.f32 %v741_v1, %v573_v20 }
  0xce   : > { %v899_v39 = vadd.f32 %v879_v10, %v761_v56 }
  0xd0   : > { %v1145_v28 = vadd.f32 %v1125_v23, %v899_v39 }
  0xd1   : > { %v574_v34 = vpop.f32.mrf.mxu1  ;;  %v1127_v35 = vpop.f32.mrf.mxu0 }
  0xd2   : > { %v751_v31 = vpop.f32.mrf.mxu2  ;;  %v575_v37 = vadd.f32 %v574_v34, %v473_v21  ;;  %v3350_v40 = vpop.f32.mrf.mxu3 }
  0xd4   : > { %v762_v38 = vadd.f32 %v743_v24, %v575_v37 }
  0xd6   : > { %v900_v21 = vadd.f32 %v881_v36, %v762_v38 }
  0xd9   : > { %v577_v27 = vpop.f32.mrf.mxu1  ;;  %v1130_v43 = vpop.f32.mrf.mxu0 }
  0xda   : > { %v753_v41 = vpop.f32.mrf.mxu2  ;;  %v578_v48 = vadd.f32 %v577_v27, %v476_v57  ;;  %v3352_v52 = vpop.f32.mrf.mxu3  ;;  %v1146_v57 = vadd.f32 %v1127_v35, %v900_v21 }
  0xdc   : > { %v763_v50 = vadd.f32 %v746_v25, %v578_v48 }
  0xde   : > { %v901_v36 = vadd.f32 %v3346_v7, %v763_v50 }
  0xe0   : > { %v1147_v35 = vadd.f32 %v1130_v43, %v901_v36 }
  0xe1   : > { %v579_v53 = vpop.f32.mrf.mxu1  ;;  %v3354_v49 = vpop.f32.mrf.mxu0 }
  0xe2   : > { %v756_v51 = vpop.f32.mrf.mxu2  ;;  %v580_v54 = vadd.f32 %v579_v53, %v478_v30  ;;  %v3358_v61 = vpop.f32.mrf.mxu3 }
  0xe4   : > { %v764_v55 = vadd.f32 %v748_v22, %v580_v54 }
  0xe6   : > { %v902_v53 = vadd.f32 %v3348_v12, %v764_v55 }
  0xe9   : > { %v582_v58 = vpop.f32.mrf.mxu1  ;;  %v3356_v59 = vpop.f32.mrf.mxu0 }
  0xea   : > { %v758_v45 = vpop.f32.mrf.mxu2  ;;  %v583_v42 = vadd.f32 %v582_v58, %v481_v15  ;;  %v3366_v46 = vpop.f32.mrf.mxu3 }
  0xec   : > { %v3360_v18 = vadd.f32 %v751_v31, %v583_v42  ;;  %v1148_v42 = vadd.f32 %v3354_v49, %v902_v53 }
  0xf1   : > { %v584_v63 = vpop.f32.mrf.mxu1  ;;  %v3362_v60 = vpop.f32.mrf.mxu0 }
  0xf2   : > { %v1437_v62 = vpop.f32.mrf.mxu2  ;;  %v585_v44 = vadd.f32 %v584_v63, %v483_v19  ;;  %v1683_v11 = vpop.f32.mrf.mxu3  ;;  %v2677_v19 = vld [vmem:[%s3380_s6] sm:$0xff]  }
  0xf3   : > { %v2679_v34 = vunpack.c.h.bf16 %v2677_v19 }
  0xf4   : > { %v3364_v0 = vadd.f32 %v753_v41, %v585_v44 }
  0xf9   : > { %v587_v3 = vpop.f32.mrf.mxu1  ;;  %v3368_v4 = vpop.f32.mrf.mxu0 }
  0xfa   : > { %v1439_v2 = vpop.f32.mrf.mxu2  ;;  %v588_v6 = vadd.f32 %v587_v3, %v486_v32  ;;  %v1685_v14 = vpop.f32.mrf.mxu3  ;;  %v2678_v32 = vunpack.c.l.bf16 %v2677_v19  ;;  %v903_v3 = vadd.f32 %v3350_v40, %v3360_v18 }
  0xfc   : > { %v3370_v33 = vadd.f32 %v756_v51, %v588_v6  ;;  %v2692_v51 = vld [vmem:[%s3380_s6 + $0x8] sm:$0xff]  }
  0xfd   : > { %v2682_v7 = vunpack.c.l.bf16 %v2692_v51  ;;  %v2683_v6 = vunpack.c.h.bf16 %v2692_v51 }
 0x101   : > { %v589_v13 = vpop.f32.mrf.mxu1  ;;  %v3372_v29 = vpop.f32.mrf.mxu0 }
 0x102   : > { %v1442_v9 = vpop.f32.mrf.mxu2  ;;  %v590_v47 = vadd.f32 %v589_v13, %v488_v26  ;;  %v1688_v23 = vpop.f32.mrf.mxu3 }
 0x104   : > { %v3374_v5 = vadd.f32 %v758_v45, %v590_v47 }
 0x109   : > { %v1299_v15 = vpop.f32.mrf.mxu1  ;;  %v1857_v16 = vpop.f32.mrf.mxu0 }
 0x10a   : > { %v1319_v17 = vadd.f32 %v1299_v15, %v1145_v28  ;;  %v1444_v1 = vpop.f32.mrf.mxu2  ;;  %v1690_v45 = vpop.f32.mrf.mxu3  ;;  %v2693_v15 = vld [vmem:[%s3380_s6 + $0x10] sm:$0xff]  }
 0x10c   : > { %v1457_v24 = vadd.f32 %v1437_v62, %v1319_v17  ;;  %v2686_v17 = vunpack.c.l.bf16 %v2693_v15 }
 0x10e   : > { %v1703_v10 = vadd.f32 %v1683_v11, %v1457_v24 }
 0x110   : > { %v1877_v25 = vadd.f32 %v1857_v16, %v1703_v10  ;;  %v904_v16 = vadd.f32 %v3352_v52, %v3364_v0 }
 0x111   : > { %v1301_v26 = vpop.f32.mrf.mxu1  ;;  %v1859_v30 = vpop.f32.mrf.mxu0 }
 0x112   : > { %v1901_v22 = vadd.f32 %v2678_v32, %v1877_v25  ;;  %v1320_v8 = vadd.f32 %v1301_v26, %v1146_v57  ;;  %v1447_v56 = vpop.f32.mrf.mxu2  ;;  %v1693_v11 = vpop.f32.mrf.mxu3  ;;  %v905_v57 = vadd.f32 %v3358_v61, %v3370_v33  ;;  %v2687_v26 = vunpack.c.h.bf16 %v2693_v15 }
 0x114   : > { %1909 = vst [vmem:[%s3387_s11] sm:$0xff] %v1901_v22  ;;  %v1458_v20 = vadd.f32 %v1439_v2, %v1320_v8 }
 0x116   : > { %v1704_v31 = vadd.f32 %v1685_v14, %v1458_v20  ;;  %v2694_v20 = vld [vmem:[%s3380_s6 + $0x18] sm:$0xff]  }
 0x117   : > { %v2691_v53 = vunpack.c.h.bf16 %v2694_v20 }
 0x118   : > { %v1878_v37 = vadd.f32 %v1859_v30, %v1704_v31  ;;  %v1151_v30 = vadd.f32 %v3368_v4, %v905_v57 }
 0x119   : > { %v1304_v38 = vpop.f32.mrf.mxu1  ;;  %v1862_v41 = vpop.f32.mrf.mxu0 }
 0x11a   : > { %v1902_v27 = vadd.f32 %v2679_v34, %v1878_v37  ;;  %v1321_v48 = vadd.f32 %v1304_v38, %v1147_v35  ;;  %v1449_v50 = vpop.f32.mrf.mxu2  ;;  %v1695_v21 = vpop.f32.mrf.mxu3  ;;  %v2690_v34 = vunpack.c.l.bf16 %v2694_v20 }
 0x11c   : > { %1910 = vst [vmem:[%s3387_s11 + $0x8] sm:$0xff] %v1902_v27  ;;  %v1459_v54 = vadd.f32 %v1442_v9, %v1321_v48  ;;  %v1149_v9 = vadd.f32 %v3356_v59, %v903_v3 }
 0x11e   : > { %v1705_v58 = vadd.f32 %v1688_v23, %v1459_v54 }
 0x120   : > { %v1879_v62 = vadd.f32 %v1862_v41, %v1705_v58 }
 0x121   : > { %v1306_v63 = vpop.f32.mrf.mxu1  ;;  %v1864_v43 = vpop.f32.mrf.mxu0 }
 0x122   : > { %v1903_v44 = vadd.f32 %v2682_v7, %v1879_v62  ;;  %v1322_v2 = vadd.f32 %v1306_v63, %v1148_v42  ;;  %v1452_v47 = vpop.f32.mrf.mxu2  ;;  %v1698_v36 = vpop.f32.mrf.mxu3 }
 0x124   : > { %1911 = vst [vmem:[%s3387_s11 + $0x10] sm:$0xff] %v1903_v44  ;;  %v1460_v12 = vadd.f32 %v1444_v1, %v1322_v2  ;;  %v1150_v1 = vadd.f32 %v3362_v60, %v904_v16 }
 0x126   : > { %v1706_v55 = vadd.f32 %v1690_v45, %v1460_v12 }
 0x128   : > { %v1880_v13 = vadd.f32 %v1864_v43, %v1706_v55 }
 0x129   : > { %v1309_v49 = vpop.f32.mrf.mxu1  ;;  %v1867_v14 = vpop.f32.mrf.mxu0 }
 0x12a   : > { %v1904_v39 = vadd.f32 %v2683_v6, %v1880_v13  ;;  %v1323_v28 = vadd.f32 %v1309_v49, %v1149_v9  ;;  %v1454_v32 = vpop.f32.mrf.mxu2  ;;  %v1700_v48 = vpop.f32.mrf.mxu3 }
 0x12c   : > { %1912 = vst [vmem:[%s3387_s11 + $0x18] sm:$0xff] %v1904_v39  ;;  %v1461_v40 = vadd.f32 %v1447_v56, %v1323_v28  ;;  %v906_v56 = vadd.f32 %v3366_v46, %v3374_v5 }
 0x12e   : > { %v1707_v18 = vadd.f32 %v1693_v11, %v1461_v40  ;;  %v1152_v35 = vadd.f32 %v3372_v29, %v906_v56 }
 0x130   : > { %v1881_v19 = vadd.f32 %v1867_v14, %v1707_v18 }
 0x131   : > { %v1311_v59 = vpop.f32.mrf.mxu1  ;;  %v1869_v52 = vpop.f32.mrf.mxu0 }
 0x132   : > { %v1905_v24 = vadd.f32 %v2686_v17, %v1881_v19  ;;  %v1324_v10 = vadd.f32 %v1311_v59, %v1150_v1  ;;  %v1872_v61 = vpop.f32.mrf.mxu2 }
 0x134   : > { %1913 = vst [vmem:[%s3387_s11 + $0x20] sm:$0xff] %v1905_v24  ;;  %v1462_v25 = vadd.f32 %v1449_v50, %v1324_v10 }
 0x136   : > { %v1708_v0 = vadd.f32 %v1695_v21, %v1462_v25 }
 0x138   : > { %v1882_v22 = vadd.f32 %v1869_v52, %v1708_v0 }
 0x139   : > { %v1314_v60 = vpop.f32.mrf.mxu1 }
 0x13a   : > { %v1906_v8 = vadd.f32 %v2687_v26, %v1882_v22  ;;  %v1325_v23 = vadd.f32 %v1314_v60, %v1151_v30  ;;  %v1874_v54 = vpop.f32.mrf.mxu2 }
 0x13c   : > { %1914 = vst [vmem:[%s3387_s11 + $0x28] sm:$0xff] %v1906_v8  ;;  %v1463_v31 = vadd.f32 %v1452_v47, %v1325_v23 }
 0x13e   : > { %v1709_v33 = vadd.f32 %v1698_v36, %v1463_v31 }
 0x140   : > { %v1883_v37 = vadd.f32 %v1872_v61, %v1709_v33 }
 0x141   : > { %v1316_v4 = vpop.f32.mrf.mxu1 }
 0x142   : > { %v1907_v38 = vadd.f32 %v2690_v34, %v1883_v37  ;;  %v1326_v41 = vadd.f32 %v1316_v4, %v1152_v35 }
 0x144   : > { %1915 = vst [vmem:[%s3387_s11 + $0x30] sm:$0xff] %v1907_v38  ;;  %v1464_v27 = vadd.f32 %v1454_v32, %v1326_v41 }
 0x146   : > { %v1710_v51 = vadd.f32 %v1700_v48, %v1464_v27 }
 0x148   : > { %v1884_v45 = vadd.f32 %v1874_v54, %v1710_v51 }
 0x14a   : > { %v1908_v46 = vadd.f32 %v2691_v53, %v1884_v45 }
 0x14c   : > { %1916 = vst [vmem:[%s3387_s11 + $0x38] sm:$0xff] %v1908_v46 }
 0x14d PF: > { %s13_s14 = sadd.s32 1, %s2758_s14   ;;  %s3432_s12 = smov %s2754_s13 }
 0x14e   : > { %p10_p5 = scmp.ge.s32.totalorder %s13_s14, 4   ;;  %s3433_s13 = smov %s3435_s15 }
 0x150   :  { %12 = sbr.rel (!%p10_p5) target bundleno = 2 (0x2), region = 76 }

</bundles_post_ra>
